<compile_context>
chip_gen: v5e
topology: v5e:2x2
jax: 0.10.0
libtpu: 0.0.40
codegen_flags: <defaults>
</compile_context>

<pallas_src>
import math
from functools import partial

import jax
import jax.numpy as jnp
from jax import lax
from jax.experimental import pallas as pl
from jax.experimental.pallas import tpu as pltpu

F32 = jnp.float32
BF16 = jnp.bfloat16
NEG_INF = -1e30


def _round_up(x, m):
    return ((x + m - 1) // m) * m


def _leaky_relu(x, slope):
    return jnp.where(x >= 0, x, slope * x)


def _row_softmax(logits):
    m = jnp.max(logits, axis=-1, keepdims=True)
    e = jnp.exp(logits - m)
    return e * pl.reciprocal(jnp.sum(e, axis=-1, keepdims=True), approx=True)


# ---------------------------------------------------------------------------
# plain-XLA per-node pre-pass (O(N*D*(H+A)), hoisted out of the N^2 tile loop)
# ---------------------------------------------------------------------------
def _lorentz_linear(x, w, scale_exp):
    """LorentzLinear (bias=False, eval-mode dropout = identity): matmul + rescale."""
    xw = x @ w
    time = jax.nn.sigmoid(xw[:, :1]) * scale_exp + 1.1
    space = xw[:, 1:]
    sq = jnp.maximum(jnp.sum(space * space, axis=-1, keepdims=True), 1e-8)
    return jnp.concatenate([time, space * jnp.sqrt((time * time - 1.0) / sq)], axis=-1)


def _logmap0(x):
    """Lorentz (k=1) log map at the origin; time coordinate of the result is 0."""
    x0 = x[:, :1]
    space = x[:, 1:]
    sq = jnp.maximum(jnp.sum(space * space, axis=-1, keepdims=True), 1e-12)
    u = jnp.maximum(x0 - 1.0, 0.0)
    dist = jnp.log(1.0 + u + jnp.sqrt(u * (u + 2.0)))          # arcosh(x0), stable near 1
    return jnp.concatenate([jnp.zeros_like(x0), space * (dist / jnp.sqrt(sq))], axis=-1)


# ---------------------------------------------------------------------------
# Kernel 1: assignment matrix  ass (N, A_pad)  via online masked softmax
#   score[i,j] = LeakyReLU(qw[i] + kw[j])  masked to edges; per-row softmax (online);
#   ass = gumbel_softmax(log(att @ ass0 + 1e-6), tau)
# ---------------------------------------------------------------------------
def _assign_kernel(qw_ref, kw_ref, adj_ref, ass0_ref, gum_ref,
                   ass_ref, assbf_ref,
                   m_sc, l_sc, acc_sc,
                   *, n_valid, n_assign, tq, tk, inv_temp, neg_slope):
    i = pl.program_id(0)
    j = pl.program_id(1)
    nj = pl.num_programs(1)

    @pl.when(j == 0)
    def _():
        m_sc[...] = jnp.full_like(m_sc, NEG_INF)
        l_sc[...] = jnp.zeros_like(l_sc)
        acc_sc[...] = jnp.zeros_like(acc_sc)

    # per-edge score (query half depends only on i, key half only on j; both precomputed)
    score = _leaky_relu(qw_ref[...] + kw_ref[...], neg_slope)          # (tq,1)+(1,tk) -> (tq,tk)
    adj_f = adj_ref[...].astype(F32)                                   # int8 0/1 -> f32
    score = jnp.where(adj_f != 0.0, score, NEG_INF)

    ass0 = ass0_ref[pl.ds(j * tk, tk), :]                              # (tk, A_pad) bf16, VMEM-resident

    # online masked softmax, accumulating att @ ass0 (bf16 MXU operands, f32 accumulate)
    m_prev = m_sc[...]
    m_new = jnp.maximum(m_prev, jnp.max(score, axis=-1, keepdims=True))
    alpha = jnp.exp(m_prev - m_new)
    p = jnp.exp(score - m_new)
    l_sc[...] = alpha * l_sc[...] + jnp.sum(p, axis=-1, keepdims=True)
    acc_sc[...] = alpha * acc_sc[...] + jnp.dot(p.astype(BF16), ass0,
                                                preferred_element_type=F32)
    m_sc[...] = m_new

    @pl.when(j == nj - 1)
    def _():
        # NOTE: zero-degree rows would get an ass0-column-mean here (torch_scatter gives a
        # zero row); the demo guarantees >= 1 edge per row via self-loops so they agree.
        ass1 = acc_sc[...] * pl.reciprocal(jnp.maximum(l_sc[...], 1e-30), approx=True)

        lg = (jnp.log(ass1 + 1e-6) + gum_ref[...]) * inv_temp          # Gumbel noise streamed in
        cids = lax.broadcasted_iota(jnp.int32, lg.shape, 1)
        lg = jnp.where(cids < n_assign, lg, NEG_INF)                   # mask padded A lanes
        ass = _row_softmax(lg)
        rids = i * tq + lax.broadcasted_iota(jnp.int32, lg.shape, 0)
        ass = jnp.where(rids < n_valid, ass, 0.0)                      # zero padded rows
        ass_ref[...] = ass
        assbf_ref[...] = ass.astype(BF16)                              # bf16 copy for the pool kernel


# ---------------------------------------------------------------------------
# Kernel 2: pooling  x_assigned = normalize(ass^T x),  adj_new = ass^T adj ass
# ---------------------------------------------------------------------------
def _pool_kernel(ass_ref, x_ref, adj_ref,
                 xa_ref, adjn_ref,
                 b_sc, *, tq, tk):
    i = pl.program_id(0)
    j = pl.program_id(1)
    ni = pl.num_programs(0)
    nj = pl.num_programs(1)

    @pl.when((i == 0) & (j == 0))
    def _():
        xa_ref[...] = jnp.zeros_like(xa_ref)
        adjn_ref[...] = jnp.zeros_like(adjn_ref)

    @pl.when(j == 0)
    def _():
        b_sc[...] = jnp.zeros_like(b_sc)

    # B[i-tile] += adj[i-tile, j-tile] @ ass[j-tile]   (bf16 MXU operands, f32 acc)
    adj_bf = adj_ref[...].astype(F32).astype(BF16)                     # int8 0/1 -> bf16 (exact)
    ass_col = ass_ref[pl.ds(j * tk, tk), :]                            # (tk, A_pad) bf16, VMEM-resident
    b_sc[...] += jnp.dot(adj_bf, ass_col, preferred_element_type=F32)

    @pl.when(j == nj - 1)
    def _():
        ass_row = ass_ref[pl.ds(i * tq, tq), :]                        # (tq, A_pad) bf16
        xa_ref[...] += lax.dot_general(ass_row, x_ref[...].astype(BF16),
                                       (((0,), (0,)), ((), ())),
                                       preferred_element_type=F32)     # ass_i^T x_i
        adjn_ref[...] += lax.dot_general(ass_row, b_sc[...].astype(BF16),
                                         (((0,), (0,)), ((), ())),
                                         preferred_element_type=F32)   # ass_i^T B_i

    @pl.when((i == ni - 1) & (j == nj - 1))
    def _():
        sup = xa_ref[...]                                              # (A_pad, D)
        t0 = sup[:, 0:1]
        sq = jnp.sum(sup * sup, axis=-1, keepdims=True)
        # -lorentz_inner(sup, sup) = t0^2 - ||space||^2 = 2*t0^2 - sq
        denorm_sq = jnp.maximum(jnp.abs(2.0 * t0 * t0 - sq), 1e-8)
        xa_ref[...] = sup * lax.rsqrt(denorm_sq)


# ---------------------------------------------------------------------------
# wrapper
# ---------------------------------------------------------------------------
def lsenet_layer(x, adj, params, *, temperature=0.2, seed=0, tile=256):
    N, D = x.shape
    A = params["w_assign"].shape[1]

    tq = tk = tile
    n_pad = _round_up(max(N, tile), tile)
    a_pad = _round_up(max(A, 128), 128)            # lane-dense assignment width
    ni, nj = n_pad // tq, n_pad // tk

    # pad nodes with the hyperboloid origin (1, 0, ..., 0); pad adj with zeros
    x = x.astype(F32)
    adj = adj.astype(F32)
    if n_pad != N:
        pad_rows = jnp.zeros((n_pad - N, D), F32).at[:, 0].set(1.0)
        x_p = jnp.concatenate([x, pad_rows], axis=0)
        adj_p = jnp.pad(adj, ((0, n_pad - N), (0, n_pad - N)))
    else:
        x_p, adj_p = x, adj
    adj_i8 = (adj_p != 0).astype(jnp.int8)         # 0/1 adjacency, half/quarter the DMA bytes

    # --- cheap per-node pre-pass (plain XLA): q/k projections, score halves, ass0 ---
    q = _lorentz_linear(x_p, params["w_query"].astype(F32), float(params["scale_q_exp"]))
    k = _lorentz_linear(x_p, params["w_key"].astype(F32), float(params["scale_k_exp"]))
    qw = q @ params["w_score_q"].astype(F32)                        # (n_pad, 1)
    kw = (k @ params["w_score_k"].astype(F32)).T                    # (1, n_pad)
    ass0 = jax.nn.softmax(_logmap0(x_p) @ params["w_assign"].astype(F32), axis=-1)
    ass0_bf = jnp.zeros((n_pad, a_pad), BF16).at[:, :A].set(ass0.astype(BF16))

    # Gumbel(0,1) noise generated host-side (no TPU-only PRNG primitives in-kernel)
    gumbel = jax.random.gumbel(jax.random.PRNGKey(int(seed)), (n_pad, a_pad), F32)

    assign = partial(_assign_kernel, n_valid=N, n_assign=A, tq=tq, tk=tk,
                     inv_temp=float(1.0 / temperature), neg_slope=0.01)

    cparams = pltpu.CompilerParams(
        dimension_semantics=("parallel", "arbitrary"),
        vmem_limit_bytes=32 * 1024 * 1024)         # headroom on v7x's 64 MiB VMEM

    cost1 = pl.CostEstimate(
        flops=int(2 * n_pad * n_pad * a_pad + 12 * n_pad * n_pad),
        transcendentals=int(2 * n_pad * n_pad + 3 * n_pad * a_pad),
        bytes_accessed=int(n_pad * n_pad + 12 * n_pad * a_pad + 8 * n_pad))

    ass_f32, ass_bf = pl.pallas_call(
        assign,
        out_shape=(jax.ShapeDtypeStruct((n_pad, a_pad), F32),
                   jax.ShapeDtypeStruct((n_pad, a_pad), BF16)),
        grid=(ni, nj),
        in_specs=[
            pl.BlockSpec((tq, 1), lambda i, j: (i, 0)),           # qw (row half of score)
            pl.BlockSpec((1, tk), lambda i, j: (0, j)),           # kw (col half of score)
            pl.BlockSpec((tq, tk), lambda i, j: (i, j)),          # adj tile (int8)
            pl.BlockSpec((n_pad, a_pad), lambda i, j: (0, 0)),    # ass0 (bf16, VMEM-resident)
            pl.BlockSpec((tq, a_pad), lambda i, j: (i, 0)),       # Gumbel noise (per row tile)
        ],
        out_specs=(pl.BlockSpec((tq, a_pad), lambda i, j: (i, 0)),
                   pl.BlockSpec((tq, a_pad), lambda i, j: (i, 0))),
        scratch_shapes=[pltpu.VMEM((tq, 1), F32),        # running max
                        pltpu.VMEM((tq, 1), F32),        # running sum
                        pltpu.VMEM((tq, a_pad), F32)],   # running att @ ass0
        compiler_params=cparams,
        cost_estimate=cost1,
    )(qw, kw, adj_i8, ass0_bf, gumbel)

    cost2 = pl.CostEstimate(
        flops=int(2 * n_pad * n_pad * a_pad + 2 * n_pad * a_pad * (a_pad + D)),
        transcendentals=0,
        bytes_accessed=int(n_pad * n_pad + 2 * n_pad * a_pad + 4 * n_pad * D
                           + 4 * a_pad * (a_pad + D)))

    pool = partial(_pool_kernel, tq=tq, tk=tk)
    xa_p, adjn_p = pl.pallas_call(
        pool,
        out_shape=(jax.ShapeDtypeStruct((a_pad, D), F32),
                   jax.ShapeDtypeStruct((a_pad, a_pad), F32)),
        grid=(ni, nj),
        in_specs=[
            pl.BlockSpec((n_pad, a_pad), lambda i, j: (0, 0)),    # ass (bf16, VMEM-resident)
            pl.BlockSpec((tq, D), lambda i, j: (i, 0)),           # x rows (epilogue only)
            pl.BlockSpec((tq, tk), lambda i, j: (i, j)),          # adj tile (int8)
        ],
        out_specs=(pl.BlockSpec((a_pad, D), lambda i, j: (0, 0)),
                   pl.BlockSpec((a_pad, a_pad), lambda i, j: (0, 0))),
        scratch_shapes=[pltpu.VMEM((tq, a_pad), F32)],            # per-row-tile adj @ ass
        compiler_params=pltpu.CompilerParams(
            dimension_semantics=("arbitrary", "arbitrary"),
            vmem_limit_bytes=32 * 1024 * 1024),
        cost_estimate=cost2,
    )(ass_bf, x_p, adj_i8)

    return xa_p[:A], adjn_p[:A, :A], ass_f32[:N, :A]


# ---------------------------------------------------------------------------
# deterministic parameter init (shapes from the module __init__)
# ---------------------------------------------------------------------------
def init_params(key, D, H, A):
    k1, k2, k3, k4 = jax.random.split(key, 4)
    # assign_linear: nn.Linear(D, A, bias=False) -> stored as (D, A) for x @ W
    ba = 1.0 / math.sqrt(D)
    w_assign = jax.random.uniform(k1, (D, A), F32, -ba, ba)
    # LorentzLinear query/key: nn.Linear(D, H, bias=False), uniform(-1/sqrt(H), 1/sqrt(H)),
    # with the input "time" feature column (input index 0) zeroed by reset_parameters.
    stdv = 1.0 / math.sqrt(H)
    w_query = jax.random.uniform(k2, (D, H), F32, -stdv, stdv).at[0, :].set(0.0)
    w_key = jax.random.uniform(k3, (D, H), F32, -stdv, stdv).at[0, :].set(0.0)
    # scalar_map: nn.Linear(2H, 1, bias=False), split into q-half and k-half
    bs = 1.0 / math.sqrt(2 * H)
    w_score = jax.random.uniform(k4, (2 * H, 1), F32, -bs, bs)
    scale_exp = math.exp(math.log(10.0))  # LorentzLinear scale parameter, exp()'d
    return dict(w_assign=w_assign, w_query=w_query, w_key=w_key,
                w_score_q=w_score[:H], w_score_k=w_score[H:],
                scale_q_exp=scale_exp, scale_k_exp=scale_exp)


if __name__ == "__main__":
    N, D, H, A = 512, 8, 16, 4
    key = jax.random.PRNGKey(0)
    kx, ka, kp = jax.random.split(key, 3)

    # points on the Lorentz hyperboloid (k=1): x0 = sqrt(1 + ||x_space||^2)
    x_space = 0.5 * jax.random.normal(kx, (N, D - 1), F32)
    x_time = jnp.sqrt(1.0 + jnp.sum(x_space * x_space, axis=-1, keepdims=True))
    x = jnp.concatenate([x_time, x_space], axis=-1)

    # symmetric binary adjacency with self-loops (every node has >= 1 edge)
    adj = (jax.random.uniform(ka, (N, N)) < 0.02).astype(F32)
    adj = jnp.maximum(adj, adj.T)
    adj = jnp.maximum(adj, jnp.eye(N, dtype=F32))

    params = init_params(kp, D, H, A)

    x_assigned, adj_new, ass = lsenet_layer(x, adj, params, temperature=0.2, seed=0)
    jax.block_until_ready((x_assigned, adj_new, ass))

    assert x_assigned.shape == (A, D)
    assert adj_new.shape == (A, A)
    assert ass.shape == (N, A)
    assert bool(jnp.all(jnp.isfinite(x_assigned)))
    assert bool(jnp.all(jnp.isfinite(adj_new)))
    assert bool(jnp.all(jnp.isfinite(ass)))
    assert bool(jnp.allclose(jnp.sum(ass, axis=-1), 1.0, atol=1e-2))  # softmax rows
    print("KERNEL_OK")
</pallas_src>

<mosaic_0001>
module attributes {stable_mosaic.version = 11 : i64} {
  func.func @_assign_kernel(%arg0: i32, %arg1: i32, %arg2: memref<256x1xf32, #tpu.memory_space<vmem>>, %arg3: memref<1x256xf32, #tpu.memory_space<vmem>>, %arg4: memref<256x256xi8, #tpu.memory_space<vmem>>, %arg5: memref<512x128xbf16, #tpu.memory_space<vmem>>, %arg6: memref<256x128xf32, #tpu.memory_space<vmem>>, %arg7: memref<256x128xf32, #tpu.memory_space<vmem>>, %arg8: memref<256x128xbf16, #tpu.memory_space<vmem>>, %arg9: memref<256x1xf32, #tpu.memory_space<vmem>>, %arg10: memref<256x1xf32, #tpu.memory_space<vmem>>, %arg11: memref<256x128xf32, #tpu.memory_space<vmem>>) attributes {dimension_semantics = [#tpu.dimension_semantics<parallel>, #tpu.dimension_semantics<arbitrary>], iteration_bounds = array<i64: 2, 2>, scalar_prefetch = 0 : i64, scratch_operands = 3 : i64, tpu.core_type = #tpu.core_type<tc>, window_params = [{transform_indices = @transform_0, window_bounds = array<i64: 256, 1>}, {transform_indices = @transform_1, window_bounds = array<i64: 1, 256>}, {transform_indices = @transform_2, window_bounds = array<i64: 256, 256>}, {pipeline_mode = #tpu.pipeline_mode<synchronous>, transform_indices = @transform_3, window_bounds = array<i64: 512, 128>}, {transform_indices = @transform_4, window_bounds = array<i64: 256, 128>}, {transform_indices = @transform_5, window_bounds = array<i64: 256, 128>}, {transform_indices = @transform_6, window_bounds = array<i64: 256, 128>}]} {
    %c0_i32 = arith.constant 0 : i32
    %0 = arith.cmpi eq, %arg1, %c0_i32 : i32
    %1 = arith.extui %0 : i1 to i32
    %c0_i32_0 = arith.constant 0 : i32
    %2 = arith.cmpi ne, %1, %c0_i32_0 : i32
    scf.if %2 {
      %cst_26 = arith.constant -1.000000e+30 : f32
      %48 = vector.broadcast %cst_26 : f32 to vector<256x1xf32>
      %c0_27 = arith.constant 0 : index
      %c0_28 = arith.constant 0 : index
      %49 = vector.load %arg9[%c0_27, %c0_28] : memref<256x1xf32, #tpu.memory_space<vmem>>, vector<256x1xf32>
      tpu.vector_store %arg9[%c0_27, %c0_28], %48 {strides = array<i32>} : memref<256x1xf32, #tpu.memory_space<vmem>>, vector<256x1xf32>,
      %cst_29 = arith.constant 0.000000e+00 : f32
      %50 = vector.broadcast %cst_29 : f32 to vector<256x1xf32>
      %c0_30 = arith.constant 0 : index
      %c0_31 = arith.constant 0 : index
      %51 = vector.load %arg10[%c0_30, %c0_31] : memref<256x1xf32, #tpu.memory_space<vmem>>, vector<256x1xf32>
      tpu.vector_store %arg10[%c0_30, %c0_31], %50 {strides = array<i32>} : memref<256x1xf32, #tpu.memory_space<vmem>>, vector<256x1xf32>,
      %cst_32 = arith.constant 0.000000e+00 : f32
      %52 = vector.broadcast %cst_32 : f32 to vector<256x128xf32>
      %c0_33 = arith.constant 0 : index
      %c0_34 = arith.constant 0 : index
      %53 = vector.load %arg11[%c0_33, %c0_34] : memref<256x128xf32, #tpu.memory_space<vmem>>, vector<256x128xf32>
      tpu.vector_store %arg11[%c0_33, %c0_34], %52 {strides = array<i32>} : memref<256x128xf32, #tpu.memory_space<vmem>>, vector<256x128xf32>,
    } else {
    }
    %c0 = arith.constant 0 : index
    %c0_1 = arith.constant 0 : index
    %3 = vector.load %arg2[%c0, %c0_1] : memref<256x1xf32, #tpu.memory_space<vmem>>, vector<256x1xf32>
    %c0_2 = arith.constant 0 : index
    %c0_3 = arith.constant 0 : index
    %4 = vector.load %arg3[%c0_2, %c0_3] : memref<1x256xf32, #tpu.memory_space<vmem>>, vector<1x256xf32>
    %5 = vector.broadcast %3 : vector<256x1xf32> to vector<256x256xf32>
    %6 = vector.broadcast %4 : vector<1x256xf32> to vector<256x256xf32>
    %7 = arith.addf %5, %6 : vector<256x256xf32>
    %cst = arith.constant 0.000000e+00 : f32
    %8 = vector.broadcast %cst : f32 to vector<256x256xf32>
    %9 = arith.cmpf oge, %7, %8 : vector<256x256xf32>
    %cst_4 = arith.constant 0.00999999977 : f32
    %10 = vector.broadcast %cst_4 : f32 to vector<256x256xf32>
    %11 = arith.mulf %10, %7 : vector<256x256xf32>
    %12 = arith.select %9, %7, %11 : vector<256x256xi1>, vector<256x256xf32>
    %c0_5 = arith.constant 0 : index
    %c0_6 = arith.constant 0 : index
    %13 = vector.load %arg4[%c0_5, %c0_6] : memref<256x256xi8, #tpu.memory_space<vmem>>, vector<256x256xi8>
    %14 = arith.sitofp %13 : vector<256x256xi8> to vector<256x256xf32>
    %cst_7 = arith.constant 0.000000e+00 : f32
    %15 = vector.broadcast %cst_7 : f32 to vector<256x256xf32>
    %16 = arith.cmpf one, %14, %15 : vector<256x256xf32>
    %cst_8 = arith.constant -1.000000e+30 : f32
    %17 = vector.broadcast %cst_8 : f32 to vector<256x256xf32>
    %18 = arith.select %16, %12, %17 : vector<256x256xi1>, vector<256x256xf32>
    %c256_i32 = arith.constant 256 : i32
    %19 = arith.muli %arg1, %c256_i32 : i32
    %20 = arith.index_cast %19 : i32 to index
    %c0_9 = arith.constant 0 : index
    %21 = vector.load %arg5[%20, %c0_9] : memref<512x128xbf16, #tpu.memory_space<vmem>>, vector<256x128xbf16>
    %c0_10 = arith.constant 0 : index
    %c0_11 = arith.constant 0 : index
    %22 = vector.load %arg9[%c0_10, %c0_11] : memref<256x1xf32, #tpu.memory_space<vmem>>, vector<256x1xf32>
    %cst_12 = arith.constant dense<0xFF800000> : vector<256xf32>
    %23 = vector.multi_reduction <maximumf>, %18, %cst_12 [1] : vector<256x256xf32> to vector<256xf32>
    %24 = vector.shape_cast %23 : vector<256xf32> to vector<256x1xf32>
    %25 = arith.maximumf %22, %24 : vector<256x1xf32>
    %26 = arith.subf %22, %25 : vector<256x1xf32>
    %27 = math.exp %26 : vector<256x1xf32>
    %28 = vector.broadcast %25 : vector<256x1xf32> to vector<256x256xf32>
    %29 = arith.subf %18, %28 : vector<256x256xf32>
    %30 = math.exp %29 : vector<256x256xf32>
    %c0_13 = arith.constant 0 : index
    %c0_14 = arith.constant 0 : index
    %31 = vector.load %arg10[%c0_13, %c0_14] : memref<256x1xf32, #tpu.memory_space<vmem>>, vector<256x1xf32>
    %32 = arith.mulf %27, %31 : vector<256x1xf32>
    %cst_15 = arith.constant dense<0.000000e+00> : vector<256xf32>
    %33 = vector.multi_reduction <add>, %30, %cst_15 [1] : vector<256x256xf32> to vector<256xf32>
    %34 = vector.shape_cast %33 : vector<256xf32> to vector<256x1xf32>
    %35 = arith.addf %32, %34 : vector<256x1xf32>
    %c0_16 = arith.constant 0 : index
    %c0_17 = arith.constant 0 : index
    %36 = vector.load %arg10[%c0_16, %c0_17] : memref<256x1xf32, #tpu.memory_space<vmem>>, vector<256x1xf32>
    tpu.vector_store %arg10[%c0_16, %c0_17], %35 {strides = array<i32>} : memref<256x1xf32, #tpu.memory_space<vmem>>, vector<256x1xf32>,
    %c0_18 = arith.constant 0 : index
    %c0_19 = arith.constant 0 : index
    %37 = vector.load %arg11[%c0_18, %c0_19] : memref<256x128xf32, #tpu.memory_space<vmem>>, vector<256x128xf32>
    %38 = vector.broadcast %27 : vector<256x1xf32> to vector<256x128xf32>
    %39 = arith.mulf %38, %37 : vector<256x128xf32>
    %40 = arith.truncf %30 : vector<256x256xf32> to vector<256x256xbf16>
    %cst_20 = arith.constant dense<0.000000e+00> : vector<256x128xf32>
    %41 = tpu.matmul %40, %21, %cst_20 {dimension_numbers = #tpu.dot_dimension_numbers<[1], [0], [0], [1], [0, 0, 1, 1], [], []>} : vector<256x256xbf16>, vector<256x128xbf16>, vector<256x128xf32> -> vector<256x128xf32>
    %42 = arith.addf %39, %41 : vector<256x128xf32>
    %c0_21 = arith.constant 0 : index
    %c0_22 = arith.constant 0 : index
    %43 = vector.load %arg11[%c0_21, %c0_22] : memref<256x128xf32, #tpu.memory_space<vmem>>, vector<256x128xf32>
    tpu.vector_store %arg11[%c0_21, %c0_22], %42 {strides = array<i32>} : memref<256x128xf32, #tpu.memory_space<vmem>>, vector<256x128xf32>,
    %c0_23 = arith.constant 0 : index
    %c0_24 = arith.constant 0 : index
    %44 = vector.load %arg9[%c0_23, %c0_24] : memref<256x1xf32, #tpu.memory_space<vmem>>, vector<256x1xf32>
    tpu.vector_store %arg9[%c0_23, %c0_24], %25 {strides = array<i32>} : memref<256x1xf32, #tpu.memory_space<vmem>>, vector<256x1xf32>,
    %c1_i32 = arith.constant 1 : i32
    %45 = arith.cmpi eq, %arg1, %c1_i32 : i32
    %46 = arith.extui %45 : i1 to i32
    %c0_i32_25 = arith.constant 0 : i32
    %47 = arith.cmpi ne, %46, %c0_i32_25 : i32
    scf.if %47 {
      %c0_26 = arith.constant 0 : index
      %c0_27 = arith.constant 0 : index
      %48 = vector.load %arg11[%c0_26, %c0_27] : memref<256x128xf32, #tpu.memory_space<vmem>>, vector<256x128xf32>
      %c0_28 = arith.constant 0 : index
      %c0_29 = arith.constant 0 : index
      %49 = vector.load %arg10[%c0_28, %c0_29] : memref<256x1xf32, #tpu.memory_space<vmem>>, vector<256x1xf32>
      %cst_30 = arith.constant 1.000000e-30 : f32
      %50 = vector.broadcast %cst_30 : f32 to vector<256x1xf32>
      %51 = arith.maximumf %49, %50 : vector<256x1xf32>
      %52 = tpu.reciprocal %51 {approx = true} : vector<256x1xf32> -> vector<256x1xf32>
      %53 = vector.broadcast %52 : vector<256x1xf32> to vector<256x128xf32>
      %54 = arith.mulf %48, %53 : vector<256x128xf32>
      %cst_31 = arith.constant 9.99999997E-7 : f32
      %55 = vector.broadcast %cst_31 : f32 to vector<256x128xf32>
      %56 = arith.addf %54, %55 : vector<256x128xf32>
      %57 = math.log %56 : vector<256x128xf32>
      %c0_32 = arith.constant 0 : index
      %c0_33 = arith.constant 0 : index
      %58 = vector.load %arg6[%c0_32, %c0_33] : memref<256x128xf32, #tpu.memory_space<vmem>>, vector<256x128xf32>
      %59 = arith.addf %57, %58 : vector<256x128xf32>
      %cst_34 = arith.constant 5.000000e+00 : f32
      %60 = vector.broadcast %cst_34 : f32 to vector<256x128xf32>
      %61 = arith.mulf %59, %60 : vector<256x128xf32>
      %62 = tpu.iota {dimensions = array<i32: 1>} : vector<256x128xi32>
      %c4_i32 = arith.constant 4 : i32
      %63 = vector.broadcast %c4_i32 : i32 to vector<256x128xi32>
      %64 = arith.cmpi slt, %62, %63 : vector<256x128xi32>
      %cst_35 = arith.constant -1.000000e+30 : f32
      %65 = vector.broadcast %cst_35 : f32 to vector<256x128xf32>
      %66 = arith.select %64, %61, %65 : vector<256x128xi1>, vector<256x128xf32>
      %cst_36 = arith.constant dense<0xFF800000> : vector<256xf32>
      %67 = vector.multi_reduction <maximumf>, %66, %cst_36 [1] : vector<256x128xf32> to vector<256xf32>
      %68 = vector.shape_cast %67 : vector<256xf32> to vector<256x1xf32>
      %69 = vector.broadcast %68 : vector<256x1xf32> to vector<256x128xf32>
      %70 = arith.subf %66, %69 : vector<256x128xf32>
      %71 = math.exp %70 : vector<256x128xf32>
      %cst_37 = arith.constant dense<0.000000e+00> : vector<256xf32>
      %72 = vector.multi_reduction <add>, %71, %cst_37 [1] : vector<256x128xf32> to vector<256xf32>
      %73 = vector.shape_cast %72 : vector<256xf32> to vector<256x1xf32>
      %74 = tpu.reciprocal %73 {approx = true} : vector<256x1xf32> -> vector<256x1xf32>
      %75 = vector.broadcast %74 : vector<256x1xf32> to vector<256x128xf32>
      %76 = arith.mulf %71, %75 : vector<256x128xf32>
      %c256_i32_38 = arith.constant 256 : i32
      %77 = arith.muli %arg0, %c256_i32_38 : i32
      %78 = tpu.iota {dimensions = array<i32: 0>} : vector<256x128xi32>
      %79 = vector.broadcast %77 : i32 to vector<256x128xi32>
      %80 = arith.addi %79, %78 : vector<256x128xi32>
      %c512_i32 = arith.constant 512 : i32
      %81 = vector.broadcast %c512_i32 : i32 to vector<256x128xi32>
      %82 = arith.cmpi slt, %80, %81 : vector<256x128xi32>
      %cst_39 = arith.constant 0.000000e+00 : f32
      %83 = vector.broadcast %cst_39 : f32 to vector<256x128xf32>
      %84 = arith.select %82, %76, %83 : vector<256x128xi1>, vector<256x128xf32>
      %c0_40 = arith.constant 0 : index
      %c0_41 = arith.constant 0 : index
      %85 = vector.load %arg7[%c0_40, %c0_41] : memref<256x128xf32, #tpu.memory_space<vmem>>, vector<256x128xf32>
      tpu.vector_store %arg7[%c0_40, %c0_41], %84 {strides = array<i32>} : memref<256x128xf32, #tpu.memory_space<vmem>>, vector<256x128xf32>,
      %86 = arith.truncf %84 : vector<256x128xf32> to vector<256x128xbf16>
      %c0_42 = arith.constant 0 : index
      %c0_43 = arith.constant 0 : index
      %87 = vector.load %arg8[%c0_42, %c0_43] : memref<256x128xbf16, #tpu.memory_space<vmem>>, vector<256x128xbf16>
      tpu.vector_store %arg8[%c0_42, %c0_43], %86 {strides = array<i32>} : memref<256x128xbf16, #tpu.memory_space<vmem>>, vector<256x128xbf16>,
    } else {
    }
    return
  }
  func.func @transform_0(%arg0: i32, %arg1: i32) -> (i32, i32) {
    %c0_i32 = arith.constant 0 : i32
    %c0_i32_0 = arith.constant 0 : i32
    return %arg0, %c0_i32 : i32, i32
  }
  func.func @transform_1(%arg0: i32, %arg1: i32) -> (i32, i32) {
    %c0_i32 = arith.constant 0 : i32
    %c0_i32_0 = arith.constant 0 : i32
    return %c0_i32, %arg1 : i32, i32
  }
  func.func @transform_2(%arg0: i32, %arg1: i32) -> (i32, i32) {
    %c0_i32 = arith.constant 0 : i32
    return %arg0, %arg1 : i32, i32
  }
  func.func @transform_3(%arg0: i32, %arg1: i32) -> (i32, i32) {
    %c0_i32 = arith.constant 0 : i32
    %c0_i32_0 = arith.constant 0 : i32
    %c0_i32_1 = arith.constant 0 : i32
    return %c0_i32, %c0_i32_0 : i32, i32
  }
  func.func @transform_4(%arg0: i32, %arg1: i32) -> (i32, i32) {
    %c0_i32 = arith.constant 0 : i32
    %c0_i32_0 = arith.constant 0 : i32
    return %arg0, %c0_i32 : i32, i32
  }
  func.func @transform_5(%arg0: i32, %arg1: i32) -> (i32, i32) {
    %c0_i32 = arith.constant 0 : i32
    %c0_i32_0 = arith.constant 0 : i32
    return %arg0, %c0_i32 : i32, i32
  }
  func.func @transform_6(%arg0: i32, %arg1: i32) -> (i32, i32) {
    %c0_i32 = arith.constant 0 : i32
    %c0_i32_0 = arith.constant 0 : i32
    return %arg0, %c0_i32 : i32, i32
  }
}

</mosaic_0001>

<bundles_post_ra>
// kernel: tpu_custom_call.1
= control target key start
LH: loop header
LB: loop body
LE: loop exit
PB: predicated region body
PF: predicated region fallthrough
CT: control target
= control target key end

     0   :  { %s7464_s0 = inlined_call_operand.vmem [shape: f32[512,1], index: 0, kind: input, shape index: {}]   ;;  %s7465_s1 = inlined_call_operand.vmem [shape: f32[1,512], index: 1, kind: input, shape index: {}]   ;;  %s7466_s2 = inlined_call_operand.vmem [shape: s8[512,512], index: 2, kind: input, shape index: {}]   ;;  %s7467_s3 = inlined_call_operand.hbm [shape: bf16[512,128], index: 3, kind: input, shape index: {}]   ;;  %s7468_s4 = inlined_call_operand.hbm [shape: f32[512,128], index: 4, kind: input, shape index: {}]   ;;  %s7469_s5 = inlined_call_operand.hbm [shape: f32[512,128], index: 5, kind: output, shape index: {0}]   ;;  %s7470_s6 = inlined_call_operand.hbm [shape: bf16[512,128], index: 6, kind: output, shape index: {1}]  }
   0x1   :  { %7564 = sst [smem:[#allocation110_spill]] %s7464_s0 }
   0x2   :  { %7565 = sst [smem:[#allocation111_spill]] %s7467_s3 }
   0x3   :  { %7566 = sst [smem:[#allocation112_spill]] %s7469_s5 }
   0x4   :  { %7567 = sst [smem:[#allocation113_spill]] %s7470_s6 }
   0x5   :  { %12 = vsyncpa [#allocation7], 0 }
   0x6   :  { %13 = vsyncpa [#allocation10], 0 }
   0x7   :  { %15 = vsyncpa [#allocation10 + $0x1], 0 }
   0x8   :  { %16 = vsyncpa [#allocation8], 0 }
   0x9   :  { %18 = vsyncpa [#allocation8 + $0x1], 0 }
   0xa   :  { %19 = vsyncpa [#allocation13], 0 }
   0xb   :  { %21 = vsyncpa [#allocation13 + $0x1], 0  ;;  %s5092_s21 = smov 0   ;;  %s5094_s22 = smov 0  }
   0xc   :  { %s5096_s23 = smov 0   ;;  %s5098_s24 = smov 0  }
   0xd   :  { %s5100_s25 = smov 0   ;;  %s5102_s26 = smov 0  }
   0xe   :  { %s5104_s27 = smov 0   ;;  %s5106_s28 = smov 0  }
   0xf   :  { %s5108_s29 = smov 0   ;;  %s5110_s30 = smov 0  }
  0x10 LB: > { %7568 = sst [smem:[#allocation18_spill]] %s5006_s21  ;;  %s4033_s7 = sadd.s32 4294967295, %s5042_s30   ;;  %s5042_s30 = sphi %s5110_s30, %s27_s30   ;;  %s5038_s29 = sphi %s5108_s29, %s7786_s29   ;;  %s5034_s28 = sphi %s5106_s28, %s7785_s28   ;;  %s5030_s27 = sphi %s5104_s27, %s7784_s27   ;;  %s5026_s26 = sphi %s5102_s26, %s7783_s26   ;;  %s5022_s25 = sphi %s5100_s25, %s7782_s25   ;;  %s5018_s24 = sphi %s5098_s24, %s7781_s24   ;;  %s5014_s23 = sphi %s5096_s23, %s7780_s23   ;;  %s5010_s22 = sphi %s5094_s22, %s7779_s22   ;;  %s5006_s21 = sphi %s5092_s21, %s7778_s21  }
  0x11   : > { %s4034_s8 = sadd.s32 4294967294, %s5042_s30   ;;  %s36_s9 = sadd.s32 1, %s5034_s28 }
  0x12   : > { %s39_s10 = sadd.s32 1, %s5038_s29  ;;  %p37_p0 = scmp.ge.s32.totalorder %s36_s9, 2 }
  0x13   : > { %s100_s11 = sadd.s32 1, %s5022_s25  ;;  %p107_p1 = scmp.ne.s32.totalorder %s5022_s25, %s5018_s24 }
  0x14   : > { %p108_p2 = scmp.eq.s32.totalorder %s5042_s30, 0  ;;  %s7788_s9 = smov (%p37_p0, %s36_s9), 0 }
  0x15   : > { %7569 = sst [smem:[#allocation19_spill]] %s7788_s9  ;;  %s7790_s10 = smov (!%p37_p0, %s39_s10), %s5038_s29 }
  0x16   : > { %s96_s12 = ssub.s32 %s5034_s28, %s7788_s9  ;;  %p5155_p3 = por %p108_p2, %p107_p1 }
  0x17   : > { %p41_p4 = scmp.ge.s32.totalorder %s7790_s10, 2  ;;  %s147_s14 = sadd.s32 1, %s5014_s23 }
  0x18   : > { %p154_p5 = scmp.ne.s32.totalorder %s5014_s23, %s5010_s22  ;;  %p160_p6 = scmp.ne.s32.totalorder %s5010_s22, %s5006_s21 }
  0x19   : > { %s7792_s10 = smov (%p41_p4, %s7790_s10), 0  ;;  %p5173_p8 = scmp.eq.s32.totalorder %s4033_s7, 0 }
  0x1a   : > { %7571 = sst [smem:[#allocation20_spill]] %s7792_s10  ;;  %p5169_p7 = por %p154_p5, %p108_p2 }
  0x1b   : > { %s95_s17 = ssub.s32 %s5038_s29, %s7792_s10  ;;  %p184_p9 = scmp.eq.s32.totalorder %s4033_s7, 3 }
  0x1c   : > { %s7572_s15 = scalar_select %p5169_p7, 1, 0 }
  0x1d   : > { %s97_s18 = sor.u32 %s96_s12, %s95_s17  ;;  %p145_p10 = scmp.eq.s32.totalorder %s95_s17, 0 }
  0x1e   : > { %p98_p11 = scmp.eq.s32.totalorder %s97_s18, 0  ;;  %p5184_p12 = por %p5173_p8, %p160_p6 }
  0x1f   : > { %s5189_s20 = scalar_select %p145_p10, %s5014_s23, %s147_s14  }
  0x20   : > { %s5192_s9 = scalar_select %p98_p11, %s5022_s25, %s100_s11  }
  0x21   : > { %7575 = sst [smem:[#allocation21_spill]] %s5189_s20  ;;  %p5197_p13 = por %p184_p9, %p154_p5 }
  0x22   : > { %7576 = sst [smem:[#allocation22_spill]] %s5192_s9  ;;  %p190_p0 = scmp.eq.s32.totalorder %s4034_s8, 3 }
  0x23   : > { %s7577_s6 = scalar_select %p5197_p13, 1, 0 }
  0x24   : > { %p4035_p1 = scmp.ge.s32.totalorder %s5042_s30, 1  ;;  %p223_p2 = scmp.lt.s32.totalorder %s5042_s30, 5 }
  0x25   : > { %7578 = sst [smem:[#allocation23_spill]] %s7577_s6  ;;  %p5206_p4 = por %p190_p0, %p160_p6 }
  0x26   : > { %p5210_p7 = pnand %p4035_p1, %p223_p2  ;;  %s7582_s3 = sld [smem:[#allocation111_spill]] }
  0x27   : > { %s7579_s7 = scalar_select %p5206_p4, 1, 0 }
  0x28   : > { %p4273_p5 = pneg %p5210_p7  ;;  %s5044_s8 = smov [#allocation6]  }
  0x29   : > { %7580 = sst [smem:[#allocation24_spill]] %s7579_s7  ;;  %s236_s18 = sshll.u32 %s5044_s8, 4  ;;  %s237_s18 = int_to_ptr.vmem [resolvable:$true] %s236_s18 }
  0x2a   : > { %p4274_p6 = pnand %p4273_p5, %p5173_p8  ;;  %s5045_s10 = smov 64  }
  0x2b   : > { %s5046_s9 = smov 4   ;;  %p4037_p9 = scmp.ge.s32.totalorder %s5042_s30, 4 }
  0x2c   : > { %s234_s17 = sshll.u32 %s7582_s3, 4  ;;  %s235_s17 = int_to_ptr.hbm [resolvable:$true] %s234_s17 }
  0x2d   : > { %4276 = dma.hbm_to_vmem [thread:$0]  (!%p4274_p6), %s235_s17, 4096, %s237_s18, [#allocation7], %s5045_s10, %s5045_s10, %s5046_s9  }
  0x2e   : > { %246 = sbr.rel (%p4037_p9) target bundleno = 82 (0x52), region = 20 }
  0x33   : > { %266 = sbr.rel (!%p5155_p3) target bundleno = 74 (0x4a), region = 32  ;;  %s268_s14 = sand.u32 (%p5155_p3), 1, %s5022_s25  }
  0x34   : > { %s4040_s11 = sshll.u32 (%p5155_p3), %s5034_s28, 1  ;;  %s4038_s3 = sshll.u32 (%p5155_p3), %s268_s14, 7 }
  0x35   : > { %s4132_s20 = sshll.u32 (%p5155_p3), %s5038_s29, 5  ;;  %s270_s9 = scalar_lea.vmem (%p5155_p3), [#allocation5], %s4038_s3 }
  0x36   : > { %s274_s8 = sadd.s32 (%p5155_p3), %s4132_s20, %s4040_s11 }
  0x37   : > { %s4042_s7 = sshll.u32 (%p5155_p3), %s274_s8, 3 }
  0x38   : > { %s5230_s6 = scalar_lea.vmem %s7466_s2, %s4042_s7 }
  0x39   : > { %v289_v0 = vld [vmem:[%s5230_s6] sm:$0xff]  ;;  %v291_v1 = vld [vmem:[%s5230_s6 + $0x8] sm:$0xff] }
  0x3a   : > { %v293_v2 = vld [vmem:[%s5230_s6 + $0x20] sm:$0xff]  ;;  %290 = vst [vmem:[%s270_s9] sm:$0xff] %v289_v0  ;;  %v295_v3 = vld [vmem:[%s5230_s6 + $0x28] sm:$0xff] }
  0x3b   : > { %292 = vst [vmem:[%s270_s9 + $0x8] sm:$0xff] %v291_v1  ;;  %v297_v4 = vld [vmem:[%s5230_s6 + $0x40] sm:$0xff]  ;;  %v299_v5 = vld [vmem:[%s5230_s6 + $0x48] sm:$0xff] }
  0x3c   : > { %294 = vst [vmem:[%s270_s9 + $0x10] sm:$0xff] %v293_v2  ;;  %v301_v6 = vld [vmem:[%s5230_s6 + $0x60] sm:$0xff]  ;;  %v303_v7 = vld [vmem:[%s5230_s6 + $0x68] sm:$0xff] }
  0x3d   : > { %296 = vst [vmem:[%s270_s9 + $0x18] sm:$0xff] %v295_v3  ;;  %v305_v8 = vld [vmem:[%s5230_s6 + $0x80] sm:$0xff]  ;;  %v307_v9 = vld [vmem:[%s5230_s6 + $0x88] sm:$0xff] }
  0x3e   : > { %298 = vst [vmem:[%s270_s9 + $0x20] sm:$0xff] %v297_v4  ;;  %v309_v10 = vld [vmem:[%s5230_s6 + $0xa0] sm:$0xff]  ;;  %v311_v11 = vld [vmem:[%s5230_s6 + $0xa8] sm:$0xff] }
  0x3f   : > { %300 = vst [vmem:[%s270_s9 + $0x28] sm:$0xff] %v299_v5  ;;  %v313_v12 = vld [vmem:[%s5230_s6 + $0xc0] sm:$0xff]  ;;  %v315_v13 = vld [vmem:[%s5230_s6 + $0xc8] sm:$0xff] }
  0x40   : > { %302 = vst [vmem:[%s270_s9 + $0x30] sm:$0xff] %v301_v6  ;;  %v317_v14 = vld [vmem:[%s5230_s6 + $0xe0] sm:$0xff]  ;;  %v319_v15 = vld [vmem:[%s5230_s6 + $0xe8] sm:$0xff] }
  0x41   : > { %304 = vst [vmem:[%s270_s9 + $0x38] sm:$0xff] %v303_v7 }
  0x42   : > { %306 = vst [vmem:[%s270_s9 + $0x40] sm:$0xff] %v305_v8 }
  0x43   : > { %308 = vst [vmem:[%s270_s9 + $0x48] sm:$0xff] %v307_v9 }
  0x44   : > { %310 = vst [vmem:[%s270_s9 + $0x50] sm:$0xff] %v309_v10 }
  0x45   : > { %312 = vst [vmem:[%s270_s9 + $0x58] sm:$0xff] %v311_v11 }
  0x46   : > { %314 = vst [vmem:[%s270_s9 + $0x60] sm:$0xff] %v313_v12 }
  0x47   : > { %316 = vst [vmem:[%s270_s9 + $0x68] sm:$0xff] %v315_v13 }
  0x48   : > { %318 = vst [vmem:[%s270_s9 + $0x70] sm:$0xff] %v317_v14 }
  0x49   : > { %320 = vst [vmem:[%s270_s9 + $0x78] sm:$0xff] %v319_v15 }
  0x4a PF: > { %s327_s3 = sand.u32 1, %s5014_s23   ;;  %s4133_s5 = sshll.u32 %s5038_s29, 8 }
  0x4b   : > { %s4043_s21 = sshll.u32 %s327_s3, 8  ;;  %s336_s20 = scalar_lea.hbm %s7468_s4, %s4133_s5 }
  0x4c   : > { %s337_s7 = sshll.u32 %s336_s20, 4  ;;  %s331_s17 = scalar_lea.vmem [#allocation9], %s4043_s21  ;;  %s338_s7 = int_to_ptr.hbm [resolvable:$true] %s337_s7 }
  0x4d   : > { %s339_s18 = sshll.u32 %s331_s17, 4  ;;  %s328_s6 = scalar_lea.sflag [#allocation10], %s327_s3  ;;  %s340_s18 = int_to_ptr.vmem [resolvable:$true] %s339_s18 }
  0x4e   : > { %s5047_s14 = smov 128   ;;  %s5048_s11 = smov 8  }
  0x4f   : > { %p7583_p3 = scmp.ne.s32.totalorder %s7572_s15, 0 }
  0x51   : > { %4265 = dma.hbm_to_vmem [thread:$0]  (%p7583_p3), %s338_s7, 4096, %s340_s18, %s328_s6, %s5047_s14, %s5047_s14, %s5048_s11  }
  0x52 PF: > { %351 = sbr.rel (%p5210_p7) target bundleno = 1695 (0x69f), region = 59 }
  0x57   : > { %s354_s8 = sand.u32 1, %s5018_s24  }
  0x58   : > { %s4047_s9 = sshll.u32 %s354_s8, 7 }
  0x59   : > { %s5258_s10 = scalar_lea.vmem [#allocation5], %s4047_s9 }
  0x5a   : > { %4989 = dma.done.wait (%p5173_p8), [#allocation7], 4096  }
  0x5b   : > { %4991 = vsyncadd (%p5173_p8), [#allocation7], 4294963200  ;;  %s5265_s3 = sand.u32 1, %s5010_s22  }
  0x5c   : > { %s4049_s15 = sshll.u32 %s5265_s3, 8  ;;  %s366_s12 = scalar_lea.sflag [#allocation10], %s5265_s3 }
  0x5d   : > { %s5269_s5 = scalar_lea.vmem [#allocation9], %s4049_s15 }
  0x5e   : > { %4993 = dma.done.wait (%p5184_p12), %s366_s12, 4096  }
  0x5f   : > { %4995 = vsyncadd (%p5184_p12), %s366_s12, 4294963200  ;;  %s4051_s24 = sshll.u32 %s5265_s3, 7  ;;  %s4052_s16 = sshll.u32 %s5030_s27, 5 }
  0x60   : > { %p418_p7 = scmp.lt.s32.totalorder %s4052_s16, 63  ;;  %s4054_s21 = sshll.u32 %s5026_s26, 1 }
  0x61   : > { %p424_p8 = scmp.lt.s32.totalorder %s4054_s21, 3  ;;  %s7584_s0 = sld [smem:[#allocation110_spill]] }
  0x62   : > { %s7794_s16 = smov (!%p418_p7, %s4052_s16), 63  ;;  %s5289_s14 = scalar_lea.vmem [#allocation11], %s4049_s15 }
  0x63   : > { %s7796_s21 = smov (!%p424_p8, %s4054_s21), 3  ;;  %s4053_s13 = sshll.u32 %s7794_s16, 3 }
  0x64   : > { %s426_s6 = scalar_lea.vmem %s7465_s1, %s7796_s21  ;;  %s5291_s11 = scalar_lea.vmem [#allocation12], %s4051_s24 }
  0x65   : > { %p4055_p10 = scmp.ne.s32.totalorder %s5026_s26, 0 }
  0x67   : > { %s5283_s17 = scalar_lea.vmem %s7584_s0, %s4053_s13  ;;  %436 = sbr.rel (%p4055_p10) target bundleno = 205 (0xcd), region = 75 }
  0x6c   : > { %vm437_vm0 = vcmask 7168   ;;  %v5049_v16 = vmov -1e+30   ;;  %v5050_v17 = vmov 0.0  }
  0x6d   : > { %438 = vst.msk [vmem:[#allocation2] sm:$0xff] %vm437_vm0, %v5049_v16 }
  0x6e   : > { %439 = vst.msk [vmem:[#allocation2 + $0x8] sm:$0xff] %vm437_vm0, %v5049_v16 }
  0x6f   : > { %440 = vst.msk [vmem:[#allocation2 + $0x10] sm:$0xff] %vm437_vm0, %v5049_v16 }
  0x70   : > { %441 = vst.msk [vmem:[#allocation2 + $0x18] sm:$0xff] %vm437_vm0, %v5049_v16 }
  0x71   : > { %442 = vst.msk [vmem:[#allocation2 + $0x20] sm:$0xff] %vm437_vm0, %v5049_v16 }
  0x72   : > { %443 = vst.msk [vmem:[#allocation2 + $0x28] sm:$0xff] %vm437_vm0, %v5049_v16 }
  0x73   : > { %444 = vst.msk [vmem:[#allocation2 + $0x30] sm:$0xff] %vm437_vm0, %v5049_v16 }
  0x74   : > { %445 = vst.msk [vmem:[#allocation2 + $0x38] sm:$0xff] %vm437_vm0, %v5049_v16 }
  0x75   : > { %446 = vst.msk [vmem:[#allocation2 + $0x40] sm:$0xff] %vm437_vm0, %v5049_v16 }
  0x76   : > { %447 = vst.msk [vmem:[#allocation2 + $0x48] sm:$0xff] %vm437_vm0, %v5049_v16 }
  0x77   : > { %448 = vst.msk [vmem:[#allocation2 + $0x50] sm:$0xff] %vm437_vm0, %v5049_v16 }
  0x78   : > { %449 = vst.msk [vmem:[#allocation2 + $0x58] sm:$0xff] %vm437_vm0, %v5049_v16 }
  0x79   : > { %450 = vst.msk [vmem:[#allocation2 + $0x60] sm:$0xff] %vm437_vm0, %v5049_v16 }
  0x7a   : > { %451 = vst.msk [vmem:[#allocation2 + $0x68] sm:$0xff] %vm437_vm0, %v5049_v16 }
  0x7b   : > { %452 = vst.msk [vmem:[#allocation2 + $0x70] sm:$0xff] %vm437_vm0, %v5049_v16 }
  0x7c   : > { %453 = vst.msk [vmem:[#allocation2 + $0x78] sm:$0xff] %vm437_vm0, %v5049_v16 }
  0x7d   : > { %454 = vst.msk [vmem:[#allocation2 + $0x80] sm:$0xff] %vm437_vm0, %v5049_v16 }
  0x7e   : > { %455 = vst.msk [vmem:[#allocation2 + $0x88] sm:$0xff] %vm437_vm0, %v5049_v16 }
  0x7f   : > { %456 = vst.msk [vmem:[#allocation2 + $0x90] sm:$0xff] %vm437_vm0, %v5049_v16 }
  0x80   : > { %457 = vst.msk [vmem:[#allocation2 + $0x98] sm:$0xff] %vm437_vm0, %v5049_v16 }
  0x81   : > { %458 = vst.msk [vmem:[#allocation2 + $0xa0] sm:$0xff] %vm437_vm0, %v5049_v16 }
  0x82   : > { %459 = vst.msk [vmem:[#allocation2 + $0xa8] sm:$0xff] %vm437_vm0, %v5049_v16 }
  0x83   : > { %460 = vst.msk [vmem:[#allocation2 + $0xb0] sm:$0xff] %vm437_vm0, %v5049_v16 }
  0x84   : > { %461 = vst.msk [vmem:[#allocation2 + $0xb8] sm:$0xff] %vm437_vm0, %v5049_v16 }
  0x85   : > { %462 = vst.msk [vmem:[#allocation2 + $0xc0] sm:$0xff] %vm437_vm0, %v5049_v16 }
  0x86   : > { %463 = vst.msk [vmem:[#allocation2 + $0xc8] sm:$0xff] %vm437_vm0, %v5049_v16 }
  0x87   : > { %464 = vst.msk [vmem:[#allocation2 + $0xd0] sm:$0xff] %vm437_vm0, %v5049_v16 }
  0x88   : > { %465 = vst.msk [vmem:[#allocation2 + $0xd8] sm:$0xff] %vm437_vm0, %v5049_v16 }
  0x89   : > { %466 = vst.msk [vmem:[#allocation2 + $0xe0] sm:$0xff] %vm437_vm0, %v5049_v16 }
  0x8a   : > { %467 = vst.msk [vmem:[#allocation2 + $0xe8] sm:$0xff] %vm437_vm0, %v5049_v16 }
  0x8b   : > { %468 = vst.msk [vmem:[#allocation2 + $0xf0] sm:$0xff] %vm437_vm0, %v5049_v16 }
  0x8c   : > { %469 = vst.msk [vmem:[#allocation2 + $0xf8] sm:$0xff] %vm437_vm0, %v5049_v16 }
  0x8d   : > { %470 = vst.msk [vmem:[#allocation3] sm:$0xff] %vm437_vm0, %v5050_v17 }
  0x8e   : > { %471 = vst.msk [vmem:[#allocation3 + $0x8] sm:$0xff] %vm437_vm0, %v5050_v17 }
  0x8f   : > { %472 = vst.msk [vmem:[#allocation3 + $0x10] sm:$0xff] %vm437_vm0, %v5050_v17 }
  0x90   : > { %473 = vst.msk [vmem:[#allocation3 + $0x18] sm:$0xff] %vm437_vm0, %v5050_v17 }
  0x91   : > { %474 = vst.msk [vmem:[#allocation3 + $0x20] sm:$0xff] %vm437_vm0, %v5050_v17 }
  0x92   : > { %475 = vst.msk [vmem:[#allocation3 + $0x28] sm:$0xff] %vm437_vm0, %v5050_v17 }
  0x93   : > { %476 = vst.msk [vmem:[#allocation3 + $0x30] sm:$0xff] %vm437_vm0, %v5050_v17 }
  0x94   : > { %477 = vst.msk [vmem:[#allocation3 + $0x38] sm:$0xff] %vm437_vm0, %v5050_v17 }
  0x95   : > { %478 = vst.msk [vmem:[#allocation3 + $0x40] sm:$0xff] %vm437_vm0, %v5050_v17 }
  0x96   : > { %479 = vst.msk [vmem:[#allocation3 + $0x48] sm:$0xff] %vm437_vm0, %v5050_v17 }
  0x97   : > { %480 = vst.msk [vmem:[#allocation3 + $0x50] sm:$0xff] %vm437_vm0, %v5050_v17 }
  0x98   : > { %481 = vst.msk [vmem:[#allocation3 + $0x58] sm:$0xff] %vm437_vm0, %v5050_v17 }
  0x99   : > { %482 = vst.msk [vmem:[#allocation3 + $0x60] sm:$0xff] %vm437_vm0, %v5050_v17 }
  0x9a   : > { %483 = vst.msk [vmem:[#allocation3 + $0x68] sm:$0xff] %vm437_vm0, %v5050_v17 }
  0x9b   : > { %484 = vst.msk [vmem:[#allocation3 + $0x70] sm:$0xff] %vm437_vm0, %v5050_v17 }
  0x9c   : > { %485 = vst.msk [vmem:[#allocation3 + $0x78] sm:$0xff] %vm437_vm0, %v5050_v17 }
  0x9d   : > { %486 = vst.msk [vmem:[#allocation3 + $0x80] sm:$0xff] %vm437_vm0, %v5050_v17 }
  0x9e   : > { %487 = vst.msk [vmem:[#allocation3 + $0x88] sm:$0xff] %vm437_vm0, %v5050_v17 }
  0x9f   : > { %488 = vst.msk [vmem:[#allocation3 + $0x90] sm:$0xff] %vm437_vm0, %v5050_v17 }
  0xa0   : > { %489 = vst.msk [vmem:[#allocation3 + $0x98] sm:$0xff] %vm437_vm0, %v5050_v17 }
  0xa1   : > { %490 = vst.msk [vmem:[#allocation3 + $0xa0] sm:$0xff] %vm437_vm0, %v5050_v17 }
  0xa2   : > { %491 = vst.msk [vmem:[#allocation3 + $0xa8] sm:$0xff] %vm437_vm0, %v5050_v17 }
  0xa3   : > { %492 = vst.msk [vmem:[#allocation3 + $0xb0] sm:$0xff] %vm437_vm0, %v5050_v17 }
  0xa4   : > { %493 = vst.msk [vmem:[#allocation3 + $0xb8] sm:$0xff] %vm437_vm0, %v5050_v17 }
  0xa5   : > { %494 = vst.msk [vmem:[#allocation3 + $0xc0] sm:$0xff] %vm437_vm0, %v5050_v17 }
  0xa6   : > { %495 = vst.msk [vmem:[#allocation3 + $0xc8] sm:$0xff] %vm437_vm0, %v5050_v17 }
  0xa7   : > { %496 = vst.msk [vmem:[#allocation3 + $0xd0] sm:$0xff] %vm437_vm0, %v5050_v17 }
  0xa8   : > { %497 = vst.msk [vmem:[#allocation3 + $0xd8] sm:$0xff] %vm437_vm0, %v5050_v17 }
  0xa9   : > { %498 = vst.msk [vmem:[#allocation3 + $0xe0] sm:$0xff] %vm437_vm0, %v5050_v17 }
  0xaa   : > { %499 = vst.msk [vmem:[#allocation3 + $0xe8] sm:$0xff] %vm437_vm0, %v5050_v17 }
  0xab   : > { %500 = vst.msk [vmem:[#allocation3 + $0xf0] sm:$0xff] %vm437_vm0, %v5050_v17 }
  0xac   : > { %501 = vst.msk [vmem:[#allocation3 + $0xf8] sm:$0xff] %vm437_vm0, %v5050_v17 }
  0xad   : > { %502 = vst [vmem:[#allocation4 + $0xb0] sm:$0xff] %v5050_v17 }
  0xae   : > { %503 = vst [vmem:[#allocation4] sm:$0xff] %v5050_v17 }
  0xaf   : > { %504 = vst [vmem:[#allocation4 + $0xd8] sm:$0xff] %v5050_v17 }
  0xb0   : > { %505 = vst [vmem:[#allocation4 + $0x18] sm:$0xff] %v5050_v17 }
  0xb1   : > { %506 = vst [vmem:[#allocation4 + $0x50] sm:$0xff] %v5050_v17 }
  0xb2   : > { %507 = vst [vmem:[#allocation4 + $0x68] sm:$0xff] %v5050_v17 }
  0xb3   : > { %508 = vst [vmem:[#allocation4 + $0x30] sm:$0xff] %v5050_v17 }
  0xb4   : > { %509 = vst [vmem:[#allocation4 + $0x48] sm:$0xff] %v5050_v17 }
  0xb5   : > { %510 = vst [vmem:[#allocation4 + $0x80] sm:$0xff] %v5050_v17 }
  0xb6   : > { %511 = vst [vmem:[#allocation4 + $0x88] sm:$0xff] %v5050_v17 }
  0xb7   : > { %512 = vst [vmem:[#allocation4 + $0xe8] sm:$0xff] %v5050_v17 }
  0xb8   : > { %513 = vst [vmem:[#allocation4 + $0xb8] sm:$0xff] %v5050_v17 }
  0xb9   : > { %514 = vst [vmem:[#allocation4 + $0x60] sm:$0xff] %v5050_v17 }
  0xba   : > { %515 = vst [vmem:[#allocation4 + $0xf0] sm:$0xff] %v5050_v17 }
  0xbb   : > { %516 = vst [vmem:[#allocation4 + $0x8] sm:$0xff] %v5050_v17 }
  0xbc   : > { %517 = vst [vmem:[#allocation4 + $0x78] sm:$0xff] %v5050_v17 }
  0xbd   : > { %518 = vst [vmem:[#allocation4 + $0x38] sm:$0xff] %v5050_v17 }
  0xbe   : > { %519 = vst [vmem:[#allocation4 + $0x58] sm:$0xff] %v5050_v17 }
  0xbf   : > { %520 = vst [vmem:[#allocation4 + $0x40] sm:$0xff] %v5050_v17 }
  0xc0   : > { %521 = vst [vmem:[#allocation4 + $0xc8] sm:$0xff] %v5050_v17 }
  0xc1   : > { %522 = vst [vmem:[#allocation4 + $0xe0] sm:$0xff] %v5050_v17 }
  0xc2   : > { %523 = vst [vmem:[#allocation4 + $0x90] sm:$0xff] %v5050_v17 }
  0xc3   : > { %524 = vst [vmem:[#allocation4 + $0x70] sm:$0xff] %v5050_v17 }
  0xc4   : > { %525 = vst [vmem:[#allocation4 + $0xc0] sm:$0xff] %v5050_v17 }
  0xc5   : > { %526 = vst [vmem:[#allocation4 + $0xa8] sm:$0xff] %v5050_v17 }
  0xc6   : > { %527 = vst [vmem:[#allocation4 + $0xd0] sm:$0xff] %v5050_v17 }
  0xc7   : > { %528 = vst [vmem:[#allocation4 + $0x10] sm:$0xff] %v5050_v17 }
  0xc8   : > { %529 = vst [vmem:[#allocation4 + $0x28] sm:$0xff] %v5050_v17 }
  0xc9   : > { %530 = vst [vmem:[#allocation4 + $0xa0] sm:$0xff] %v5050_v17 }
  0xca   : > { %531 = vst [vmem:[#allocation4 + $0xf8] sm:$0xff] %v5050_v17 }
  0xcb   : > { %532 = vst [vmem:[#allocation4 + $0x20] sm:$0xff] %v5050_v17 }
  0xcc   : > { %533 = vst [vmem:[#allocation4 + $0x98] sm:$0xff] %v5050_v17 }
  0xcd PF: > { %v538_v18 = vld [vmem:[%s5283_s17 + $0x20] sm:$0xff]  ;;  %v536_v19 = vld [vmem:[%s5283_s17 + $0x10] sm:$0xff]  ;;  %v5051_v21 = vmov 0   ;;  %v539_v22 = vld [vmem:[%s5283_s17 + $0x28] sm:$0xff]  ;;  %p4122_p11 = scmp.ne.s32.totalorder %s5026_s26, 1 }
  0xce   : > { %v534_v20 = vld [vmem:[%s5283_s17] sm:$0xff]  ;;  %4382 = vset.pattern.permute.xlu2 %v5051_v21  ;;  %4381 = vset.pattern.permute.xlu1 %v5051_v21  ;;  %v537_v23 = vld [vmem:[%s5283_s17 + $0x18] sm:$0xff]  ;;  %v535_v24 = vld [vmem:[%s5283_s17 + $0x8] sm:$0xff] }
  0xcf   : > { %4380 = vset.pattern.permute.xlu0 %v5051_v21  ;;  %589 = vperm.xlu2 %4382, %v538_v18   ;;  %v542_v25 = vld [vmem:[%s5283_s17 + $0x40] sm:$0xff]  ;;  %v540_v26 = vld [vmem:[%s5283_s17 + $0x30] sm:$0xff]  ;;  %v541_v27 = vld [vmem:[%s5283_s17 + $0x38] sm:$0xff] }
  0xd0   : > { %579 = vperm.xlu1 %4381, %v536_v19   ;;  %569 = vperm.xlu0 %4380, %v534_v20   ;;  %v545_v28 = vld [vmem:[%s5283_s17 + $0x58] sm:$0xff]  ;;  %v543_v29 = vld [vmem:[%s5283_s17 + $0x48] sm:$0xff]  ;;  %v544_v30 = vld [vmem:[%s5283_s17 + $0x50] sm:$0xff] }
  0xd1   : > { %v548_v31 = vld [vmem:[%s5283_s17 + $0x70] sm:$0xff]  ;;  %v546_v32 = vld [vmem:[%s5283_s17 + $0x60] sm:$0xff]  ;;  %v547_v33 = vld [vmem:[%s5283_s17 + $0x68] sm:$0xff] }
  0xd2   : > { %v551_v34 = vld [vmem:[%s5283_s17 + $0x88] sm:$0xff]  ;;  %v549_v35 = vld [vmem:[%s5283_s17 + $0x78] sm:$0xff]  ;;  %v550_v36 = vld [vmem:[%s5283_s17 + $0x80] sm:$0xff] }
  0xd3   : > { %v554_v37 = vld [vmem:[%s5283_s17 + $0xa0] sm:$0xff]  ;;  %v552_v38 = vld [vmem:[%s5283_s17 + $0x90] sm:$0xff]  ;;  %v553_v39 = vld [vmem:[%s5283_s17 + $0x98] sm:$0xff] }
  0xd4   : > { %v557_v40 = vld [vmem:[%s5283_s17 + $0xb8] sm:$0xff]  ;;  %v555_v41 = vld [vmem:[%s5283_s17 + $0xa8] sm:$0xff]  ;;  %v556_v42 = vld [vmem:[%s5283_s17 + $0xb0] sm:$0xff] }
  0xd5   : > { %v560_v43 = vld [vmem:[%s5283_s17 + $0xd0] sm:$0xff]  ;;  %v558_v44 = vld [vmem:[%s5283_s17 + $0xc0] sm:$0xff]  ;;  %v559_v45 = vld [vmem:[%s5283_s17 + $0xc8] sm:$0xff] }
  0xd6   : > { %v563_v46 = vld [vmem:[%s5283_s17 + $0xe8] sm:$0xff]  ;;  %v561_v47 = vld [vmem:[%s5283_s17 + $0xd8] sm:$0xff]  ;;  %v562_v48 = vld [vmem:[%s5283_s17 + $0xe0] sm:$0xff] }
  0xd7   : > { %594 = vperm.xlu2 %4382, %v539_v22   ;;  %v566_v50 = vld [vmem:[%s426_s6] sm:$0x3]  ;;  %v989_v52 = vld [vmem:[%s5258_s10 + $0x8] sm:$0xff]  ;;  %v5464_v55 = vld [vmem:[%s5258_s10 + $0x10] sm:$0xff] }
  0xd8   : > { %584 = vperm.xlu1 %4381, %v537_v23   ;;  %574 = vperm.xlu0 %4380, %v535_v24   ;;  %v988_v51 = vld [vmem:[%s5258_s10] sm:$0xff]  ;;  %v5459_v53 = vperm.slane %v566_v50, 0  ;;  %v5461_v54 = vperm.slane %v566_v50, 1  ;;  %v5467_v56 = vld [vmem:[%s5258_s10 + $0x18] sm:$0xff]  ;;  %v1005_v59 = vunpack.c.0.s8 %v989_v52  ;;  %v1012_v62 = vunpack.c.0.s8 %v5464_v55  ;;  %v5488_v24 = vld [vmem:[%s5258_s10 + $0x28] sm:$0xff] }
  0xd9   : > { %v1004_v58 = vunpack.c.0.s8 %v988_v51  ;;  %v1013_v63 = vunpack.c.0.s8 %v5467_v56  ;;  %v1014_v2 = vunpack.c.1.s8 %v5464_v55  ;;  %v1015_v3 = vunpack.c.1.s8 %v5467_v56  ;;  %v5482_v16 = vld [vmem:[%s5258_s10 + $0x20] sm:$0xff] }
  0xda   : > { %v5479_v5 = vcvt.s32.f32 %v1005_v59  ;;  %v1008_v6 = vunpack.c.2.s8 %v988_v51  ;;  %v1009_v7 = vunpack.c.2.s8 %v989_v52  ;;  %v1076_v10 = vcvt.s32.f32 %v1012_v62 }
  0xdb   : > { %v5477_v4 = vcvt.s32.f32 %v1004_v58  ;;  %v1077_v11 = vcvt.s32.f32 %v1013_v63  ;;  %v1078_v14 = vcvt.s32.f32 %v1014_v2  ;;  %v1079_v15 = vcvt.s32.f32 %v1015_v3 }
  0xdc   : > { %v1010_v18 = vunpack.c.3.s8 %v988_v51  ;;  %v1011_v19 = vunpack.c.3.s8 %v989_v52  ;;  %v5484_v20 = vcvt.s32.f32 %v1008_v6  ;;  %v1006_v21 = vunpack.c.1.s8 %v988_v51 }
  0xdd   : > { %v1007_v22 = vunpack.c.1.s8 %v989_v52  ;;  %vm1140_vm5 = vcmp.ne.f32.partialorder %v1076_v10, 0.0  ;;  %vm1141_vm6 = vcmp.ne.f32.partialorder %v1077_v11, 0.0  ;;  %vm1142_vm7 = vcmp.ne.f32.partialorder %v1078_v14, 0.0 }
  0xde   : > { %vm1143_vm8 = vcmp.ne.f32.partialorder %v1079_v15, 0.0  ;;  %vm1132_vm9 = vcmp.ne.f32.partialorder %v5477_v4, 0.0  ;;  %vm1133_vm10 = vcmp.ne.f32.partialorder %v5479_v5, 0.0  ;;  %vm1136_vm11 = vcmp.ne.f32.partialorder %v5484_v20, 0.0 }
  0xdf   : > { %609 = vperm.xlu2 %4382, %v542_v25  }
  0xe0   : > { %599 = vperm.xlu0 %4380, %v540_v26   ;;  %604 = vperm.xlu1 %4381, %v541_v27   ;;  %v1020_v26 = vunpack.c.0.s8 %v5482_v16 }
  0xe7   : > { %624 = vperm.xlu2 %4382, %v545_v28  }
  0xe8   : > { %614 = vperm.xlu0 %4380, %v543_v29   ;;  %619 = vperm.xlu1 %4381, %v544_v30   ;;  %v5494_v29 = vcvt.s32.f32 %v1009_v7  ;;  %v5496_v30 = vcvt.s32.f32 %v1010_v18 }
  0xea   : > { %vm1137_vm12 = vcmp.ne.f32.partialorder %v5494_v29, 0.0 }
  0xef   : > { %639 = vperm.xlu2 %4382, %v548_v31   ;;  %v5498_v31 = vcvt.s32.f32 %v1011_v19 }
  0xf0   : > { %629 = vperm.xlu0 %4380, %v546_v32   ;;  %634 = vperm.xlu1 %4381, %v547_v33   ;;  %v1021_v32 = vunpack.c.0.s8 %v5488_v24 }
  0xf7   : > { %654 = vperm.xlu2 %4382, %v551_v34  }
  0xf8   : > { %644 = vperm.xlu0 %4380, %v549_v35   ;;  %649 = vperm.xlu1 %4381, %v550_v36   ;;  %v1016_v35 = vunpack.c.2.s8 %v5464_v55  ;;  %v1017_v36 = vunpack.c.2.s8 %v5467_v56 }
  0xfa   : > { %v5536_v58 = vcvt.s32.f32 %v1017_v36 }
  0xff   : > { %669 = vperm.xlu2 %4382, %v554_v37   ;;  %v5507_v37 = vcvt.s32.f32 %v1006_v21 }
 0x100   : > { %659 = vperm.xlu0 %4380, %v552_v38   ;;  %664 = vperm.xlu1 %4381, %v553_v39   ;;  %v5509_v38 = vcvt.s32.f32 %v1007_v22 }
 0x107   : > { %684 = vperm.xlu2 %4382, %v557_v40  }
 0x108   : > { %674 = vperm.xlu0 %4380, %v555_v41   ;;  %679 = vperm.xlu1 %4381, %v556_v42   ;;  %v5518_v42 = vcvt.s32.f32 %v1020_v26  ;;  %v1023_v26 = vunpack.c.1.s8 %v5488_v24 }
 0x10a   : > { %vm1148_vm14 = vcmp.ne.f32.partialorder %v5518_v42, 0.0 }
 0x10f   : > { %699 = vperm.xlu2 %4382, %v560_v43   ;;  %v1026_v43 = vunpack.c.3.s8 %v5482_v16 }
 0x110   : > { %689 = vperm.xlu0 %4380, %v558_v44   ;;  %694 = vperm.xlu1 %4381, %v559_v45   ;;  %v1027_v44 = vunpack.c.3.s8 %v5488_v24 }
 0x111   : > { %v5544_v63 = vcvt.s32.f32 %v1026_v43 }
 0x117   : > { %714 = vperm.xlu2 %4382, %v563_v46  }
 0x118   : > { %704 = vperm.xlu0 %4380, %v561_v47   ;;  %709 = vperm.xlu1 %4381, %v562_v48   ;;  %v5526_v47 = vcvt.s32.f32 %v1021_v32  ;;  %v5529_v48 = vld [vmem:[%s5258_s10 + $0x30] sm:$0xff] }
 0x129   : > { %v590_v49 = vpop.permute.xlu2 %589 }
 0x12a   : > { %v740_v60 = vadd.f32 %v5459_v53, %v590_v49  ;;  %v741_v61 = vadd.f32 %v5461_v54, %v590_v49 }
 0x12c   : > { %v868_v8 = vmul.f32 0.01, %v740_v60  ;;  %v869_v9 = vmul.f32 0.01, %v741_v61  ;;  %vm804_vm1 = vcmp.ge.f32.partialorder %v740_v60, 0.0  ;;  %vm805_vm2 = vcmp.ge.f32.partialorder %v741_v61, 0.0 }
 0x12e   : > { %v932_v23 = vsel %vm804_vm1, %v740_v60, %v868_v8  ;;  %v933_v25 = vsel %vm805_vm2, %v741_v61, %v869_v9  ;;  %vm1138_vm1 = vcmp.ne.f32.partialorder %v5496_v30, 0.0  ;;  %vm1139_vm2 = vcmp.ne.f32.partialorder %v5498_v31, 0.0 }
 0x12f   : > { %v5501_v33 = vsel %vm1140_vm5, %v932_v23, -1e+30  ;;  %v5503_v34 = vsel %vm1141_vm6, %v933_v25, -1e+30  ;;  %vm1134_vm5 = vcmp.ne.f32.partialorder %v5507_v37, 0.0  ;;  %vm1135_vm6 = vcmp.ne.f32.partialorder %v5509_v38, 0.0 }
 0x130   : > { %v1341_v46 = vmax.f32 %v5501_v33, %v5503_v34  ;;  %v1022_v25 = vunpack.c.1.s8 %v5482_v16 }
 0x131   : > { %v595_v57 = vpop.permute.xlu2 %594 }
 0x132   : > { %v742_v0 = vadd.f32 %v5459_v53, %v595_v57  ;;  %v743_v1 = vadd.f32 %v5461_v54, %v595_v57  ;;  %v5534_v57 = vcvt.s32.f32 %v1016_v35 }
 0x134   : > { %v870_v12 = vmul.f32 0.01, %v742_v0  ;;  %v871_v13 = vmul.f32 0.01, %v743_v1  ;;  %vm806_vm3 = vcmp.ge.f32.partialorder %v742_v0, 0.0  ;;  %vm807_vm4 = vcmp.ge.f32.partialorder %v743_v1, 0.0 }
 0x136   : > { %v934_v27 = vsel %vm806_vm3, %v742_v0, %v870_v12  ;;  %v935_v28 = vsel %vm807_vm4, %v743_v1, %v871_v13  ;;  %v5546_v0 = vcvt.s32.f32 %v1027_v44  ;;  %v1032_v1 = vunpack.c.2.s8 %v5529_v48  ;;  %v5556_v12 = vld [vmem:[%s5258_s10 + $0x38] sm:$0xff] }
 0x137   : > { %v5511_v39 = vsel %vm1142_vm7, %v934_v27, -1e+30  ;;  %v5513_v40 = vsel %vm1143_vm8, %v935_v28, -1e+30  ;;  %vm1149_vm7 = vcmp.ne.f32.partialorder %v5526_v47, 0.0  ;;  %v1033_v27 = vunpack.c.2.s8 %v5556_v12 }
 0x138   : > { %v1344_v52 = vmax.f32 %v5511_v39, %v5513_v40  ;;  %v1086_v47 = vcvt.s32.f32 %v1022_v25 }
 0x139   : > { %v610_v17 = vpop.permute.xlu2 %609 }
 0x13a   : > { %v5516_v41 = vadd.f32 %v5459_v53, %v610_v17  ;;  %v749_v49 = vadd.f32 %v5461_v54, %v610_v17 }
 0x13c   : > { %vm812_vm13 = vcmp.ge.f32.partialorder %v5516_v41, 0.0  ;;  %v876_v10 = vmul.f32 0.01, %v5516_v41  ;;  %v877_v11 = vmul.f32 0.01, %v749_v49  ;;  %vm813_vm8 = vcmp.ge.f32.partialorder %v749_v49, 0.0 }
 0x13e   : > { %v940_v43 = vsel %vm812_vm13, %v5516_v41, %v876_v10  ;;  %v941_v44 = vsel %vm813_vm8, %v749_v49, %v877_v11  ;;  %vm1154_vm13 = vcmp.ne.f32.partialorder %v5544_v63, 0.0  ;;  %v5601_v49 = vcvt.s32.f32 %v1032_v1  ;;  %v5679_v63 = vld [vmem:[%s5258_s10 + $0x50] sm:$0xff] }
 0x13f   : > { %v5597_v41 = vsel %vm1148_vm14, %v940_v43, -1e+30  ;;  %v5628_v31 = vsel %vm1149_vm7, %v941_v44, -1e+30  ;;  %v5643_v43 = vld [vmem:[%s5258_s10 + $0x48] sm:$0xff] }
 0x140   : > { %7585 = vst [vmem:[#allocation25_spill] sm:$0xff] %v5597_v41  ;;  %v1353_v38 = vmax.f32 %v5597_v41, %v5628_v31 }
 0x141   : > { %v625_v45 = vpop.permute.xlu2 %624  ;;  %7586 = vst [vmem:[#allocation26_spill] sm:$0xff] %v5628_v31 }
 0x142   : > { %v580_v50 = vpop.permute.xlu1 %579  ;;  %v570_v51 = vpop.permute.xlu0 %569  ;;  %v754_v35 = vadd.f32 %v5459_v53, %v625_v45  ;;  %v755_v36 = vadd.f32 %v5461_v54, %v625_v45 }
 0x143   : > { %v736_v59 = vadd.f32 %v5459_v53, %v580_v50  ;;  %v737_v60 = vadd.f32 %v5461_v54, %v580_v50  ;;  %v732_v61 = vadd.f32 %v5459_v53, %v570_v51  ;;  %v733_v62 = vadd.f32 %v5461_v54, %v570_v51 }
 0x144   : > { %v882_v11 = vmul.f32 0.01, %v754_v35  ;;  %vm818_vm14 = vcmp.ge.f32.partialorder %v754_v35, 0.0 }
 0x145   : > { %vm796_vm15 = vcmp.ge.f32.partialorder %v732_v61, 0.0  ;;  %vm797_vm0 = vcmp.ge.f32.partialorder %v733_v62, 0.0  ;;  %v860_v2 = vmul.f32 0.01, %v732_v61  ;;  %v861_v3 = vmul.f32 0.01, %v733_v62 }
 0x146   : > { %vm800_vm3 = vcmp.ge.f32.partialorder %v736_v59, 0.0  ;;  %vm801_vm4 = vcmp.ge.f32.partialorder %v737_v60, 0.0  ;;  %v864_v6 = vmul.f32 0.01, %v736_v59  ;;  %v865_v7 = vmul.f32 0.01, %v737_v60 }
 0x147   : > { %v924_v8 = vsel %vm796_vm15, %v732_v61, %v860_v2  ;;  %v925_v9 = vsel %vm797_vm0, %v733_v62, %v861_v3 }
 0x148   : > { %v5560_v13 = vsel %vm1132_vm9, %v924_v8, -1e+30  ;;  %v5564_v14 = vsel %vm1133_vm10, %v925_v9, -1e+30  ;;  %v928_v15 = vsel %vm800_vm3, %v736_v59, %v864_v6  ;;  %v929_v17 = vsel %vm801_vm4, %v737_v60, %v865_v7  ;;  %v5612_v7 = vld [vmem:[%s5258_s10 + $0x40] sm:$0xff] }
 0x149   : > { %v5566_v18 = vpop.permute.xlu2 %639  ;;  %v1329_v19 = vmax.f32 %v5560_v13, %v5564_v14  ;;  %v5572_v21 = vsel %vm1136_vm11, %v928_v15, -1e+30  ;;  %v5576_v4 = vsel %vm1137_vm12, %v929_v17, -1e+30  ;;  %vm1144_vm11 = vcmp.ne.f32.partialorder %v5534_v57, 0.0 }
 0x14a   : > { %v585_v22 = vpop.permute.xlu1 %584  ;;  %v575_v5 = vpop.permute.xlu0 %574  ;;  %v1335_v23 = vmax.f32 %v5572_v21, %v5576_v4  ;;  %vm1145_vm12 = vcmp.ne.f32.partialorder %v5536_v58, 0.0  ;;  %vm1155_vm3 = vcmp.ne.f32.partialorder %v5546_v0, 0.0  ;;  %v883_v15 = vmul.f32 0.01, %v755_v36 }
 0x14b   : > { %v738_v20 = vadd.f32 %v5459_v53, %v585_v22  ;;  %v739_v28 = vadd.f32 %v5461_v54, %v585_v22  ;;  %v734_v29 = vadd.f32 %v5459_v53, %v575_v5  ;;  %v735_v32 = vadd.f32 %v5461_v54, %v575_v5  ;;  %1330 = vmax.xlane.f32.xlu2 %v1329_v19 }
 0x14c   : > { %1336 = vmax.xlane.f32.xlu1 %v1335_v23  ;;  %v5632_v17 = vcvt.s32.f32 %v1033_v27  ;;  %v1087_v22 = vcvt.s32.f32 %v1023_v26  ;;  %v1038_v5 = vunpack.c.1.s8 %v5612_v7  ;;  %v761_v44 = vadd.f32 %v5461_v54, %v5566_v18 }
 0x14d   : > { %vm802_vm9 = vcmp.ge.f32.partialorder %v738_v20, 0.0  ;;  %vm803_vm10 = vcmp.ge.f32.partialorder %v739_v28, 0.0  ;;  %v866_v50 = vmul.f32 0.01, %v738_v20  ;;  %v867_v51 = vmul.f32 0.01, %v739_v28 }
 0x14e   : > { %vm798_vm15 = vcmp.ge.f32.partialorder %v734_v29, 0.0  ;;  %vm799_vm0 = vcmp.ge.f32.partialorder %v735_v32, 0.0  ;;  %v862_v59 = vmul.f32 0.01, %v734_v29  ;;  %v863_v45 = vmul.f32 0.01, %v735_v32 }
 0x14f   : > { %v930_v60 = vsel %vm802_vm9, %v738_v20, %v866_v50  ;;  %v931_v61 = vsel %vm803_vm10, %v739_v28, %v867_v51  ;;  %v760_v20 = vadd.f32 %v5459_v53, %v5566_v18  ;;  %v946_v28 = vsel %vm818_vm14, %v754_v35, %v882_v11 }
 0x150   : > { %v5605_v62 = vsel %vm1138_vm1, %v930_v60, -1e+30  ;;  %v5609_v2 = vsel %vm1139_vm2, %v931_v61, -1e+30  ;;  %v926_v3 = vsel %vm798_vm15, %v734_v29, %v862_v59  ;;  %v927_v6 = vsel %vm799_vm0, %v735_v32, %v863_v45 }
 0x151   : > { %v5614_v42 = vpop.permute.xlu2 %654  ;;  %v1338_v8 = vmax.f32 %v5605_v62, %v5609_v2  ;;  %v5620_v1 = vsel %vm1134_vm5, %v926_v3, -1e+30  ;;  %v5624_v30 = vsel %vm1135_vm6, %v927_v6, -1e+30  ;;  %vm819_vm1 = vcmp.ge.f32.partialorder %v755_v36, 0.0 }
 0x152   : > { %v600_v9 = vpop.permute.xlu0 %599  ;;  %v1332_v10 = vmax.f32 %v5620_v1, %v5624_v30  ;;  %v947_v29 = vsel %vm819_vm1, %v755_v36, %v883_v15  ;;  %v1028_v32 = vunpack.c.0.s8 %v5529_v48  ;;  %v1029_v50 = vunpack.c.0.s8 %v5556_v12 }
 0x153   : > { %v744_v37 = vadd.f32 %v5459_v53, %v600_v9  ;;  %v745_v19 = vadd.f32 %v5461_v54, %v600_v9  ;;  %1339 = vmax.xlane.f32.xlu2 %v1338_v8  ;;  %vm1160_vm5 = vcmp.ne.f32.partialorder %v5601_v49, 0.0  ;;  %vm1150_vm6 = vcmp.ne.f32.partialorder %v1086_v47, 0.0 }
 0x154   : > { %1333 = vmax.xlane.f32.xlu0 %v1332_v10  ;;  %vm1161_vm7 = vcmp.ne.f32.partialorder %v5632_v17, 0.0  ;;  %vm1151_vm8 = vcmp.ne.f32.partialorder %v1087_v22, 0.0  ;;  %v1039_v59 = vunpack.c.1.s8 %v5643_v43  ;;  %v5661_v45 = vcvt.s32.f32 %v1038_v5 }
 0x155   : > { %vm808_vm2 = vcmp.ge.f32.partialorder %v744_v37, 0.0  ;;  %vm809_vm4 = vcmp.ge.f32.partialorder %v745_v19, 0.0  ;;  %v872_v23 = vmul.f32 0.01, %v744_v37  ;;  %v873_v27 = vmul.f32 0.01, %v745_v19 }
 0x156   : > { %v888_v57 = vmul.f32 0.01, %v760_v20  ;;  %v5665_v58 = vsel %vm1154_vm13, %v946_v28, -1e+30  ;;  %v5669_v61 = vsel %vm1155_vm3, %v947_v29, -1e+30  ;;  %v5671_v3 = vcvt.s32.f32 %v1028_v32 }
 0x157   : > { %v936_v25 = vsel %vm808_vm2, %v744_v37, %v872_v23  ;;  %v937_v26 = vsel %vm809_vm4, %v745_v19, %v873_v27  ;;  %v889_v6 = vmul.f32 0.01, %v761_v44  ;;  %v1093_v10 = vcvt.s32.f32 %v1029_v50 }
 0x158   : > { %v5651_v51 = vsel %vm1144_vm11, %v936_v25, -1e+30  ;;  %v5655_v35 = vsel %vm1145_vm12, %v937_v26, -1e+30  ;;  %v766_v0 = vadd.f32 %v5459_v53, %v5614_v42  ;;  %vm824_vm9 = vcmp.ge.f32.partialorder %v760_v20, 0.0 }
 0x159   : > { %7587 = vst [vmem:[#allocation27_spill] sm:$0xff] %v5655_v35  ;;  %v670_v36 = vpop.permute.xlu2 %669  ;;  %v1347_v18 = vmax.f32 %v5651_v51, %v5655_v35  ;;  %vm825_vm10 = vcmp.ge.f32.partialorder %v761_v44, 0.0  ;;  %v1034_v11 = vunpack.c.3.s8 %v5529_v48  ;;  %vm1156_vm15 = vcmp.ne.f32.partialorder %v5671_v3, 0.0 }
 0x15a   : > { %v615_v60 = vpop.permute.xlu0 %614  ;;  %v1035_v19 = vunpack.c.3.s8 %v5556_v12  ;;  %v1044_v5 = vunpack.c.0.s8 %v5679_v63  ;;  %v953_v28 = vsel %vm825_vm10, %v761_v44, %v889_v6  ;;  %v894_v29 = vmul.f32 0.01, %v766_v0 }
 0x15b   : > { %v750_v8 = vadd.f32 %v5459_v53, %v615_v60  ;;  %v751_v9 = vadd.f32 %v5461_v54, %v615_v60  ;;  %1342 = vmax.xlane.f32.xlu2 %v1341_v46  ;;  %1348 = vmax.xlane.f32.xlu1 %v1347_v18  ;;  %v767_v46 = vadd.f32 %v5461_v54, %v5614_v42  ;;  %vm1157_vm0 = vcmp.ne.f32.partialorder %v1093_v10, 0.0 }
 0x15c   : > { %1345 = vmax.xlane.f32.xlu0 %v1344_v52  ;;  %v952_v52 = vsel %vm824_vm9, %v760_v20, %v888_v57  ;;  %v1362_v42 = vmax.f32 %v5665_v58, %v5669_v61  ;;  %v5702_v50 = vcvt.s32.f32 %v1034_v11  ;;  %vm830_vm13 = vcmp.ge.f32.partialorder %v766_v0, 0.0 }
 0x15d   : > { %vm814_vm11 = vcmp.ge.f32.partialorder %v750_v8, 0.0  ;;  %vm815_vm12 = vcmp.ge.f32.partialorder %v751_v9, 0.0  ;;  %v878_v15 = vmul.f32 0.01, %v750_v8  ;;  %v879_v37 = vmul.f32 0.01, %v751_v9 }
 0x15e   : > { %v895_v18 = vmul.f32 0.01, %v767_v46  ;;  %v5706_v47 = vsel %vm1160_vm5, %v952_v52, -1e+30  ;;  %v5710_v22 = vsel %vm1161_vm7, %v953_v28, -1e+30  ;;  %v5712_v44 = vcvt.s32.f32 %v1035_v19 }
 0x15f   : > { %v942_v23 = vsel %vm814_vm11, %v750_v8, %v878_v15  ;;  %v943_v27 = vsel %vm815_vm12, %v751_v9, %v879_v37  ;;  %7590 = vst [vmem:[#allocation30_spill] sm:$0xff] %v5706_v47  ;;  %vm831_vm3 = vcmp.ge.f32.partialorder %v767_v46, 0.0  ;;  %v1103_v8 = vcvt.s32.f32 %v1039_v59  ;;  %v5723_v15 = vld [vmem:[%s5258_s10 + $0x58] sm:$0xff] }
 0x160   : > { %v5693_v32 = vsel %vm1150_vm6, %v942_v23, -1e+30  ;;  %v5696_v25 = vsel %vm1151_vm8, %v943_v27, -1e+30  ;;  %7591 = vst [vmem:[#allocation31_spill] sm:$0xff] %v5710_v22  ;;  %v772_v9 = vadd.f32 %v5459_v53, %v670_v36  ;;  %v773_v49 = vadd.f32 %v5461_v54, %v670_v36 }
 0x161   : > { %7588 = vst [vmem:[#allocation28_spill] sm:$0xff] %v5693_v32  ;;  %v1356_v26 = vmax.f32 %v5693_v32, %v5696_v25  ;;  %v685_v57 = vpop.permute.xlu2 %684  ;;  %v958_v17 = vsel %vm830_vm13, %v766_v0, %v894_v29  ;;  %v1040_v11 = vunpack.c.2.s8 %v5612_v7  ;;  %vm1162_vm2 = vcmp.ne.f32.partialorder %v5702_v50, 0.0 }
 0x162   : > { %7589 = vst [vmem:[#allocation29_spill] sm:$0xff] %v5696_v25  ;;  %v630_v20 = vpop.permute.xlu0 %629  ;;  %vm1163_vm4 = vcmp.ne.f32.partialorder %v5712_v44, 0.0  ;;  %v959_v59 = vsel %vm831_vm3, %v767_v46, %v895_v18  ;;  %vm1166_vm5 = vcmp.ne.f32.partialorder %v5661_v45, 0.0  ;;  %v1041_v36 = vunpack.c.2.s8 %v5643_v43 }
 0x163   : > { %v756_v60 = vadd.f32 %v5459_v53, %v630_v20  ;;  %v757_v6 = vadd.f32 %v5461_v54, %v630_v20  ;;  %1357 = vmax.xlane.f32.xlu1 %v1356_v26  ;;  %vm1167_vm6 = vcmp.ne.f32.partialorder %v1103_v8, 0.0  ;;  %v1045_v0 = vunpack.c.0.s8 %v5723_v15 }
 0x164   : > { %1354 = vmax.xlane.f32.xlu0 %v1353_v38  ;;  %v900_v27 = vmul.f32 0.01, %v772_v9  ;;  %v1371_v46 = vmax.f32 %v5706_v47, %v5710_v22  ;;  %v901_v29 = vmul.f32 0.01, %v773_v49  ;;  %v5741_v26 = vsel %vm1166_vm5, %v958_v17, -1e+30 }
 0x165   : > { %vm820_vm14 = vcmp.ge.f32.partialorder %v756_v60, 0.0  ;;  %vm821_vm1 = vcmp.ge.f32.partialorder %v757_v6, 0.0  ;;  %v884_v37 = vmul.f32 0.01, %v756_v60  ;;  %v885_v19 = vmul.f32 0.01, %v757_v6 }
 0x166   : > { %v5743_v18 = vcvt.s32.f32 %v1040_v11  ;;  %v5747_v3 = vcvt.s32.f32 %v1041_v36  ;;  %vm836_vm7 = vcmp.ge.f32.partialorder %v772_v9, 0.0  ;;  %v1108_v10 = vcvt.s32.f32 %v1044_v5 }
 0x167   : > { %v948_v23 = vsel %vm820_vm14, %v756_v60, %v884_v37  ;;  %v949_v38 = vsel %vm821_vm1, %v757_v6, %v885_v19  ;;  %v5745_v60 = vsel %vm1167_vm6, %v959_v59, -1e+30  ;;  %vm837_vm8 = vcmp.ge.f32.partialorder %v773_v49, 0.0 }
 0x168   : > { %v5732_v52 = vsel %vm1156_vm15, %v948_v23, -1e+30  ;;  %v5735_v28 = vsel %vm1157_vm0, %v949_v38, -1e+30  ;;  %v1109_v37 = vcvt.s32.f32 %v1045_v0  ;;  %v778_v19 = vadd.f32 %v5459_v53, %v685_v57 }
 0x169   : > { %7592 = vst [vmem:[#allocation32_spill] sm:$0xff] %v5732_v52  ;;  %v1365_v45 = vmax.f32 %v5732_v52, %v5735_v28  ;;  %v5753_v17 = vadd.f32 %v5461_v54, %v685_v57  ;;  %v1046_v11 = vunpack.c.1.s8 %v5679_v63  ;;  %v1047_v59 = vunpack.c.1.s8 %v5723_v15  ;;  %v700_v36 = vpop.permute.xlu2 %699 }
 0x16a   : > { %7593 = vst [vmem:[#allocation33_spill] sm:$0xff] %v5735_v28  ;;  %v645_v20 = vpop.permute.xlu0 %644  ;;  %vm1168_vm11 = vcmp.ne.f32.partialorder %v5743_v18, 0.0  ;;  %v964_v38 = vsel %vm836_vm7, %v772_v9, %v900_v27  ;;  %v965_v0 = vsel %vm837_vm8, %v773_v49, %v901_v29  ;;  %vm1172_vm12 = vcmp.ne.f32.partialorder %v1108_v10, 0.0  ;;  %v5809_v28 = vld [vmem:[%s5258_s10 + $0x68] sm:$0xff] }
 0x16b   : > { %v762_v6 = vadd.f32 %v5459_v53, %v645_v20  ;;  %v763_v8 = vadd.f32 %v5461_v54, %v645_v20  ;;  %1366 = vmax.xlane.f32.xlu1 %v1365_v45  ;;  %v605_v45 = vpop.permute.xlu1 %604  ;;  %vm1173_vm15 = vcmp.ne.f32.partialorder %v1109_v37, 0.0  ;;  %v906_v31 = vmul.f32 0.01, %v778_v19 }
 0x16c   : > { %1363 = vmax.xlane.f32.xlu0 %v1362_v42  ;;  %v1050_v42 = vunpack.c.3.s8 %v5679_v63  ;;  %v1380_v9 = vmax.f32 %v5741_v26, %v5745_v60  ;;  %v907_v49 = vmul.f32 0.01, %v5753_v17  ;;  %v5773_v29 = vcvt.s32.f32 %v1046_v11 }
 0x16d   : > { %v890_v23 = vmul.f32 0.01, %v762_v6  ;;  %v891_v5 = vmul.f32 0.01, %v763_v8  ;;  %vm826_vm9 = vcmp.ge.f32.partialorder %v762_v6, 0.0  ;;  %vm827_vm10 = vcmp.ge.f32.partialorder %v763_v8, 0.0 }
 0x16e   : > { %vm1169_vm0 = vcmp.ne.f32.partialorder %v5747_v3, 0.0  ;;  %v5779_v44 = vsel %vm1172_vm12, %v964_v38, -1e+30  ;;  %vm842_vm13 = vcmp.ge.f32.partialorder %v778_v19, 0.0  ;;  %v1051_v11 = vunpack.c.3.s8 %v5723_v15 }
 0x16f   : > { %v954_v20 = vsel %vm826_vm9, %v762_v6, %v890_v23  ;;  %v955_v57 = vsel %vm827_vm10, %v763_v8, %v891_v5  ;;  %v5775_v6 = vcvt.s32.f32 %v1047_v59  ;;  %7596 = vst [vmem:[#allocation36_spill] sm:$0xff] %v5779_v44  ;;  %v5781_v8 = vsel %vm1173_vm15, %v965_v0, -1e+30  ;;  %v5799_v0 = vld [vmem:[%s5258_s10 + $0x60] sm:$0xff] }
 0x170   : > { %v5762_v41 = vsel %vm1162_vm2, %v954_v20, -1e+30  ;;  %v5766_v22 = vsel %vm1163_vm4, %v955_v57, -1e+30  ;;  %7597 = vst [vmem:[#allocation37_spill] sm:$0xff] %v5781_v8  ;;  %v1114_v5 = vcvt.s32.f32 %v1050_v42  ;;  %v5787_v59 = vadd.f32 %v5459_v53, %v700_v36 }
 0x171   : > { %7594 = vst [vmem:[#allocation34_spill] sm:$0xff] %v5762_v41  ;;  %v1374_v27 = vmax.f32 %v5762_v41, %v5766_v22  ;;  %v5790_v20 = vadd.f32 %v5461_v54, %v700_v36  ;;  %v5793_v10 = vadd.f32 %v5459_v53, %v605_v45  ;;  %v5796_v38 = vadd.f32 %v5461_v54, %v605_v45  ;;  %v715_v42 = vpop.permute.xlu2 %714 }
 0x172   : > { %7595 = vst [vmem:[#allocation35_spill] sm:$0xff] %v5766_v22  ;;  %v660_v50 = vpop.permute.xlu0 %659  ;;  %vm1174_vm1 = vcmp.ne.f32.partialorder %v5773_v29, 0.0  ;;  %vm1175_vm2 = vcmp.ne.f32.partialorder %v5775_v6, 0.0  ;;  %vm843_vm4 = vcmp.ge.f32.partialorder %v5753_v17, 0.0  ;;  %v970_v36 = vsel %vm842_vm13, %v778_v19, %v906_v31 }
 0x173   : > { %v768_v37 = vadd.f32 %v5459_v53, %v660_v50  ;;  %v769_v23 = vadd.f32 %v5461_v54, %v660_v50  ;;  %1375 = vmax.xlane.f32.xlu1 %v1374_v27  ;;  %v1052_v45 = vunpack.c.0.s8 %v5799_v0  ;;  %v1115_v41 = vcvt.s32.f32 %v1051_v11  ;;  %v620_v31 = vpop.permute.xlu1 %619 }
 0x174   : > { %1372 = vmax.xlane.f32.xlu0 %v1371_v46  ;;  %vm1178_vm5 = vcmp.ne.f32.partialorder %v1114_v5, 0.0  ;;  %v1053_v47 = vunpack.c.0.s8 %v5809_v28  ;;  %v1056_v19 = vunpack.c.2.s8 %v5799_v0  ;;  %v971_v18 = vsel %vm843_vm4, %v5753_v17, %v907_v49 }
 0x175   : > { %v896_v57 = vmul.f32 0.01, %v768_v37  ;;  %v897_v27 = vmul.f32 0.01, %v769_v23  ;;  %vm832_vm3 = vcmp.ge.f32.partialorder %v768_v37, 0.0  ;;  %vm833_vm14 = vcmp.ge.f32.partialorder %v769_v23, 0.0 }
 0x176   : > { %v5829_v3 = vadd.f32 %v5459_v53, %v715_v42  ;;  %v5831_v5 = vsel %vm1178_vm5, %v970_v36, -1e+30  ;;  %vm1179_vm6 = vcmp.ne.f32.partialorder %v1115_v41, 0.0  ;;  %v5842_v17 = vadd.f32 %v5461_v54, %v715_v42 }
 0x177   : > { %v960_v50 = vsel %vm832_vm3, %v768_v37, %v896_v57  ;;  %v961_v22 = vsel %vm833_vm14, %v769_v23, %v897_v27  ;;  %v912_v37 = vmul.f32 0.01, %v5787_v59  ;;  %v913_v23 = vmul.f32 0.01, %v5790_v20  ;;  %7600 = vst [vmem:[#allocation40_spill] sm:$0xff] %v5831_v5 }
 0x178   : > { %v5813_v52 = vsel %vm1168_vm11, %v960_v50, -1e+30  ;;  %v5817_v46 = vsel %vm1169_vm0, %v961_v22, -1e+30  ;;  %v5833_v57 = vcvt.s32.f32 %v1052_v45  ;;  %v5836_v27 = vadd.f32 %v5459_v53, %v620_v31 }
 0x179   : > { %7598 = vst [vmem:[#allocation38_spill] sm:$0xff] %v5813_v52  ;;  %v1383_v11 = vmax.f32 %v5813_v52, %v5817_v46  ;;  %v1117_v49 = vcvt.s32.f32 %v1053_v47  ;;  %vm848_vm7 = vcmp.ge.f32.partialorder %v5787_v59, 0.0  ;;  %v1120_v36 = vcvt.s32.f32 %v1056_v19 }
 0x17a   : > { %7599 = vst [vmem:[#allocation39_spill] sm:$0xff] %v5817_v46  ;;  %v675_v22 = vpop.permute.xlu0 %674  ;;  %v1057_v46 = vunpack.c.2.s8 %v5809_v28  ;;  %v5846_v32 = vmul.f32 0.01, %v5829_v3  ;;  %vm1180_vm10 = vcmp.ne.f32.partialorder %v5833_v57, 0.0  ;;  %v1058_v41 = vunpack.c.3.s8 %v5799_v0 }
 0x17b   : > { %v774_v50 = vadd.f32 %v5459_v53, %v675_v22  ;;  %v775_v25 = vadd.f32 %v5461_v54, %v675_v22  ;;  %1384 = vmax.xlane.f32.xlu1 %v1383_v11  ;;  %v5848_v22 = vsel %vm1179_vm6, %v971_v18, -1e+30  ;;  %vm849_vm11 = vcmp.ge.f32.partialorder %v5790_v20, 0.0 }
 0x17c   : > { %1381 = vmax.xlane.f32.xlu0 %v1380_v9  ;;  %7601 = vst [vmem:[#allocation41_spill] sm:$0xff] %v5848_v22  ;;  %v1121_v47 = vcvt.s32.f32 %v1057_v46  ;;  %v5854_v9 = vmul.f32 0.01, %v5842_v17  ;;  %v5865_v35 = vadd.f32 %v5461_v54, %v620_v31  ;;  %v976_v29 = vsel %vm848_vm7, %v5787_v59, %v912_v37  ;;  %v5884_v59 = vld [vmem:[%s5258_s10 + $0x70] sm:$0xff] }
 0x17d   : > { %v902_v45 = vmul.f32 0.01, %v774_v50  ;;  %v903_v52 = vmul.f32 0.01, %v775_v25  ;;  %vm838_vm8 = vcmp.ge.f32.partialorder %v774_v50, 0.0  ;;  %vm839_vm9 = vcmp.ge.f32.partialorder %v775_v25, 0.0 }
 0x17e   : > { %vm1184_vm12 = vcmp.ne.f32.partialorder %v1120_v36, 0.0  ;;  %vm1181_vm15 = vcmp.ne.f32.partialorder %v1117_v49, 0.0  ;;  %v977_v6 = vsel %vm849_vm11, %v5790_v20, %v913_v23  ;;  %v5876_v31 = vcvt.s32.f32 %v1058_v41 }
 0x17f   : > { %v966_v42 = vsel %vm838_vm8, %v774_v50, %v902_v45  ;;  %v967_v11 = vsel %vm839_vm9, %v775_v25, %v903_v52  ;;  %v1398_v52 = vmax.f32 %v5831_v5, %v5848_v22  ;;  %v1059_v50 = vunpack.c.3.s8 %v5809_v28  ;;  %v635_v45 = vpop.permute.xlu1 %634 }
 0x180   : > { %v5858_v19 = vsel %vm1174_vm1, %v966_v42, -1e+30  ;;  %v5862_v18 = vsel %vm1175_vm2, %v967_v11, -1e+30  ;;  %vm1185_vm0 = vcmp.ne.f32.partialorder %v1121_v47, 0.0  ;;  %v5881_v22 = vadd.f32 %v5459_v53, %v635_v45 }
 0x181   : > { %7602 = vst [vmem:[#allocation42_spill] sm:$0xff] %v5858_v19  ;;  %v1392_v25 = vmax.f32 %v5858_v19, %v5862_v18  ;;  %v7604_v37 = vmax.f32 %v5779_v44, %v5781_v8  ;;  %v5889_v20 = vsel %vm1184_vm12, %v976_v29, -1e+30  ;;  %v5892_v23 = vadd.f32 %v5461_v54, %v635_v45  ;;  %v5901_v8 = vld [vmem:[%s5258_s10 + $0x78] sm:$0xff]  ;;  %s4056_s10 = sshll.u32 %s5026_s26, 8  ;;  %s4123_s26 = sshll.u32 (!%p4122_p11), %s5030_s27, 8 }
 0x182   : > { %7603 = vst [vmem:[#allocation43_spill] sm:$0xff] %v5862_v18  ;;  %v690_v46 = vpop.permute.xlu0 %689  ;;  %vm854_vm13 = vcmp.ge.f32.partialorder %v5829_v3, 0.0  ;;  %v874_v36 = vmul.f32 0.01, %v5793_v10  ;;  %v1062_v5 = vunpack.c.1.s8 %v5884_v59  ;;  %vm810_vm1 = vcmp.ge.f32.partialorder %v5793_v10, 0.0  ;;  %s1261_s15 = sshra.s32 %s4056_s10, 3 }
 0x183   : > { %v780_v42 = vadd.f32 %v5459_v53, %v690_v46  ;;  %v781_v11 = vadd.f32 %v5461_v54, %v690_v46  ;;  %1393 = vmax.xlane.f32.xlu1 %v1392_v25  ;;  %7605 = vst [vmem:[#allocation44_spill] sm:$0xff] %v5889_v20  ;;  %v5896_v25 = vsel %vm1185_vm0, %v977_v6, -1e+30  ;;  %v1123_v46 = vcvt.s32.f32 %v1059_v50  ;;  %s4057_s12 = sshll.u32 %s1261_s15, 2 }
 0x184   : > { %1390 = vmax.xlane.f32.xlu0 %v7604_v37  ;;  %7606 = vst [vmem:[#allocation45_spill] sm:$0xff] %v5896_v25  ;;  %v875_v45 = vmul.f32 0.01, %v5796_v38  ;;  %v1018_v18 = vunpack.c.3.s8 %v5464_v55  ;;  %vm811_vm2 = vcmp.ge.f32.partialorder %v5796_v38, 0.0  ;;  %v1019_v50 = vunpack.c.3.s8 %v5467_v56  ;;  %s6325_s24 = scalar_lea.vmem [#allocation6], %s4057_s12 }
 0x185   : > { %v908_v41 = vmul.f32 0.01, %v780_v42  ;;  %v909_v47 = vmul.f32 0.01, %v781_v11  ;;  %vm844_vm3 = vcmp.ge.f32.partialorder %v780_v42, 0.0  ;;  %vm845_vm14 = vcmp.ge.f32.partialorder %v781_v11, 0.0 }
 0x186   : > { %v1082_v55 = vcvt.s32.f32 %v1018_v18  ;;  %vm1186_vm4 = vcmp.ne.f32.partialorder %v5876_v31, 0.0  ;;  %vm1187_vm5 = vcmp.ne.f32.partialorder %v1123_v46, 0.0  ;;  %v1063_v57 = vunpack.c.1.s8 %v5901_v8 }
 0x187   : > { %v972_v29 = vsel %vm844_vm3, %v780_v42, %v908_v41  ;;  %v973_v37 = vsel %vm845_vm14, %v781_v11, %v909_v47  ;;  %v1407_v11 = vmax.f32 %v5889_v20, %v5896_v25  ;;  %v938_v41 = vsel %vm810_vm1, %v5793_v10, %v874_v36 }
 0x188   : > { %v5907_v19 = vsel %vm1180_vm10, %v972_v29, -1e+30  ;;  %v5910_v6 = vsel %vm1181_vm15, %v973_v37, -1e+30  ;;  %v1083_v49 = vcvt.s32.f32 %v1019_v50  ;;  %v939_v37 = vsel %vm811_vm2, %v5796_v38, %v875_v45  ;;  %v650_v50 = vpop.permute.xlu1 %649 }
 0x189   : > { %7607 = vst [vmem:[#allocation46_spill] sm:$0xff] %v5907_v19  ;;  %v1401_v42 = vmax.f32 %v5907_v19, %v5910_v6  ;;  %vm1146_vm6 = vcmp.ne.f32.partialorder %v1082_v55, 0.0  ;;  %vm855_vm7 = vcmp.ge.f32.partialorder %v5842_v17, 0.0  ;;  %v1126_v10 = vcvt.s32.f32 %v1062_v5 }
 0x18a   : > { %7608 = vst [vmem:[#allocation47_spill] sm:$0xff] %v5910_v6  ;;  %v705_v47 = vpop.permute.xlu0 %704  ;;  %vm1147_vm8 = vcmp.ne.f32.partialorder %v1083_v49, 0.0  ;;  %v5925_v18 = vsel %vm1146_vm6, %v938_v41, -1e+30  ;;  %v886_v20 = vmul.f32 0.01, %v5881_v22  ;;  %v982_v38 = vsel %vm854_vm13, %v5829_v3, %v5846_v32 }
 0x18b   : > { %v786_v29 = vadd.f32 %v5459_v53, %v705_v47  ;;  %v787_v56 = vadd.f32 %v5461_v54, %v705_v47  ;;  %1402 = vmax.xlane.f32.xlu1 %v1401_v42  ;;  %v887_v47 = vmul.f32 0.01, %v5892_v23  ;;  %v1127_v42 = vcvt.s32.f32 %v1063_v57 }
 0x18c   : > { %1399 = vmax.xlane.f32.xlu0 %v1398_v52  ;;  %v5933_v52 = vsel %vm1147_vm8, %v939_v37, -1e+30  ;;  %v983_v32 = vsel %vm855_vm7, %v5842_v17, %v5854_v9  ;;  %v1024_v3 = vunpack.c.2.s8 %v5482_v16  ;;  %vm1190_vm11 = vcmp.ne.f32.partialorder %v1126_v10, 0.0 }
 0x18d   : > { %v914_v36 = vmul.f32 0.01, %v786_v29  ;;  %v915_v25 = vmul.f32 0.01, %v787_v56  ;;  %vm850_vm9 = vcmp.ge.f32.partialorder %v786_v29, 0.0  ;;  %vm851_vm10 = vcmp.ge.f32.partialorder %v787_v56, 0.0 }
 0x18e   : > { %v1350_v41 = vmax.f32 %v5925_v18, %v5933_v52  ;;  %vm816_vm12 = vcmp.ge.f32.partialorder %v5836_v27, 0.0  ;;  %vm817_vm15 = vcmp.ge.f32.partialorder %v5865_v35, 0.0  ;;  %v880_v31 = vmul.f32 0.01, %v5836_v27 }
 0x18f   : > { %v978_v5 = vsel %vm850_vm9, %v786_v29, %v914_v36  ;;  %v979_v45 = vsel %vm851_vm10, %v787_v56, %v915_v25  ;;  %v881_v46 = vmul.f32 0.01, %v5865_v35  ;;  %v1025_v57 = vunpack.c.2.s8 %v5488_v24 }
 0x190   : > { %v5939_v55 = vsel %vm1186_vm4, %v978_v5, -1e+30  ;;  %v5942_v49 = vsel %vm1187_vm5, %v979_v45, -1e+30  ;;  %1351 = vmax.xlane.f32.xlu2 %v1350_v41  ;;  %v1088_v29 = vcvt.s32.f32 %v1024_v3  ;;  %vm1191_vm0 = vcmp.ne.f32.partialorder %v1127_v42, 0.0 }
 0x191   : > { %7609 = vst [vmem:[#allocation48_spill] sm:$0xff] %v5939_v55  ;;  %v1410_v25 = vmax.f32 %v5939_v55, %v5942_v49  ;;  %vm822_vm13 = vcmp.ge.f32.partialorder %v5881_v22, 0.0  ;;  %v1030_v16 = vunpack.c.1.s8 %v5529_v48  ;;  %v1031_v17 = vunpack.c.1.s8 %v5556_v12  ;;  %v665_v12 = vpop.permute.xlu1 %664  ;;  %v6246_v55 = vld [vmem:[#allocation2 + $0x80] sm:$0xff] }
 0x192   : > { %7610 = vst [vmem:[#allocation49_spill] sm:$0xff] %v5942_v49  ;;  %v944_v9 = vsel %vm816_vm12, %v5836_v27, %v880_v31  ;;  %v945_v56 = vsel %vm817_vm15, %v5865_v35, %v881_v46  ;;  %v1089_v37 = vcvt.s32.f32 %v1025_v57  ;;  %vm1152_vm3 = vcmp.ne.f32.partialorder %v1088_v29, 0.0 }
 0x193   : > { %1411 = vmax.xlane.f32.xlu1 %v1410_v25  ;;  %v5961_v36 = vsel %vm1152_vm3, %v944_v9, -1e+30  ;;  %vm823_vm14 = vcmp.ge.f32.partialorder %v5892_v23, 0.0  ;;  %v1094_v24 = vcvt.s32.f32 %v1030_v16  ;;  %v1095_v5 = vcvt.s32.f32 %v1031_v17  ;;  %7656 = vst [vmem:[#allocation95_spill] sm:$0xff] %v6246_v55 }
 0x194   : > { %1408 = vmax.xlane.f32.xlu0 %v1407_v11  ;;  %vm1153_vm1 = vcmp.ne.f32.partialorder %v1089_v37, 0.0  ;;  %v5965_v45 = vsel %vm1190_vm11, %v982_v38, -1e+30  ;;  %v5967_v48 = vsel %vm1191_vm0, %v983_v32, -1e+30  ;;  %v950_v35 = vsel %vm822_vm13, %v5881_v22, %v886_v20 }
 0x195   : > { %7611 = vst [vmem:[#allocation50_spill] sm:$0xff] %v5965_v45  ;;  %v5969_v11 = vsel %vm1153_vm1, %v945_v56, -1e+30  ;;  %v951_v42 = vsel %vm823_vm14, %v5892_v23, %v887_v47  ;;  %vm1158_vm2 = vcmp.ne.f32.partialorder %v1094_v24, 0.0  ;;  %vm1159_vm4 = vcmp.ne.f32.partialorder %v1095_v5, 0.0 }
 0x196   : > { %7612 = vst [vmem:[#allocation51_spill] sm:$0xff] %v5967_v48  ;;  %v1359_v27 = vmax.f32 %v5961_v36, %v5969_v11  ;;  %v1416_v10 = vmax.f32 %v5965_v45, %v5967_v48  ;;  %v5979_v38 = vsel %vm1158_vm2, %v950_v35, -1e+30  ;;  %v5981_v41 = vsel %vm1159_vm4, %v951_v42, -1e+30 }
 0x197   : > { %v1368_v32 = vmax.f32 %v5979_v38, %v5981_v41  ;;  %v764_v22 = vadd.f32 %v5459_v53, %v650_v50  ;;  %v765_v20 = vadd.f32 %v5461_v54, %v650_v50  ;;  %v1036_v25 = vunpack.c.0.s8 %v5612_v7 }
 0x198   : > { %1360 = vmax.xlane.f32.xlu2 %v1359_v27  ;;  %v1037_v31 = vunpack.c.0.s8 %v5643_v43  ;;  %v770_v17 = vadd.f32 %v5459_v53, %v665_v12  ;;  %v771_v9 = vadd.f32 %v5461_v54, %v665_v12  ;;  %v564_v27 = vld [vmem:[%s5283_s17 + $0xf0] sm:$0xff]  ;;  %v1042_v42 = vunpack.c.3.s8 %v5612_v7 }
 0x199   : > { %v680_v3 = vpop.permute.xlu1 %679  ;;  %v892_v23 = vmul.f32 0.01, %v764_v22  ;;  %v893_v47 = vmul.f32 0.01, %v765_v20  ;;  %vm828_vm5 = vcmp.ge.f32.partialorder %v764_v22, 0.0  ;;  %vm829_vm6 = vcmp.ge.f32.partialorder %v765_v20, 0.0 }
 0x19a   : > { %v1100_v29 = vcvt.s32.f32 %v1036_v25  ;;  %v1101_v16 = vcvt.s32.f32 %v1037_v31  ;;  %v898_v5 = vmul.f32 0.01, %v770_v17  ;;  %v899_v35 = vmul.f32 0.01, %v771_v9 }
 0x19b   : > { %v956_v46 = vsel %vm828_vm5, %v764_v22, %v892_v23  ;;  %v957_v57 = vsel %vm829_vm6, %v765_v20, %v893_v47  ;;  %vm834_vm9 = vcmp.ge.f32.partialorder %v770_v17, 0.0  ;;  %vm835_vm10 = vcmp.ge.f32.partialorder %v771_v9, 0.0 }
 0x19c   : > { %1417 = vmax.xlane.f32.xlu0 %v1416_v10  ;;  %vm1164_vm7 = vcmp.ne.f32.partialorder %v1100_v29, 0.0  ;;  %vm1165_vm8 = vcmp.ne.f32.partialorder %v1101_v16, 0.0  ;;  %v1043_v12 = vunpack.c.3.s8 %v5643_v43  ;;  %v776_v10 = vadd.f32 %v5459_v53, %v680_v3 }
 0x19d   : > { %v5991_v50 = vsel %vm1164_vm7, %v956_v46, -1e+30  ;;  %v5993_v56 = vsel %vm1165_vm8, %v957_v57, -1e+30  ;;  %v962_v22 = vsel %vm834_vm9, %v770_v17, %v898_v5  ;;  %v963_v20 = vsel %vm835_vm10, %v771_v9, %v899_v35 }
 0x19e   : > { %v1377_v24 = vmax.f32 %v5991_v50, %v5993_v56  ;;  %v1106_v23 = vcvt.s32.f32 %v1042_v42  ;;  %v1107_v47 = vcvt.s32.f32 %v1043_v12  ;;  %v904_v46 = vmul.f32 0.01, %v776_v10 }
 0x19f   : > { %v1049_v29 = vunpack.c.2.s8 %v5723_v15  ;;  %vm840_vm15 = vcmp.ge.f32.partialorder %v776_v10, 0.0  ;;  %vm2097_vm14 = vcmask 7168  }
 0x1a0   : > { %1369 = vmax.xlane.f32.xlu2 %v1368_v32  ;;  %v777_v32 = vadd.f32 %v5461_v54, %v680_v3  ;;  %vm1170_vm11 = vcmp.ne.f32.partialorder %v1106_v23, 0.0  ;;  %vm1171_vm12 = vcmp.ne.f32.partialorder %v1107_v47, 0.0  ;;  %v1048_v3 = vunpack.c.2.s8 %v5679_v63 }
 0x1a1   : > { %v695_v37 = vpop.permute.xlu1 %694  ;;  %v6002_v25 = vsel %vm1170_vm11, %v962_v22, -1e+30  ;;  %v6004_v31 = vsel %vm1171_vm12, %v963_v20, -1e+30  ;;  %v968_v9 = vsel %vm840_vm15, %v776_v10, %v904_v46  ;;  %v1113_v35 = vcvt.s32.f32 %v1049_v29  ;;  %v6016_v22 = vld [vmem:[#allocation2] sm:$0xff] }
 0x1a2   : > { %v905_v57 = vmul.f32 0.01, %v777_v32  ;;  %v1386_v7 = vmax.f32 %v6002_v25, %v6004_v31  ;;  %v782_v16 = vadd.f32 %v5459_v53, %v695_v37  ;;  %v783_v17 = vadd.f32 %v5461_v54, %v695_v37  ;;  %v6020_v37 = vld [vmem:[#allocation2 + $0x10] sm:$0xff] }
 0x1a3   : > { %vm841_vm0 = vcmp.ge.f32.partialorder %v777_v32, 0.0  ;;  %v1112_v5 = vcvt.s32.f32 %v1048_v3  ;;  %vm1177_vm3 = vcmp.ne.f32.partialorder %v1113_v35, 0.0  ;;  %7615 = vst [vmem:[#allocation54_spill] sm:$0xff] %v6020_v37  ;;  %v1055_v20 = vunpack.c.1.s8 %v5809_v28 }
 0x1a4   : > { %v911_v63 = vmul.f32 0.01, %v783_v17  ;;  %vm846_vm1 = vcmp.ge.f32.partialorder %v782_v16, 0.0  ;;  %vm847_vm2 = vcmp.ge.f32.partialorder %v783_v17, 0.0 }
 0x1a5   : > { %vm1176_vm13 = vcmp.ne.f32.partialorder %v1112_v5, 0.0  ;;  %v6043_v5 = vld [vmem:[#allocation2 + $0x18] sm:$0xff] }
 0x1a6   : > { %v6012_v42 = vsel %vm1176_vm13, %v968_v9, -1e+30  ;;  %v975_v3 = vsel %vm847_vm2, %v783_v17, %v911_v63  ;;  %v1119_v9 = vcvt.s32.f32 %v1055_v20  ;;  %v1061_v20 = vunpack.c.0.s8 %v5901_v8 }
 0x1a7   : > { %7613 = vst [vmem:[#allocation52_spill] sm:$0xff] %v6012_v42 }
 0x1a8   : > { %1378 = vmax.xlane.f32.xlu2 %v1377_v24  ;;  %v969_v24 = vsel %vm841_vm0, %v777_v32, %v905_v57  ;;  %v1054_v32 = vunpack.c.1.s8 %v5799_v0  ;;  %vm1183_vm5 = vcmp.ne.f32.partialorder %v1119_v9, 0.0 }
 0x1a9   : > { %v710_v43 = vpop.permute.xlu1 %709  ;;  %v6014_v12 = vsel %vm1177_vm3, %v969_v24, -1e+30 }
 0x1aa   : > { %7614 = vst [vmem:[#allocation53_spill] sm:$0xff] %v6014_v12  ;;  %v1395_v15 = vmax.f32 %v6012_v42, %v6014_v12  ;;  %v788_v23 = vadd.f32 %v5459_v53, %v710_v43  ;;  %v1118_v29 = vcvt.s32.f32 %v1054_v32  ;;  %v789_v24 = vadd.f32 %v5461_v54, %v710_v43  ;;  %v6255_v12 = vld [vmem:[#allocation2 + $0x98] sm:$0xff] }
 0x1ab   : > { %7658 = vst [vmem:[#allocation97_spill] sm:$0xff] %v6255_v12 }
 0x1ac   : > { %vm1182_vm4 = vcmp.ne.f32.partialorder %v1118_v29, 0.0  ;;  %v916_v17 = vmul.f32 0.01, %v788_v23  ;;  %v917_v35 = vmul.f32 0.01, %v789_v24  ;;  %vm852_vm6 = vcmp.ge.f32.partialorder %v788_v23, 0.0 }
 0x1ad   : > { %vm853_vm7 = vcmp.ge.f32.partialorder %v789_v24, 0.0 }
 0x1ae   : > { %v981_v9 = vsel %vm853_vm7, %v789_v24, %v917_v35 }
 0x1b0   : > { %719 = vperm.xlu0 %4380, %v564_v27   ;;  %1387 = vmax.xlane.f32.xlu2 %v1386_v7  ;;  %v910_v27 = vmul.f32 0.01, %v782_v16 }
 0x1b2   : > { %v974_v57 = vsel %vm846_vm1, %v782_v16, %v910_v27  ;;  %v6041_v16 = vsel %vm1183_vm5, %v975_v3, -1e+30  ;;  %v6047_v27 = vld [vmem:[#allocation2 + $0x8] sm:$0xff] }
 0x1b3   : > { %v6039_v28 = vsel %vm1182_vm4, %v974_v57, -1e+30  ;;  %7617 = vst [vmem:[#allocation56_spill] sm:$0xff] %v6041_v16  ;;  %v980_v57 = vsel %vm852_vm6, %v788_v23, %v916_v17  ;;  %v6068_v23 = vld [vmem:[#allocation2 + $0x30] sm:$0xff] }
 0x1b4   : > { %7616 = vst [vmem:[#allocation55_spill] sm:$0xff] %v6039_v28  ;;  %v1404_v43 = vmax.f32 %v6039_v28, %v6041_v16 }
 0x1b5   : > { %7618 = vst [vmem:[#allocation57_spill] sm:$0xff] %v6047_v27 }
 0x1b6   : > { %7622 = vst [vmem:[#allocation61_spill] sm:$0xff] %v6068_v23 }
 0x1b8   : > { %1396 = vmax.xlane.f32.xlu2 %v1395_v15  ;;  %v1060_v15 = vunpack.c.0.s8 %v5884_v59 }
 0x1ba   : > { %v1124_v3 = vcvt.s32.f32 %v1060_v15  ;;  %v6072_v15 = vld [vmem:[#allocation2 + $0x28] sm:$0xff] }
 0x1bb   : > { %7624 = vst [vmem:[#allocation63_spill] sm:$0xff] %v6072_v15 }
 0x1bc   : > { %vm1188_vm8 = vcmp.ne.f32.partialorder %v1124_v3, 0.0 }
 0x1be   : > { %v1331_v10 = vpop.xlane.xlu2 %1330 }
 0x1bf   : > { %v6026_v47 = vmax.f32 %v6016_v22, %v1331_v10  ;;  %v1337_v46 = vpop.xlane.xlu1 %1336 }
 0x1c0   : > { %v6029_v7 = vmax.f32 %v6020_v37, %v1337_v46  ;;  %1405 = vmax.xlane.f32.xlu2 %v1404_v43  ;;  %v1125_v43 = vcvt.s32.f32 %v1061_v20 }
 0x1c1   : > { %2724 = vst.msk [vmem:[#allocation2] sm:$0xff] %vm2097_vm14, %v6026_v47  ;;  %1555 = vperm.xlu0 %4380, %v6026_v47  }
 0x1c2   : > { %2726 = vst.msk [vmem:[#allocation2 + $0x10] sm:$0xff] %vm2097_vm14, %v6029_v7  ;;  %vm1189_vm9 = vcmp.ne.f32.partialorder %v1125_v43, 0.0 }
 0x1c3   : > { %v6070_v17 = vsel %vm1189_vm9, %v981_v9, -1e+30 }
 0x1c4   : > { %7623 = vst [vmem:[#allocation62_spill] sm:$0xff] %v6070_v17 }
 0x1c6   : > { %v1340_v63 = vpop.xlane.xlu2 %1339 }
 0x1c7   : > { %v6051_v10 = vmax.f32 %v6043_v5, %v1340_v63  ;;  %v1334_v32 = vpop.xlane.xlu0 %1333  ;;  %v6064_v63 = vsel %vm1188_vm8, %v980_v57, -1e+30 }
 0x1c8   : > { %v6055_v46 = vmax.f32 %v6047_v27, %v1334_v32  ;;  %7620 = vst [vmem:[#allocation59_spill] sm:$0xff] %v6064_v63  ;;  %v6066_v32 = vld [vmem:[#allocation2 + $0x20] sm:$0xff]  ;;  %v1413_v29 = vmax.f32 %v6064_v63, %v6070_v17 }
 0x1c9   : > { %2727 = vst.msk [vmem:[#allocation2 + $0x18] sm:$0xff] %vm2097_vm14, %v6051_v10  ;;  %1570 = vperm.xlu0 %4380, %v6051_v10  }
 0x1ca   : > { %7619 = vst [vmem:[#allocation58_spill] sm:$0xff] %v6055_v46  ;;  %1414 = vmax.xlane.f32.xlu2 %v1413_v29  ;;  %v6096_v29 = vld [vmem:[#allocation2 + $0x40] sm:$0xff] }
 0x1cb   : > { %2725 = vst.msk [vmem:[#allocation2 + $0x8] sm:$0xff] %vm2097_vm14, %v6055_v46 }
 0x1cc   : > { %7621 = vst [vmem:[#allocation60_spill] sm:$0xff] %v6066_v32 }
 0x1cd   : > { %7628 = vst [vmem:[#allocation67_spill] sm:$0xff] %v6096_v29 }
 0x1ce   : > { %v1343_v24 = vpop.xlane.xlu2 %1342  ;;  %v1349_v35 = vpop.xlane.xlu1 %1348 }
 0x1cf   : > { %v6077_v20 = vmax.f32 %v6066_v32, %v1343_v24  ;;  %v6080_v3 = vmax.f32 %v6068_v23, %v1349_v35  ;;  %v1346_v57 = vpop.xlane.xlu0 %1345  ;;  %v6094_v24 = vld [vmem:[#allocation2 + $0x48] sm:$0xff] }
 0x1d0   : > { %v6083_v43 = vmax.f32 %v6072_v15, %v1346_v57  ;;  %7627 = vst [vmem:[#allocation66_spill] sm:$0xff] %v6094_v24  ;;  %v6113_v15 = vld [vmem:[#allocation2 + $0x58] sm:$0xff] }
 0x1d1   : > { %7625 = vst [vmem:[#allocation64_spill] sm:$0xff] %v6077_v20 }
 0x1d2   : > { %7626 = vst [vmem:[#allocation65_spill] sm:$0xff] %v6083_v43  ;;  %1580 = vperm.xlu0 %4380, %v6083_v43  }
 0x1d3   : > { %2728 = vst.msk [vmem:[#allocation2 + $0x20] sm:$0xff] %vm2097_vm14, %v6077_v20 }
 0x1d4   : > { %2730 = vst.msk [vmem:[#allocation2 + $0x30] sm:$0xff] %vm2097_vm14, %v6080_v3 }
 0x1d5   : > { %2729 = vst.msk [vmem:[#allocation2 + $0x28] sm:$0xff] %vm2097_vm14, %v6083_v43  ;;  %v6111_v43 = vld [vmem:[#allocation2 + $0x60] sm:$0xff] }
 0x1d6   : > { %v1358_v35 = vpop.xlane.xlu1 %1357  ;;  %7630 = vst [vmem:[#allocation69_spill] sm:$0xff] %v6111_v43 }
 0x1d7   : > { %v6099_v57 = vmax.f32 %v6094_v24, %v1358_v35  ;;  %v1355_v0 = vpop.xlane.xlu0 %1354  ;;  %7631 = vst [vmem:[#allocation70_spill] sm:$0xff] %v6113_v15 }
 0x1d8   : > { %v6102_v37 = vmax.f32 %v6096_v29, %v1355_v0  ;;  %v6130_v29 = vld [vmem:[#allocation2 + $0x70] sm:$0xff] }
 0x1d9   : > { %2733 = vst.msk [vmem:[#allocation2 + $0x48] sm:$0xff] %vm2097_vm14, %v6099_v57 }
 0x1da   : > { %7629 = vst [vmem:[#allocation68_spill] sm:$0xff] %v6102_v37  ;;  %1595 = vperm.xlu0 %4380, %v6102_v37  }
 0x1db   : > { %2732 = vst.msk [vmem:[#allocation2 + $0x40] sm:$0xff] %vm2097_vm14, %v6102_v37  ;;  %v6128_v37 = vld [vmem:[#allocation2 + $0x78] sm:$0xff] }
 0x1dc   : > { %7633 = vst [vmem:[#allocation72_spill] sm:$0xff] %v6128_v37 }
 0x1dd   : > { %7634 = vst [vmem:[#allocation73_spill] sm:$0xff] %v6130_v29 }
 0x1de   : > { %v1367_v35 = vpop.xlane.xlu1 %1366 }
 0x1df   : > { %v6116_v32 = vmax.f32 %v6111_v43, %v1367_v35  ;;  %v1364_v0 = vpop.xlane.xlu0 %1363 }
 0x1e0   : > { %v6119_v24 = vmax.f32 %v6113_v15, %v1364_v0  ;;  %v6147_v15 = vld [vmem:[#allocation2 + $0x88] sm:$0xff] }
 0x1e1   : > { %2736 = vst.msk [vmem:[#allocation2 + $0x60] sm:$0xff] %vm2097_vm14, %v6116_v32 }
 0x1e2   : > { %7632 = vst [vmem:[#allocation71_spill] sm:$0xff] %v6119_v24  ;;  %1610 = vperm.xlu0 %4380, %v6119_v24  }
 0x1e3   : > { %2735 = vst.msk [vmem:[#allocation2 + $0x58] sm:$0xff] %vm2097_vm14, %v6119_v24  ;;  %v6145_v24 = vld [vmem:[#allocation2 + $0x90] sm:$0xff] }
 0x1e4   : > { %7636 = vst [vmem:[#allocation75_spill] sm:$0xff] %v6145_v24 }
 0x1e5   : > { %7637 = vst [vmem:[#allocation76_spill] sm:$0xff] %v6147_v15 }
 0x1e6   : > { %v1376_v35 = vpop.xlane.xlu1 %1375 }
 0x1e7   : > { %v6133_v43 = vmax.f32 %v6128_v37, %v1376_v35  ;;  %v1373_v0 = vpop.xlane.xlu0 %1372 }
 0x1e8   : > { %v6136_v23 = vmax.f32 %v6130_v29, %v1373_v0  ;;  %v6164_v29 = vld [vmem:[#allocation2 + $0xa0] sm:$0xff] }
 0x1e9   : > { %2739 = vst.msk [vmem:[#allocation2 + $0x78] sm:$0xff] %vm2097_vm14, %v6133_v43 }
 0x1ea   : > { %7635 = vst [vmem:[#allocation74_spill] sm:$0xff] %v6136_v23  ;;  %1625 = vperm.xlu0 %4380, %v6136_v23  }
 0x1eb   : > { %2738 = vst.msk [vmem:[#allocation2 + $0x70] sm:$0xff] %vm2097_vm14, %v6136_v23  ;;  %v6162_v23 = vld [vmem:[#allocation2 + $0xa8] sm:$0xff] }
 0x1ec   : > { %7639 = vst [vmem:[#allocation78_spill] sm:$0xff] %v6162_v23 }
 0x1ed   : > { %7640 = vst [vmem:[#allocation79_spill] sm:$0xff] %v6164_v29 }
 0x1ee   : > { %v1385_v35 = vpop.xlane.xlu1 %1384 }
 0x1ef   : > { %v6150_v37 = vmax.f32 %v6145_v24, %v1385_v35  ;;  %v1382_v0 = vpop.xlane.xlu0 %1381 }
 0x1f0   : > { %v6153_v27 = vmax.f32 %v6147_v15, %v1382_v0  ;;  %v6181_v15 = vld [vmem:[#allocation2 + $0xb8] sm:$0xff] }
 0x1f1   : > { %2742 = vst.msk [vmem:[#allocation2 + $0x90] sm:$0xff] %vm2097_vm14, %v6150_v37 }
 0x1f2   : > { %7638 = vst [vmem:[#allocation77_spill] sm:$0xff] %v6153_v27  ;;  %1640 = vperm.xlu0 %4380, %v6153_v27  }
 0x1f3   : > { %2741 = vst.msk [vmem:[#allocation2 + $0x88] sm:$0xff] %vm2097_vm14, %v6153_v27  ;;  %v6179_v27 = vld [vmem:[#allocation2 + $0xc0] sm:$0xff] }
 0x1f4   : > { %7642 = vst [vmem:[#allocation81_spill] sm:$0xff] %v6179_v27 }
 0x1f5   : > { %7643 = vst [vmem:[#allocation82_spill] sm:$0xff] %v6181_v15 }
 0x1f6   : > { %v1394_v35 = vpop.xlane.xlu1 %1393 }
 0x1f7   : > { %v6167_v24 = vmax.f32 %v6162_v23, %v1394_v35  ;;  %v1391_v0 = vpop.xlane.xlu0 %1390 }
 0x1f8   : > { %v6170_v48 = vmax.f32 %v6164_v29, %v1391_v0  ;;  %v6198_v29 = vld [vmem:[#allocation2 + $0xd8] sm:$0xff] }
 0x1f9   : > { %2745 = vst.msk [vmem:[#allocation2 + $0xa8] sm:$0xff] %vm2097_vm14, %v6167_v24 }
 0x1fa   : > { %7641 = vst [vmem:[#allocation80_spill] sm:$0xff] %v6170_v48  ;;  %1655 = vperm.xlu0 %4380, %v6170_v48  }
 0x1fb   : > { %2744 = vst.msk [vmem:[#allocation2 + $0xa0] sm:$0xff] %vm2097_vm14, %v6170_v48  ;;  %v6196_v48 = vld [vmem:[#allocation2 + $0x38] sm:$0xff] }
 0x1fc   : > { %7645 = vst [vmem:[#allocation84_spill] sm:$0xff] %v6196_v48 }
 0x1fd   : > { %7646 = vst [vmem:[#allocation85_spill] sm:$0xff] %v6198_v29 }
 0x1fe   : > { %v1403_v35 = vpop.xlane.xlu1 %1402 }
 0x1ff   : > { %v6184_v23 = vmax.f32 %v6179_v27, %v1403_v35  ;;  %v1400_v0 = vpop.xlane.xlu0 %1399  ;;  %v6200_v27 = vld [vmem:[#allocation2 + $0xd0] sm:$0xff] }
 0x200   : > { %v6187_v45 = vmax.f32 %v6181_v15, %v1400_v0  ;;  %7647 = vst [vmem:[#allocation86_spill] sm:$0xff] %v6200_v27 }
 0x201   : > { %2748 = vst.msk [vmem:[#allocation2 + $0xc0] sm:$0xff] %vm2097_vm14, %v6184_v23 }
 0x202   : > { %7644 = vst [vmem:[#allocation83_spill] sm:$0xff] %v6187_v45  ;;  %1670 = vperm.xlu0 %4380, %v6187_v45  }
 0x203   : > { %2747 = vst.msk [vmem:[#allocation2 + $0xb8] sm:$0xff] %vm2097_vm14, %v6187_v45  ;;  %v1352_v35 = vpop.xlane.xlu2 %1351 }
 0x204   : > { %v6203_v0 = vmax.f32 %v6196_v48, %v1352_v35  ;;  %v6222_v35 = vld [vmem:[#allocation2 + $0xe8] sm:$0xff] }
 0x205   : > { %7651 = vst [vmem:[#allocation90_spill] sm:$0xff] %v6222_v35 }
 0x206   : > { %7648 = vst [vmem:[#allocation87_spill] sm:$0xff] %v6203_v0  ;;  %v1412_v17 = vpop.xlane.xlu1 %1411 }
 0x207   : > { %v6206_v63 = vmax.f32 %v6198_v29, %v1412_v17  ;;  %v1409_v9 = vpop.xlane.xlu0 %1408  ;;  %2731 = vst.msk [vmem:[#allocation2 + $0x38] sm:$0xff] %vm2097_vm14, %v6203_v0  ;;  %v6220_v17 = vld [vmem:[#allocation2 + $0x50] sm:$0xff] }
 0x208   : > { %v6211_v45 = vmax.f32 %v6200_v27, %v1409_v9  ;;  %7650 = vst [vmem:[#allocation89_spill] sm:$0xff] %v6220_v17 }
 0x209   : > { %2751 = vst.msk [vmem:[#allocation2 + $0xd8] sm:$0xff] %vm2097_vm14, %v6206_v63 }
 0x20a   : > { %7649 = vst [vmem:[#allocation88_spill] sm:$0xff] %v6211_v45  ;;  %1685 = vperm.xlu0 %4380, %v6211_v45  }
 0x20b   : > { %2750 = vst.msk [vmem:[#allocation2 + $0xd0] sm:$0xff] %vm2097_vm14, %v6211_v45  ;;  %v1361_v29 = vpop.xlane.xlu2 %1360  ;;  %v6237_v45 = vld [vmem:[#allocation2 + $0x68] sm:$0xff] }
 0x20c   : > { %v6225_v48 = vmax.f32 %v6220_v17, %v1361_v29  ;;  %7654 = vst [vmem:[#allocation93_spill] sm:$0xff] %v6237_v45  ;;  %v1065_v17 = vunpack.c.2.s8 %v5901_v8 }
 0x20e   : > { %7652 = vst [vmem:[#allocation91_spill] sm:$0xff] %v6225_v48 }
 0x20f   : > { %v1418_v9 = vpop.xlane.xlu0 %1417  ;;  %2734 = vst.msk [vmem:[#allocation2 + $0x50] sm:$0xff] %vm2097_vm14, %v6225_v48 }
 0x210   : > { %v6228_v49 = vmax.f32 %v6222_v35, %v1418_v9  ;;  %v1064_v9 = vunpack.c.2.s8 %v5884_v59  ;;  %v1129_v35 = vcvt.s32.f32 %v1065_v17 }
 0x212   : > { %7653 = vst [vmem:[#allocation92_spill] sm:$0xff] %v6228_v49  ;;  %1700 = vperm.xlu0 %4380, %v6228_v49   ;;  %v1128_v15 = vcvt.s32.f32 %v1064_v9  ;;  %vm1193_vm11 = vcmp.ne.f32.partialorder %v1129_v35, 0.0 }
 0x213   : > { %2753 = vst.msk [vmem:[#allocation2 + $0xe8] sm:$0xff] %vm2097_vm14, %v6228_v49  ;;  %v1370_v27 = vpop.xlane.xlu2 %1369 }
 0x214   : > { %v6240_v29 = vmax.f32 %v6237_v45, %v1370_v27  ;;  %vm1192_vm10 = vcmp.ne.f32.partialorder %v1128_v15, 0.0  ;;  %v6268_v15 = vld [vmem:[#allocation2 + $0xb0] sm:$0xff] }
 0x215   : > { %7662 = vst [vmem:[#allocation101_spill] sm:$0xff] %v6268_v15 }
 0x216   : > { %7655 = vst [vmem:[#allocation94_spill] sm:$0xff] %v6240_v29 }
 0x217   : > { %2737 = vst.msk [vmem:[#allocation2 + $0x68] sm:$0xff] %vm2097_vm14, %v6240_v29 }
 0x21b   : > { %v1379_v16 = vpop.xlane.xlu2 %1378 }
 0x21c   : > { %v6249_v49 = vmax.f32 %v6246_v55, %v1379_v16 }
 0x21e   : > { %7657 = vst [vmem:[#allocation96_spill] sm:$0xff] %v6249_v49 }
 0x21f   : > { %2740 = vst.msk [vmem:[#allocation2 + $0x80] sm:$0xff] %vm2097_vm14, %v6249_v49 }
 0x222   : > { %v720_v28 = vpop.permute.xlu0 %719 }
 0x223   : > { %v792_v6 = vadd.f32 %v5459_v53, %v720_v28  ;;  %v793_v27 = vadd.f32 %v5461_v54, %v720_v28  ;;  %v1388_v42 = vpop.xlane.xlu2 %1387 }
 0x224   : > { %v6264_v44 = vmax.f32 %v6255_v12, %v1388_v42 }
 0x225   : > { %v920_v45 = vmul.f32 0.01, %v792_v6  ;;  %v921_v19 = vmul.f32 0.01, %v793_v27  ;;  %vm856_vm12 = vcmp.ge.f32.partialorder %v792_v6, 0.0  ;;  %vm857_vm15 = vcmp.ge.f32.partialorder %v793_v27, 0.0 }
 0x226   : > { %7661 = vst [vmem:[#allocation100_spill] sm:$0xff] %v6264_v44 }
 0x227   : > { %v984_v9 = vsel %vm856_vm12, %v792_v6, %v920_v45  ;;  %v985_v17 = vsel %vm857_vm15, %v793_v27, %v921_v19  ;;  %2743 = vst.msk [vmem:[#allocation2 + $0x98] sm:$0xff] %vm2097_vm14, %v6264_v44 }
 0x228   : > { %v6257_v16 = vsel %vm1192_vm10, %v984_v9, -1e+30  ;;  %v6259_v55 = vsel %vm1193_vm11, %v985_v17, -1e+30  ;;  %v6277_v17 = vld [vmem:[#allocation2 + $0xc8] sm:$0xff] }
 0x229   : > { %7659 = vst [vmem:[#allocation98_spill] sm:$0xff] %v6257_v16  ;;  %v1419_v28 = vmax.f32 %v6257_v16, %v6259_v55 }
 0x22a   : > { %7660 = vst [vmem:[#allocation99_spill] sm:$0xff] %v6259_v55 }
 0x22b   : > { %1420 = vmax.xlane.f32.xlu1 %v1419_v28  ;;  %v1397_v19 = vpop.xlane.xlu2 %1396  ;;  %7664 = vst [vmem:[#allocation103_spill] sm:$0xff] %v6277_v17 }
 0x22c   : > { %v6271_v6 = vmax.f32 %v6268_v15, %v1397_v19 }
 0x22e   : > { %7663 = vst [vmem:[#allocation102_spill] sm:$0xff] %v6271_v6 }
 0x22f   : > { %2746 = vst.msk [vmem:[#allocation2 + $0xb0] sm:$0xff] %vm2097_vm14, %v6271_v6 }
 0x233   : > { %v1556_v45 = vpop.permute.xlu0 %1555  ;;  %v1406_v28 = vpop.xlane.xlu2 %1405 }
 0x234   : > { %v1713_v35 = vsub.f32 %v5560_v13, %v1556_v45  ;;  %v1714_v27 = vsub.f32 %v5564_v14, %v1556_v45  ;;  %v6280_v12 = vmax.f32 %v6277_v17, %v1406_v28  ;;  %v565_v28 = vld [vmem:[%s5283_s17 + $0xf8] sm:$0xff]  ;;  %v4140_v17 = vld [vmem:[%s6325_s24 + $0x30] sm:$0xff] }
 0x236   : > { %v1777_v42 = vmul.f32 1.442695, %v1713_v35  ;;  %v1779_v9 = vmul.f32 1.442695, %v1714_v27  ;;  %7665 = vst [vmem:[#allocation104_spill] sm:$0xff] %v6280_v12 }
 0x237   : > { %2749 = vst.msk [vmem:[#allocation2 + $0xc8] sm:$0xff] %vm2097_vm14, %v6280_v12 }
 0x238   : > { %4383 = vpow2.f32 %v1777_v42 }
 0x239   : > { %4385 = vpow2.f32 %v1779_v9  ;;  %v6292_v9 = vld [vmem:[#allocation2 + $0xe0] sm:$0xff] }
 0x23a   : > { %7666 = vst [vmem:[#allocation105_spill] sm:$0xff] %v6292_v9 }
 0x23b   : > { %v1571_v19 = vpop.permute.xlu0 %1570 }
 0x23c   : > { %v1719_v15 = vsub.f32 %v5605_v62, %v1571_v19  ;;  %v1720_v13 = vsub.f32 %v5609_v2, %v1571_v19 }
 0x23d   : > { %v1415_v62 = vpop.xlane.xlu2 %1414 }
 0x23e   : > { %v6286_v14 = vpop.eup %4383  ;;  %v1789_v45 = vmul.f32 1.442695, %v1719_v15  ;;  %v1791_v35 = vmul.f32 1.442695, %v1720_v13  ;;  %v6296_v2 = vmax.f32 %v6292_v9, %v1415_v62  ;;  %v4149_v9 = vld [vmem:[%s6325_s24 + $0x78] sm:$0xff] }
 0x23f   : > { %v6288_v27 = vpop.eup %4385  ;;  %2571 = vmatpush.bf16.msra.mxu1 %v4149_v9  ;;  %4255 = vmatpush.bf16.msra.mxu3 %v4149_v9 }
 0x240   : > { %4387 = vpow2.f32 %v1789_v45  ;;  %v1969_v42 = vadd.f32 %v6288_v27, %v6286_v14  ;;  %7667 = vst [vmem:[#allocation106_spill] sm:$0xff] %v6296_v2 }
 0x241   : > { %4389 = vpow2.f32 %v1791_v35  ;;  %2752 = vst.msk [vmem:[#allocation2 + $0xe0] sm:$0xff] %vm2097_vm14, %v6296_v2 }
 0x242   : > { %1970 = vadd.xlane.f32.xlu0 %v1969_v42 }
 0x244   : > { %724 = vperm.xlu1 %4381, %v565_v28   ;;  %v6309_v45 = vpop.permute.xlu0 %1580 }
 0x246   : > { %v6300_v15 = vpop.eup %4387 }
 0x247   : > { %v6302_v19 = vpop.eup %4389 }
 0x248   : > { %v1978_v13 = vadd.f32 %v6302_v19, %v6300_v15 }
 0x24a   : > { %1979 = vadd.xlane.f32.xlu0 %v1978_v13  ;;  %v4141_v13 = vld [vmem:[%s6325_s24 + $0x38] sm:$0xff] }
 0x24b   : > { %2482 = vmatpush.bf16.msra.mxu0 %v4141_v13  ;;  %4247 = vmatpush.bf16.msra.mxu2 %v4141_v13  ;;  %v4138_v13 = vld [vmem:[%s6325_s24 + $0x20] sm:$0xff] }
 0x24c   : > { %1560 = vperm.xlu1 %4381, %v6055_v46   ;;  %v6312_v35 = vpop.permute.xlu0 %1595 }
 0x24f   : > { %2483 = vmatpush.bf16.msra.mxu0 %v4140_v17  ;;  %4248 = vmatpush.bf16.msra.mxu2 %v4140_v17 }
 0x254   : > { %1575 = vperm.xlu1 %4381, %v6077_v20   ;;  %v6315_v42 = vpop.permute.xlu0 %1610  ;;  %v4144_v20 = vld [vmem:[%s6325_s24 + $0x50] sm:$0xff] }
 0x25c   : > { %1590 = vperm.xlu1 %4381, %v6203_v0   ;;  %v6319_v28 = vpop.permute.xlu0 %1625  ;;  %v4137_v0 = vld [vmem:[%s6325_s24 + $0x18] sm:$0xff] }
 0x264   : > { %1605 = vperm.xlu1 %4381, %v6225_v48   ;;  %v6323_v62 = vpop.permute.xlu0 %1640  ;;  %v4146_v48 = vld [vmem:[%s6325_s24 + $0x60] sm:$0xff] }
 0x26c   : > { %1620 = vperm.xlu1 %4381, %v6240_v29   ;;  %v6334_v29 = vpop.permute.xlu0 %1655 }
 0x274   : > { %1635 = vperm.xlu1 %4381, %v6249_v49   ;;  %v4147_v49 = vld [vmem:[%s6325_s24 + $0x68] sm:$0xff]  ;;  %v6337_v9 = vpop.permute.xlu0 %1670 }
 0x27c   : > { %1650 = vperm.xlu1 %4381, %v6264_v44   ;;  %v4148_v44 = vld [vmem:[%s6325_s24 + $0x70] sm:$0xff]  ;;  %v6350_v17 = vpop.permute.xlu0 %1685 }
 0x27d   : > { %2572 = vmatpush.bf16.msra.mxu1 %v4148_v44  ;;  %4256 = vmatpush.bf16.msra.mxu3 %v4148_v44  ;;  %v6343_v44 = vld [vmem:[#allocation2 + $0xf0] sm:$0xff]  ;;  %7669 = vst [vmem:[#allocation108_spill] sm:$0xff] %v6350_v17  ;;  %v7672_v17 = vsub.f32 %v6043_v5, %v6051_v10 }
 0x27e   : > { %7668 = vst [vmem:[#allocation107_spill] sm:$0xff] %v6343_v44 }
 0x27f   : > { %v1495_v55 = vmul.f32 1.442695, %v7672_v17 }
 0x281   : > { %2573 = vmatpush.bf16.msra.mxu1 %v4147_v49  ;;  %4257 = vmatpush.bf16.msra.mxu3 %v4147_v49 }
 0x284   : > { %1665 = vperm.xlu1 %4381, %v6271_v6   ;;  %v4139_v6 = vld [vmem:[%s6325_s24 + $0x28] sm:$0xff]  ;;  %v6361_v46 = vpop.permute.xlu0 %1700 }
 0x285   : > { %2484 = vmatpush.bf16.msra.mxu0 %v4139_v6  ;;  %4249 = vmatpush.bf16.msra.mxu2 %v4139_v6  ;;  %7671 = vst [vmem:[#allocation109_spill] sm:$0xff] %v6361_v46 }
 0x286   : > { %2574 = vmatpush.bf16.msra.mxu1 %v4146_v48  ;;  %4258 = vmatpush.bf16.msra.mxu3 %v4146_v48  ;;  %v4135_v48 = vld [vmem:[%s6325_s24 + $0x8] sm:$0xff] }
 0x289   : > { %2485 = vmatpush.bf16.msra.mxu0 %v4138_v13  ;;  %4250 = vmatpush.bf16.msra.mxu2 %v4138_v13  ;;  %v4143_v13 = vld [vmem:[%s6325_s24 + $0x48] sm:$0xff] }
 0x28c   : > { %1680 = vperm.xlu1 %4381, %v6280_v12   ;;  %v4145_v12 = vld [vmem:[%s6325_s24 + $0x58] sm:$0xff] }
 0x28d   : > { %2486 = vmatpush.bf16.msra.mxu0 %v4137_v0  ;;  %2575 = vmatpush.bf16.msra.mxu1 %v4145_v12 }
 0x28e   : > { %4251 = vmatpush.bf16.msra.mxu2 %v4137_v0  ;;  %4259 = vmatpush.bf16.msra.mxu3 %v4145_v12  ;;  %v4134_v12 = vld [vmem:[%s6325_s24] sm:$0xff] }
 0x28f   : > { %v4142_v0 = vld [vmem:[%s6325_s24 + $0x40] sm:$0xff] }
 0x291   : > { %2576 = vmatpush.bf16.msra.mxu1 %v4144_v20 }
 0x292   : > { %4260 = vmatpush.bf16.msra.mxu3 %v4144_v20 }
 0x294   : > { %1695 = vperm.xlu1 %4381, %v6296_v2   ;;  %v4136_v2 = vld [vmem:[%s6325_s24 + $0x10] sm:$0xff] }
 0x295   : > { %2487 = vmatpush.bf16.msra.mxu0 %v4136_v2  ;;  %4252 = vmatpush.bf16.msra.mxu2 %v4136_v2  ;;  %v1905_v2 = vld [vmem:[#allocation3] sm:$0xff] }
 0x296   : > { %2577 = vmatpush.bf16.msra.mxu1 %v4143_v13  ;;  %4261 = vmatpush.bf16.msra.mxu3 %v4143_v13 }
 0x299   : > { %2488 = vmatpush.bf16.msra.mxu0 %v4135_v48  ;;  %4253 = vmatpush.bf16.msra.mxu2 %v4135_v48 }
 0x29a   : > { %2578 = vmatpush.bf16.msra.mxu1 %v4142_v0  ;;  %4262 = vmatpush.bf16.msra.mxu3 %v4142_v0 }
 0x29d   : > { %2489 = vmatpush.bf16.msra.mxu0 %v4134_v12  ;;  %4254 = vmatpush.bf16.msra.mxu2 %v4134_v12 }
 0x29e   : > { %v1421_v6 = vpop.xlane.xlu1 %1420 }
 0x29f   : > { %v6346_v49 = vmax.f32 %v6343_v44, %v1421_v6  ;;  %v7670_v6 = vsub.f32 %v6016_v22, %v6026_v47  ;;  %v1066_v22 = vunpack.c.3.s8 %v5884_v59  ;;  %v1067_v47 = vunpack.c.3.s8 %v5901_v8  ;;  %v1908_v59 = vld [vmem:[#allocation3 + $0x18] sm:$0xff] }
 0x2a1   : > { %2754 = vst.msk [vmem:[#allocation2 + $0xf0] sm:$0xff] %vm2097_vm14, %v6346_v49  ;;  %v1489_v44 = vmul.f32 1.442695, %v7670_v6  ;;  %v1130_v48 = vcvt.s32.f32 %v1066_v22  ;;  %v1131_v13 = vcvt.s32.f32 %v1067_v47 }
 0x2a3   : > { %4391 = vpow2.f32 %v1489_v44  ;;  %vm1194_vm0 = vcmp.ne.f32.partialorder %v1130_v48, 0.0  ;;  %vm1195_vm13 = vcmp.ne.f32.partialorder %v1131_v13, 0.0  ;;  %v1723_v13 = vsub.f32 %v5511_v39, %v6309_v45 }
 0x2a4   : > { %4393 = vpow2.f32 %v1495_v55 }
 0x2a9   : > { %v6368_v20 = vpop.eup %4391 }
 0x2aa   : > { %v1937_v44 = vmul.f32 %v6368_v20, %v1905_v2  ;;  %v6374_v8 = vpop.eup %4393 }
 0x2ab   : > { %v1940_v22 = vmul.f32 %v6374_v8, %v1908_v59  ;;  %v1797_v59 = vmul.f32 1.442695, %v1723_v13 }
 0x2b5   : > { %v1971_v6 = vpop.xlane.xlu0 %1970 }
 0x2b6   : > { %v2065_v46 = vadd.f32 %v1971_v6, %v1937_v44  ;;  %v725_v16 = vpop.permute.xlu1 %724 }
 0x2b7   : > { %v794_v5 = vadd.f32 %v5459_v53, %v725_v16  ;;  %v795_v10 = vadd.f32 %v5461_v54, %v725_v16 }
 0x2b8   : > { %2098 = vst.msk [vmem:[#allocation3] sm:$0xff] %vm2097_vm14, %v2065_v46 }
 0x2b9   : > { %v922_v17 = vmul.f32 0.01, %v794_v5  ;;  %v923_v55 = vmul.f32 0.01, %v795_v10  ;;  %vm858_vm3 = vcmp.ge.f32.partialorder %v794_v5, 0.0  ;;  %vm859_vm1 = vcmp.ge.f32.partialorder %v795_v10, 0.0 }
 0x2bb   : > { %v986_v12 = vsel %vm858_vm3, %v794_v5, %v922_v17  ;;  %v987_v0 = vsel %vm859_vm1, %v795_v10, %v923_v55  ;;  %v1724_v10 = vsub.f32 %v5513_v40, %v6309_v45 }
 0x2bc   : > { %v6377_v47 = vsel %vm1194_vm0, %v986_v12, -1e+30  ;;  %v6379_v53 = vsel %vm1195_vm13, %v987_v0, -1e+30 }
 0x2bd   : > { %v1980_v54 = vpop.xlane.xlu0 %1979  ;;  %v1422_v46 = vmax.f32 %v6377_v47, %v6379_v53  ;;  %v1799_v17 = vmul.f32 1.442695, %v1724_v10 }
 0x2be   : > { %v2068_v16 = vadd.f32 %v1980_v54, %v1940_v22  ;;  %v1561_v2 = vpop.permute.xlu1 %1560 }
 0x2bf   : > { %v1715_v44 = vsub.f32 %v5620_v1, %v1561_v2  ;;  %v1716_v48 = vsub.f32 %v5624_v30, %v1561_v2  ;;  %1423 = vmax.xlane.f32.xlu2 %v1422_v46  ;;  %v1735_v2 = vsub.f32 %v5665_v58, %v6315_v42 }
 0x2c0   : > { %2101 = vst.msk [vmem:[#allocation3 + $0x18] sm:$0xff] %vm2097_vm14, %v2068_v16 }
 0x2c1   : > { %v1781_v6 = vmul.f32 1.442695, %v1715_v44  ;;  %v1783_v5 = vmul.f32 1.442695, %v1716_v48  ;;  %v1821_v13 = vmul.f32 1.442695, %v1735_v2 }
 0x2c3   : > { %4395 = vpow2.f32 %v1781_v6 }
 0x2c4   : > { %4397 = vpow2.f32 %v1783_v5 }
 0x2c5   : > { %4399 = vpow2.f32 %v1797_v59 }
 0x2c6   : > { %v1576_v55 = vpop.permute.xlu1 %1575  ;;  %4401 = vpow2.f32 %v1799_v17 }
 0x2c7   : > { %v1721_v1 = vsub.f32 %v5501_v33, %v1576_v55  ;;  %v1722_v30 = vsub.f32 %v5503_v34, %v1576_v55 }
 0x2c9   : > { %v4396_v12 = vpop.eup %4395  ;;  %v1793_v0 = vmul.f32 1.442695, %v1721_v1  ;;  %v1795_v22 = vmul.f32 1.442695, %v1722_v30  ;;  %v1748_v30 = vsub.f32 %v5745_v60, %v6323_v62 }
 0x2ca   : > { %v4398_v54 = vpop.eup %4397  ;;  %v2354_v39 = vpack.c.bf16 %v4396_v12, %v6286_v14 }
 0x2cb   : > { %4403 = vpow2.f32 %v1793_v0  ;;  %v2355_v40 = vpack.c.bf16 %v4398_v54, %v6288_v27  ;;  %v6394_v45 = vadd.f32 %v4398_v54, %v4396_v12  ;;  %v6398_v33 = vpop.eup %4399  ;;  %v1736_v27 = vsub.f32 %v5669_v61, %v6315_v42 }
 0x2cc   : > { %4405 = vpow2.f32 %v1795_v22  ;;  %2490 = vmatmul.bf16.vlgmr.msra.gmra.mxu0 %v2354_v39  ;;  %v6400_v34 = vpop.eup %4401  ;;  %v1847_v54 = vmul.f32 1.442695, %v1748_v30 }
 0x2cd   : > { %2579 = vmatmul.bf16.vlgmr.msra.gmra.mxu1 %v2355_v40  ;;  %v1823_v6 = vmul.f32 1.442695, %v1736_v27  ;;  %4407 = vpow2.f32 %v1821_v13 }
 0x2ce   : > { %v6396_v46 = vpop.permute.xlu1 %1590 }
 0x2cf   : > { %4409 = vpow2.f32 %v1823_v6 }
 0x2d1   : > { %v6402_v16 = vpop.eup %4403 }
 0x2d2   : > { %v6406_v14 = vpop.eup %4405  ;;  %v2358_v44 = vpack.c.bf16 %v6398_v33, %v6402_v16 }
 0x2d3   : > { %v2359_v48 = vpack.c.bf16 %v6400_v34, %v6406_v14  ;;  %v6419_v42 = vpop.eup %4407 }
 0x2d5   : > { %v6422_v55 = vpop.eup %4409 }
 0x2d6   : > { %v1606_v5 = vpop.permute.xlu1 %1605 }
 0x2d7   : > { %v1733_v10 = vsub.f32 %v5961_v36, %v1606_v5  ;;  %v1734_v59 = vsub.f32 %v5969_v11, %v1606_v5  ;;  %1565 = vperm.xlu2 %4382, %v6029_v7   ;;  %v1747_v36 = vsub.f32 %v5741_v26, %v6323_v62 }
 0x2d9   : > { %v1817_v58 = vmul.f32 1.442695, %v1733_v10  ;;  %v1819_v17 = vmul.f32 1.442695, %v1734_v59  ;;  %v1845_v22 = vmul.f32 1.442695, %v1747_v36 }
 0x2da   : > { %v6454_v10 = vld [vmem:[#allocation2 + $0xf8] sm:$0xff] }
 0x2db   : > { %4411 = vpow2.f32 %v1817_v58 }
 0x2dc   : > { %4413 = vpow2.f32 %v1819_v17 }
 0x2dd   : > { %4415 = vpow2.f32 %v1845_v22 }
 0x2de   : > { %v6417_v61 = vpop.permute.xlu1 %1620  ;;  %4417 = vpow2.f32 %v1847_v54 }
 0x2df   : > { %1585 = vperm.xlu2 %4382, %v6080_v3  }
 0x2e1   : > { %v6424_v1 = vpop.eup %4411 }
 0x2e2   : > { %v6428_v11 = vpop.eup %4413  ;;  %v2364_v12 = vpack.c.bf16 %v6419_v42, %v6424_v1 }
 0x2e3   : > { %v2365_v0 = vpack.c.bf16 %v6422_v55, %v6428_v11  ;;  %v6439_v60 = vpop.eup %4415 }
 0x2e4   : > { %v6442_v62 = vpop.eup %4417 }
 0x2e6   : > { %v1636_v39 = vpop.permute.xlu1 %1635 }
 0x2e7   : > { %v1745_v40 = vsub.f32 %v5991_v50, %v1636_v39  ;;  %v1746_v2 = vsub.f32 %v5993_v56, %v1636_v39  ;;  %1600 = vperm.xlu2 %4382, %v6099_v57  }
 0x2e9   : > { %v1841_v26 = vmul.f32 1.442695, %v1745_v40  ;;  %v1843_v27 = vmul.f32 1.442695, %v1746_v2 }
 0x2eb   : > { %4419 = vpow2.f32 %v1841_v26  ;;  %v7673_v26 = vld [vmem:[#allocation27_spill] sm:$0xff] }
 0x2ec   : > { %4421 = vpow2.f32 %v1843_v27 }
 0x2ef   : > { %1615 = vperm.xlu2 %4382, %v6116_v32  }
 0x2f1   : > { %v4420_v13 = vpop.eup %4419 }
 0x2f2   : > { %v4422_v6 = vpop.eup %4421  ;;  %v2370_v50 = vpack.c.bf16 %v6439_v60, %v4420_v13 }
 0x2f3   : > { %v2371_v56 = vpack.c.bf16 %v6442_v62, %v4422_v6  ;;  %v6446_v5 = vadd.f32 %v4422_v6, %v4420_v13  ;;  %v1727_v13 = vsub.f32 %v5925_v18, %v6396_v46 }
 0x2f4   : > { %2530 = vmatmul.bf16.vlgmr.msra.gmra.mxu2 %v2370_v50  ;;  %v1728_v50 = vsub.f32 %v5933_v52, %v6396_v46 }
 0x2f5   : > { %2619 = vmatmul.bf16.vlgmr.msra.gmra.mxu3 %v2371_v56 }
 0x2f6   : > { %v1807_v18 = vmul.f32 1.442695, %v1728_v50 }
 0x2f7   : > { %1630 = vperm.xlu2 %4382, %v6133_v43  }
 0x2ff   : > { %1645 = vperm.xlu2 %4382, %v6150_v37  }
 0x307   : > { %1660 = vperm.xlu2 %4382, %v6167_v24  }
 0x30f   : > { %1675 = vperm.xlu2 %4382, %v6184_v23  }
 0x317   : > { %1690 = vperm.xlu2 %4382, %v6206_v63  }
 0x31f   : > { %1705 = vperm.xlu2 %4382, %v6346_v49  }
 0x332   : > { %v1424_v59 = vpop.xlane.xlu2 %1423 }
 0x333   : > { %v6457_v58 = vmax.f32 %v6454_v10, %v1424_v59 }
 0x335   : > { %2755 = vst.msk [vmem:[#allocation2 + $0xf8] sm:$0xff] %vm2097_vm14, %v6457_v58  ;;  %1710 = vperm.xlu1 %4381, %v6457_v58  }
 0x33a   : > { %v1566_v36 = vpop.permute.xlu2 %1565 }
 0x33b   : > { %v1717_v30 = vsub.f32 %v5572_v21, %v1566_v36  ;;  %v1718_v22 = vsub.f32 %v5576_v4, %v1566_v36  ;;  %v1805_v36 = vmul.f32 1.442695, %v1727_v13 }
 0x33d   : > { %v1785_v54 = vmul.f32 1.442695, %v1717_v30  ;;  %v1787_v39 = vmul.f32 1.442695, %v1718_v22 }
 0x33f   : > { %4423 = vpow2.f32 %v1785_v54  ;;  %v7674_v54 = vld [vmem:[#allocation28_spill] sm:$0xff] }
 0x340   : > { %4425 = vpow2.f32 %v1787_v39 }
 0x342   : > { %v1586_v40 = vpop.permute.xlu2 %1585 }
 0x343   : > { %v1725_v2 = vsub.f32 %v5651_v51, %v1586_v40  ;;  %v1726_v27 = vsub.f32 %v7673_v26, %v1586_v40  ;;  %v7675_v40 = vld [vmem:[#allocation29_spill] sm:$0xff] }
 0x345   : > { %v6470_v6 = vpop.eup %4423  ;;  %v1801_v21 = vmul.f32 1.442695, %v1725_v2  ;;  %v1803_v56 = vmul.f32 1.442695, %v1726_v27 }
 0x346   : > { %v6474_v4 = vpop.eup %4425  ;;  %v2356_v59 = vpack.c.bf16 %v6300_v15, %v6470_v6 }
 0x347   : > { %4427 = vpow2.f32 %v1801_v21  ;;  %v2357_v51 = vpack.c.bf16 %v6302_v19, %v6474_v4  ;;  %v7676_v21 = vld [vmem:[#allocation30_spill] sm:$0xff] }
 0x348   : > { %4429 = vpow2.f32 %v1803_v56  ;;  %1973 = vadd.xlane.f32.xlu2 %v6394_v45  ;;  %2495 = vmatmul.bf16.gmra.mxu0 %v2356_v59  ;;  %v1981_v45 = vadd.f32 %v6406_v14, %v6402_v16  ;;  %v1741_v56 = vsub.f32 %v7676_v21, %v6319_v28  ;;  %v7683_v16 = vld [vmem:[#allocation26_spill] sm:$0xff] }
 0x349   : > { %2584 = vmatmul.bf16.gmra.mxu1 %v2357_v51  ;;  %v2491_v30 = vpop.f32.mrf.mxu0  ;;  %4431 = vpow2.f32 %v1805_v36  ;;  %v1739_v36 = vsub.f32 %v5979_v38, %v6417_v61 }
 0x34a   : > { %v2580_v52 = vpop.f32.mrf.mxu1  ;;  %v1601_v46 = vpop.permute.xlu2 %1600  ;;  %4433 = vpow2.f32 %v1807_v18  ;;  %v7677_v18 = vld [vmem:[#allocation32_spill] sm:$0xff] }
 0x34b   : > { %v6481_v22 = vadd.f32 %v2580_v52, %v2491_v30  ;;  %v1731_v39 = vsub.f32 %v7674_v54, %v1601_v46  ;;  %v1732_v15 = vsub.f32 %v7675_v40, %v1601_v46  ;;  %v7678_v52 = vld [vmem:[#allocation33_spill] sm:$0xff]  ;;  %v1740_v54 = vsub.f32 %v5981_v41, %v6417_v61 }
 0x34c   : > { %v1829_v21 = vmul.f32 1.442695, %v1739_v36 }
 0x34d   : > { %v6485_v2 = vpop.eup %4427  ;;  %v1813_v19 = vmul.f32 1.442695, %v1731_v39  ;;  %v1815_v26 = vmul.f32 1.442695, %v1732_v15 }
 0x34e   : > { %v6487_v27 = vpop.eup %4429 }
 0x34f   : > { %4435 = vpow2.f32 %v1813_v19  ;;  %v1987_v13 = vadd.f32 %v6487_v27, %v6485_v2  ;;  %v6493_v50 = vpop.eup %4431 }
 0x350   : > { %4437 = vpow2.f32 %v1815_v26  ;;  %1982 = vadd.xlane.f32.xlu2 %v1981_v45  ;;  %v6497_v51 = vpop.eup %4433  ;;  %v7679_v26 = vld [vmem:[#allocation31_spill] sm:$0xff] }
 0x351   : > { %1988 = vadd.xlane.f32.xlu0 %v1987_v13  ;;  %v1742_v45 = vsub.f32 %v7679_v26, %v6319_v28  ;;  %v1833_v13 = vmul.f32 1.442695, %v1741_v56  ;;  %v1990_v38 = vadd.f32 %v6497_v51, %v6493_v50  ;;  %v1651_v28 = vpop.permute.xlu1 %1650  ;;  %v7680_v56 = vld [vmem:[#allocation25_spill] sm:$0xff]  ;;  %v1975_v26 = vadd.f32 %v6474_v4, %v6470_v6 }
 0x352   : > { %v1616_v59 = vpop.permute.xlu2 %1615  ;;  %v1729_v36 = vsub.f32 %v7680_v56, %v6312_v35  ;;  %v1751_v14 = vsub.f32 %v6002_v25, %v1651_v28  ;;  %v7685_v56 = vld [vmem:[#allocation39_spill] sm:$0xff] }
 0x353   : > { %v1737_v30 = vsub.f32 %v7677_v18, %v1616_v59  ;;  %v1738_v46 = vsub.f32 %v7678_v52, %v1616_v59  ;;  %v1831_v18 = vmul.f32 1.442695, %v1740_v54  ;;  %v1835_v41 = vmul.f32 1.442695, %v1742_v45 }
 0x354   : > { %v1853_v4 = vmul.f32 1.442695, %v1751_v14 }
 0x355   : > { %v6505_v39 = vpop.eup %4435  ;;  %v1825_v40 = vmul.f32 1.442695, %v1737_v30  ;;  %v1827_v15 = vmul.f32 1.442695, %v1738_v46  ;;  %v7681_v30 = vld [vmem:[#allocation34_spill] sm:$0xff]  ;;  %v7682_v46 = vld [vmem:[#allocation35_spill] sm:$0xff] }
 0x356   : > { %v6507_v19 = vpop.eup %4437 }
 0x357   : > { %4439 = vpow2.f32 %v1825_v40  ;;  %v1996_v59 = vadd.f32 %v6507_v19, %v6505_v39 }
 0x358   : > { %4441 = vpow2.f32 %v1827_v15  ;;  %1991 = vadd.xlane.f32.xlu2 %v1990_v38  ;;  %2500 = vmatmul.bf16.gmra.mxu0 %v2358_v44  ;;  %v1730_v44 = vsub.f32 %v7683_v16, %v6312_v35  ;;  %v1999_v38 = vadd.f32 %v6428_v11, %v6424_v1 }
 0x359   : > { %1997 = vadd.xlane.f32.xlu0 %v1996_v59  ;;  %2589 = vmatmul.bf16.gmra.mxu1 %v2359_v48  ;;  %4443 = vpow2.f32 %v1833_v13  ;;  %v1752_v13 = vsub.f32 %v6004_v31, %v1651_v28  ;;  %v7684_v28 = vld [vmem:[#allocation38_spill] sm:$0xff] }
 0x35a   : > { %v1631_v61 = vpop.permute.xlu2 %1630  ;;  %4445 = vpow2.f32 %v1829_v21  ;;  %v1809_v21 = vmul.f32 1.442695, %v1729_v36  ;;  %v1811_v59 = vmul.f32 1.442695, %v1730_v44  ;;  %v1984_v44 = vadd.f32 %v6400_v34, %v6398_v33 }
 0x35b   : > { %v1743_v52 = vsub.f32 %v7681_v30, %v1631_v61  ;;  %v1744_v54 = vsub.f32 %v7682_v46, %v1631_v61  ;;  %4447 = vpow2.f32 %v1831_v18  ;;  %v1855_v31 = vmul.f32 1.442695, %v1752_v13  ;;  %v1666_v46 = vpop.permute.xlu1 %1665 }
 0x35c   : > { %4449 = vpow2.f32 %v1835_v41  ;;  %v2361_v33 = vpack.c.bf16 %v6497_v51, %v6487_v27  ;;  %v7689_v51 = vld [vmem:[#allocation52_spill] sm:$0xff] }
 0x35d   : > { %v6527_v40 = vpop.eup %4439  ;;  %v1837_v48 = vmul.f32 1.442695, %v1743_v52  ;;  %v1839_v15 = vmul.f32 1.442695, %v1744_v54 }
 0x35e   : > { %v6532_v45 = vpop.eup %4441 }
 0x35f   : > { %4451 = vpow2.f32 %v1837_v48  ;;  %1976 = vadd.xlane.f32.xlu1 %v1975_v26  ;;  %v2005_v35 = vadd.f32 %v6532_v45, %v6527_v40  ;;  %v6539_v25 = vpop.eup %4443 }
 0x360   : > { %4453 = vpow2.f32 %v1839_v15  ;;  %2000 = vadd.xlane.f32.xlu2 %v1999_v38  ;;  %v6541_v6 = vpop.eup %4445  ;;  %v2360_v15 = vpack.c.bf16 %v6493_v50, %v6485_v2 }
 0x361   : > { %2006 = vadd.xlane.f32.xlu0 %v2005_v35  ;;  %v6543_v18 = vpop.eup %4447  ;;  %4455 = vpow2.f32 %v1809_v21  ;;  %v7686_v35 = vld [vmem:[#allocation36_spill] sm:$0xff] }
 0x362   : > { %v1646_v41 = vpop.permute.xlu2 %1645  ;;  %v6547_v30 = vpop.eup %4449  ;;  %4457 = vpow2.f32 %v1811_v59  ;;  %v2008_v48 = vadd.f32 %v6543_v18, %v6541_v6  ;;  %v1753_v59 = vsub.f32 %v7686_v35, %v6334_v29 }
 0x363   : > { %v1749_v61 = vsub.f32 %v7684_v28, %v1646_v41  ;;  %v1750_v36 = vsub.f32 %v7685_v56, %v1646_v41  ;;  %4459 = vpow2.f32 %v1853_v4  ;;  %v7687_v4 = vld [vmem:[#allocation42_spill] sm:$0xff]  ;;  %v7688_v41 = vld [vmem:[#allocation43_spill] sm:$0xff]  ;;  %v1681_v35 = vpop.permute.xlu1 %1680 }
 0x364   : > { %4461 = vpow2.f32 %v1855_v31  ;;  %v1857_v34 = vmul.f32 1.442695, %v1753_v59 }
 0x365   : > { %v6549_v52 = vpop.eup %4451  ;;  %v1849_v54 = vmul.f32 1.442695, %v1749_v61  ;;  %v1851_v16 = vmul.f32 1.442695, %v1750_v36  ;;  %v1757_v61 = vsub.f32 %v7689_v51, %v1666_v46  ;;  %v7690_v36 = vld [vmem:[#allocation53_spill] sm:$0xff]  ;;  %v7692_v51 = vld [vmem:[#allocation46_spill] sm:$0xff] }
 0x366   : > { %v6553_v14 = vpop.eup %4453  ;;  %v2368_v26 = vpack.c.bf16 %v6549_v52, %v6539_v25 }
 0x367   : > { %4463 = vpow2.f32 %v1849_v54  ;;  %1985 = vadd.xlane.f32.xlu1 %v1984_v44  ;;  %v2014_v13 = vadd.f32 %v6553_v14, %v6549_v52  ;;  %v4456_v38 = vpop.eup %4455  ;;  %v1758_v54 = vsub.f32 %v7690_v36, %v1666_v46  ;;  %v7693_v36 = vld [vmem:[#allocation47_spill] sm:$0xff]  ;;  %v7715_v52 = vld [vmem:[#allocation64_spill] sm:$0xff] }
 0x368   : > { %4465 = vpow2.f32 %v1851_v16  ;;  %2009 = vadd.xlane.f32.xlu2 %v2008_v48  ;;  %2505 = vmatmul.bf16.gmra.mxu0 %v2360_v15  ;;  %v4458_v2 = vpop.eup %4457 }
 0x369   : > { %2015 = vadd.xlane.f32.xlu0 %v2014_v13  ;;  %2594 = vmatmul.bf16.gmra.mxu1 %v2361_v33  ;;  %v4460_v21 = vpop.eup %4459  ;;  %v1993_v48 = vadd.f32 %v4458_v2, %v4456_v38  ;;  %v7691_v13 = vld [vmem:[#allocation37_spill] sm:$0xff]  ;;  %v1867_v46 = vmul.f32 1.442695, %v1758_v54 }
 0x36a   : > { %v1661_v50 = vpop.permute.xlu2 %1660  ;;  %v4462_v27 = vpop.eup %4461  ;;  %v1754_v33 = vsub.f32 %v7691_v13, %v6334_v29 }
 0x36b   : > { %v1755_v31 = vsub.f32 %v7687_v4, %v1661_v50  ;;  %v1756_v28 = vsub.f32 %v7688_v41, %v1661_v50  ;;  %v1865_v41 = vmul.f32 1.442695, %v1757_v61  ;;  %v2002_v61 = vadd.f32 %v6422_v55, %v6419_v42 }
 0x36c   : > { %v2026_v13 = vadd.f32 %v4462_v27, %v4460_v21 }
 0x36d   : > { %v4464_v56 = vpop.eup %4463  ;;  %v1861_v16 = vmul.f32 1.442695, %v1755_v31  ;;  %v1863_v44 = vmul.f32 1.442695, %v1756_v28  ;;  %v1859_v31 = vmul.f32 1.442695, %v1754_v33 }
 0x36e   : > { %v4466_v15 = vpop.eup %4465  ;;  %v2372_v17 = vpack.c.bf16 %v4460_v21, %v4464_v56 }
 0x36f   : > { %4467 = vpow2.f32 %v1861_v16  ;;  %1994 = vadd.xlane.f32.xlu1 %v1993_v48  ;;  %v2023_v4 = vadd.f32 %v4466_v15, %v4464_v56  ;;  %v2373_v50 = vpack.c.bf16 %v4462_v27, %v4466_v15  ;;  %v7694_v16 = vld [vmem:[#allocation55_spill] sm:$0xff]  ;;  %v7697_v27 = vld [vmem:[#allocation48_spill] sm:$0xff] }
 0x370   : > { %4469 = vpow2.f32 %v1863_v44  ;;  %2018 = vadd.xlane.f32.xlu2 %v6446_v5  ;;  %2535 = vmatmul.bf16.gmra.mxu2 %v2372_v17  ;;  %v1763_v48 = vsub.f32 %v7694_v16, %v1681_v35  ;;  %v7695_v5 = vld [vmem:[#allocation56_spill] sm:$0xff] }
 0x371   : > { %2024 = vadd.xlane.f32.xlu0 %v2023_v4  ;;  %2624 = vmatmul.bf16.gmra.mxu3 %v2373_v50  ;;  %4471 = vpow2.f32 %v1857_v34  ;;  %v1764_v17 = vsub.f32 %v7695_v5, %v1681_v35  ;;  %v2362_v34 = vpack.c.bf16 %v6505_v39, %v4456_v38  ;;  %v2363_v50 = vpack.c.bf16 %v6507_v19, %v4458_v2  ;;  %v7696_v19 = vld [vmem:[#allocation40_spill] sm:$0xff] }
 0x372   : > { %v1676_v28 = vpop.permute.xlu2 %1675  ;;  %4473 = vpow2.f32 %v1865_v41  ;;  %v1877_v41 = vmul.f32 1.442695, %v1763_v48  ;;  %v1759_v2 = vsub.f32 %v7696_v19, %v6337_v9  ;;  %v7699_v48 = vld [vmem:[#allocation59_spill] sm:$0xff]  ;;  %v2011_v5 = vadd.f32 %v6547_v30, %v6539_v25 }
 0x373   : > { %v1761_v29 = vsub.f32 %v7692_v51, %v1676_v28  ;;  %v1762_v59 = vsub.f32 %v7693_v36, %v1676_v28  ;;  %4475 = vpow2.f32 %v1867_v46  ;;  %v1879_v35 = vmul.f32 1.442695, %v1764_v17  ;;  %v1696_v51 = vpop.permute.xlu1 %1695  ;;  %v7698_v36 = vld [vmem:[#allocation49_spill] sm:$0xff] }
 0x374   : > { %4477 = vpow2.f32 %v1859_v31 }
 0x375   : > { %v4468_v56 = vpop.eup %4467  ;;  %v1873_v54 = vmul.f32 1.442695, %v1761_v29  ;;  %v1875_v44 = vmul.f32 1.442695, %v1762_v59 }
 0x376   : > { %v4470_v15 = vpop.eup %4469 }
 0x377   : > { %4479 = vpow2.f32 %v1873_v54  ;;  %2003 = vadd.xlane.f32.xlu1 %v2002_v61  ;;  %v2531_v33 = vpop.f32.mrf.mxu2  ;;  %v2032_v4 = vadd.f32 %v4470_v15, %v4468_v56  ;;  %v6584_v46 = vpop.eup %4471  ;;  %v1769_v61 = vsub.f32 %v7699_v48, %v1696_v51  ;;  %v7700_v54 = vld [vmem:[#allocation62_spill] sm:$0xff]  ;;  %v7703_v48 = vld [vmem:[#allocation99_spill] sm:$0xff] }
 0x378   : > { %4481 = vpow2.f32 %v1875_v44  ;;  %v2620_v28 = vpop.f32.mrf.mxu3  ;;  %2027 = vadd.xlane.f32.xlu2 %v2026_v13  ;;  %2510 = vmatmul.bf16.gmra.mxu0 %v2362_v34  ;;  %v6588_v39 = vpop.eup %4473  ;;  %v1770_v44 = vsub.f32 %v7700_v54, %v1696_v51 }
 0x379   : > { %v6586_v29 = vadd.f32 %v2620_v28, %v2531_v33  ;;  %2033 = vadd.xlane.f32.xlu0 %v2032_v4  ;;  %2599 = vmatmul.bf16.gmra.mxu1 %v2363_v50  ;;  %v6590_v21 = vpop.eup %4475  ;;  %4483 = vpow2.f32 %v1877_v41  ;;  %v7701_v4 = vld [vmem:[#allocation41_spill] sm:$0xff]  ;;  %v2374_v28 = vpack.c.bf16 %v4468_v56, %v6584_v46  ;;  %v1889_v51 = vmul.f32 1.442695, %v1769_v61  ;;  %v7702_v56 = vld [vmem:[#allocation98_spill] sm:$0xff] }
 0x37a   : > { %v1691_v38 = vpop.permute.xlu2 %1690  ;;  %v4478_v16 = vpop.eup %4477  ;;  %4485 = vpow2.f32 %v1879_v35  ;;  %v1760_v50 = vsub.f32 %v7701_v4, %v6337_v9  ;;  %v2035_v41 = vadd.f32 %v6590_v21, %v6588_v39 }
 0x37b   : > { %v1767_v31 = vsub.f32 %v7697_v27, %v1691_v38  ;;  %v1768_v59 = vsub.f32 %v7698_v36, %v1691_v38  ;;  %v1869_v38 = vmul.f32 1.442695, %v1759_v2  ;;  %v2375_v19 = vpack.c.bf16 %v4470_v15, %v4478_v16 }
 0x37c   : > { %v1891_v27 = vmul.f32 1.442695, %v1770_v44  ;;  %v2020_v44 = vadd.f32 %v6442_v62, %v6439_v60  ;;  %v2029_v42 = vadd.f32 %v4478_v16, %v6584_v46  ;;  %v7707_v46 = vld [vmem:[#allocation109_spill] sm:$0xff]  ;;  %v7708_v16 = vld [vmem:[#allocation50_spill] sm:$0xff] }
 0x37d   : > { %v6599_v17 = vpop.eup %4479  ;;  %v1885_v13 = vmul.f32 1.442695, %v1767_v31  ;;  %v1887_v34 = vmul.f32 1.442695, %v1768_v59  ;;  %v1871_v31 = vmul.f32 1.442695, %v1760_v50 }
 0x37e   : > { %v6602_v33 = vpop.eup %4481 }
 0x37f   : > { %4487 = vpow2.f32 %v1885_v13  ;;  %2012 = vadd.xlane.f32.xlu1 %v2011_v5  ;;  %v2041_v35 = vadd.f32 %v6602_v33, %v6599_v17  ;;  %v6611_v9 = vpop.eup %4483 }
 0x380   : > { %4489 = vpow2.f32 %v1887_v34  ;;  %2036 = vadd.xlane.f32.xlu2 %v2035_v41  ;;  %2540 = vmatmul.bf16.gmra.mxu2 %v2374_v28  ;;  %v6613_v59 = vpop.eup %4485  ;;  %v7704_v41 = vld [vmem:[#allocation108_spill] sm:$0xff] }
 0x381   : > { %2042 = vadd.xlane.f32.xlu0 %v2041_v35  ;;  %2629 = vmatmul.bf16.gmra.mxu3 %v2375_v19  ;;  %4491 = vpow2.f32 %v1869_v38  ;;  %v2044_v34 = vadd.f32 %v6613_v59, %v6611_v9  ;;  %v7705_v28 = vld [vmem:[#allocation44_spill] sm:$0xff]  ;;  %v7706_v19 = vld [vmem:[#allocation45_spill] sm:$0xff] }
 0x382   : > { %v1706_v36 = vpop.permute.xlu2 %1705  ;;  %4493 = vpow2.f32 %v1889_v51  ;;  %v1765_v38 = vsub.f32 %v7705_v28, %v7704_v41  ;;  %v1766_v51 = vsub.f32 %v7706_v19, %v7704_v41 }
 0x383   : > { %v1773_v2 = vsub.f32 %v7702_v56, %v1706_v36  ;;  %v1774_v5 = vsub.f32 %v7703_v48, %v1706_v36  ;;  %4495 = vpow2.f32 %v1891_v27  ;;  %v1771_v56 = vsub.f32 %v7708_v16, %v7707_v46  ;;  %v7718_v16 = vld [vmem:[#allocation87_spill] sm:$0xff] }
 0x384   : > { %4497 = vpow2.f32 %v1871_v31  ;;  %v1883_v36 = vmul.f32 1.442695, %v1766_v51  ;;  %v7712_v51 = vld [vmem:[#allocation61_spill] sm:$0xff] }
 0x385   : > { %v6617_v15 = vpop.eup %4487  ;;  %v1897_v61 = vmul.f32 1.442695, %v1773_v2  ;;  %v1899_v54 = vmul.f32 1.442695, %v1774_v5  ;;  %v7709_v2 = vld [vmem:[#allocation51_spill] sm:$0xff]  ;;  %v7710_v5 = vld [vmem:[#allocation58_spill] sm:$0xff] }
 0x386   : > { %v6621_v13 = vpop.eup %4489 }
 0x387   : > { %4499 = vpow2.f32 %v1897_v61  ;;  %2021 = vadd.xlane.f32.xlu1 %v2020_v44  ;;  %v2050_v4 = vadd.f32 %v6621_v13, %v6617_v15  ;;  %v4492_v50 = vpop.eup %4491  ;;  %v7711_v61 = vld [vmem:[#allocation57_spill] sm:$0xff]  ;;  %v1893_v44 = vmul.f32 1.442695, %v1771_v56  ;;  %v7719_v56 = vld [vmem:[#allocation84_spill] sm:$0xff] }
 0x388   : > { %4501 = vpow2.f32 %v1899_v54  ;;  %2045 = vadd.xlane.f32.xlu2 %v2044_v34  ;;  %2515 = vmatmul.bf16.gmra.mxu0 %v2364_v12  ;;  %v6633_v60 = vpop.eup %4493  ;;  %v2376_v11 = vpack.c.bf16 %v4492_v50, %v6588_v39  ;;  %v1881_v12 = vmul.f32 1.442695, %v1765_v38  ;;  %v1772_v39 = vsub.f32 %v7709_v2, %v7707_v46 }
 0x389   : > { %2051 = vadd.xlane.f32.xlu0 %v2050_v4  ;;  %2604 = vmatmul.bf16.gmra.mxu1 %v2365_v0  ;;  %v6635_v62 = vpop.eup %4495  ;;  %v1458_v54 = vsub.f32 %v7711_v61, %v7710_v5  ;;  %v2367_v34 = vpack.c.bf16 %v6543_v18, %v6532_v45  ;;  %v1464_v2 = vsub.f32 %v7719_v56, %v7718_v16 }
 0x38a   : > { %v4498_v35 = vpop.eup %4497  ;;  %v2053_v55 = vadd.f32 %v6635_v62, %v6633_v60  ;;  %4503 = vpow2.f32 %v1881_v12  ;;  %v1895_v4 = vmul.f32 1.442695, %v1772_v39 }
 0x38b   : > { %v2377_v31 = vpack.c.bf16 %v4498_v35, %v6590_v21  ;;  %4505 = vpow2.f32 %v1883_v36  ;;  %v2038_v48 = vadd.f32 %v4498_v35, %v4492_v50  ;;  %v2366_v21 = vpack.c.bf16 %v6541_v6, %v6527_v40 }
 0x38c   : > { %v1491_v38 = vmul.f32 1.442695, %v1458_v54  ;;  %4507 = vpow2.f32 %v1893_v44  ;;  %v2378_v35 = vpack.c.bf16 %v6611_v9, %v6599_v17  ;;  %v2379_v40 = vpack.c.bf16 %v6613_v59, %v6602_v33  ;;  %v6693_v44 = vpop.f32.mrf.mxu0 }
 0x38d   : > { %v6641_v27 = vpop.eup %4499  ;;  %4509 = vpow2.f32 %v1895_v4  ;;  %v7713_v33 = vpack.c.bf16 %v6553_v14, %v6547_v30 }
 0x38e   : > { %v6644_v1 = vpop.eup %4501  ;;  %4511 = vpow2.f32 %v1491_v38  ;;  %v7721_v38 = vld [vmem:[#allocation54_spill] sm:$0xff] }
 0x38f   : > { %2030 = vadd.xlane.f32.xlu1 %v2029_v42  ;;  %v2059_v0 = vadd.f32 %v6644_v1, %v6641_v27  ;;  %v1463_v42 = vsub.f32 %v7712_v51, %v6080_v3  ;;  %v7714_v3 = vld [vmem:[#allocation66_spill] sm:$0xff] }
 0x390   : > { %2054 = vadd.xlane.f32.xlu2 %v2053_v55  ;;  %2545 = vmatmul.bf16.gmra.mxu2 %v2376_v11  ;;  %v4504_v41 = vpop.eup %4503 }
 0x391   : > { %2060 = vadd.xlane.f32.xlu0 %v2059_v0  ;;  %2634 = vmatmul.bf16.gmra.mxu3 %v2377_v31  ;;  %v4506_v28 = vpop.eup %4505  ;;  %v1501_v9 = vmul.f32 1.442695, %v1463_v42 }
 0x392   : > { %v2047_v50 = vadd.f32 %v4506_v28, %v4504_v41  ;;  %v4508_v6 = vpop.eup %4507  ;;  %v2381_v25 = vpack.c.bf16 %v6621_v13, %v4506_v28  ;;  %v1906_v13 = vld [vmem:[#allocation3 + $0x8] sm:$0xff] }
 0x393   : > { %v4510_v45 = vpop.eup %4509 }
 0x394   : > { %v4512_v18 = vpop.eup %4511  ;;  %v2056_v19 = vadd.f32 %v4510_v45, %v4508_v6 }
 0x397   : > { %2039 = vadd.xlane.f32.xlu1 %v2038_v48  ;;  %v1938_v48 = vmul.f32 %v4512_v18, %v1906_v13 }
 0x398   : > { %2520 = vmatmul.bf16.gmra.mxu0 %v2366_v21  ;;  %v1503_v21 = vmul.f32 1.442695, %v1464_v2 }
 0x399   : > { %2609 = vmatmul.bf16.gmra.mxu1 %v2367_v34  ;;  %v7720_v34 = vld [vmem:[#allocation72_spill] sm:$0xff] }
 0x39a   : > { %v1472_v4 = vsub.f32 %v7720_v34, %v6133_v43  ;;  %v7723_v43 = vld [vmem:[#allocation89_spill] sm:$0xff] }
 0x39c   : > { %v1519_v42 = vmul.f32 1.442695, %v1472_v4 }
 0x39f   : > { %2048 = vadd.xlane.f32.xlu1 %v2047_v50  ;;  %v1459_v50 = vsub.f32 %v7721_v38, %v6029_v7 }
 0x3a0   : > { %2550 = vmatmul.bf16.gmra.mxu2 %v2378_v35  ;;  %v2383_v35 = vpack.c.bf16 %v4510_v45, %v6635_v62 }
 0x3a1   : > { %2639 = vmatmul.bf16.gmra.mxu3 %v2379_v40  ;;  %v1909_v40 = vld [vmem:[#allocation3 + $0x20] sm:$0xff] }
 0x3a5   : > { %2169 = vperm.xlu0 %4380, %v4512_v18   ;;  %v1911_v18 = vld [vmem:[#allocation3 + $0x30] sm:$0xff] }
 0x3a7   : > { %v1711_v55 = vpop.permute.xlu1 %1710  ;;  %2057 = vadd.xlane.f32.xlu1 %v2056_v19  ;;  %v7722_v19 = vld [vmem:[#allocation91_spill] sm:$0xff] }
 0x3a8   : > { %v1775_v11 = vsub.f32 %v6377_v47, %v1711_v55  ;;  %v1776_v17 = vsub.f32 %v6379_v53, %v1711_v55  ;;  %2525 = vmatmul.bf16.gmra.mxu0 %v2368_v26  ;;  %v1466_v47 = vsub.f32 %v7714_v3, %v6099_v57  ;;  %v2380_v53 = vpack.c.bf16 %v6617_v15, %v4504_v41  ;;  %v7716_v26 = vld [vmem:[#allocation60_spill] sm:$0xff]  ;;  %v7717_v57 = vld [vmem:[#allocation69_spill] sm:$0xff] }
 0x3a9   : > { %2614 = vmatmul.bf16.gmra.mxu1 %v7713_v33  ;;  %v1461_v30 = vsub.f32 %v7716_v26, %v7715_v52  ;;  %v1469_v15 = vsub.f32 %v7717_v57, %v6116_v32  ;;  %v6697_v32 = vpop.f32.mrf.mxu1  ;;  %v2382_v41 = vpack.c.bf16 %v4508_v6, %v6633_v60  ;;  %v1467_v51 = vsub.f32 %v7723_v43, %v7722_v19  ;;  %v7725_v52 = vld [vmem:[#allocation94_spill] sm:$0xff]  ;;  %v7726_v26 = vld [vmem:[#allocation93_spill] sm:$0xff] }
 0x3aa   : > { %v1901_v59 = vmul.f32 1.442695, %v1775_v11  ;;  %v1903_v12 = vmul.f32 1.442695, %v1776_v17  ;;  %v1507_v0 = vmul.f32 1.442695, %v1466_v47 }
 0x3ab   : > { %v1497_v46 = vmul.f32 1.442695, %v1461_v30  ;;  %v1513_v39 = vmul.f32 1.442695, %v1469_v15  ;;  %v1493_v11 = vmul.f32 1.442695, %v1459_v50  ;;  %v1470_v30 = vsub.f32 %v7726_v26, %v7725_v52 }
 0x3ac   : > { %4513 = vpow2.f32 %v1901_v59  ;;  %v1918_v26 = vld [vmem:[#allocation3 + $0x68] sm:$0xff] }
 0x3ad   : > { %4515 = vpow2.f32 %v1903_v12  ;;  %2179 = vperm.xlu0 %4380, %v6374_v8  }
 0x3ae   : > { %4517 = vpow2.f32 %v1501_v9  ;;  %v1509_v9 = vmul.f32 1.442695, %v1467_v51 }
 0x3af   : > { %4519 = vpow2.f32 %v1507_v0 }
 0x3b0   : > { %2555 = vmatmul.bf16.gmra.mxu2 %v2380_v53  ;;  %4521 = vpow2.f32 %v1497_v46  ;;  %v1912_v53 = vld [vmem:[#allocation3 + $0x38] sm:$0xff] }
 0x3b1   : > { %2644 = vmatmul.bf16.gmra.mxu3 %v2381_v25  ;;  %4523 = vpow2.f32 %v1513_v39  ;;  %v1914_v25 = vld [vmem:[#allocation3 + $0x48] sm:$0xff] }
 0x3b2   : > { %v6683_v14 = vpop.eup %4513  ;;  %4525 = vpow2.f32 %v1503_v21  ;;  %v7730_v21 = vld [vmem:[#allocation78_spill] sm:$0xff] }
 0x3b3   : > { %v6685_v31 = vpop.eup %4515  ;;  %4527 = vpow2.f32 %v1519_v42  ;;  %v1478_v34 = vsub.f32 %v7730_v21, %v6167_v24  ;;  %v1917_v24 = vld [vmem:[#allocation3 + $0x60] sm:$0xff]  ;;  %v7733_v42 = vld [vmem:[#allocation67_spill] sm:$0xff] }
 0x3b4   : > { %v4518_v36 = vpop.eup %4517  ;;  %v2062_v8 = vadd.f32 %v6685_v31, %v6683_v14  ;;  %4529 = vpow2.f32 %v1493_v11  ;;  %v2385_v50 = vpack.c.bf16 %v6685_v31, %v6644_v1 }
 0x3b5   : > { %2194 = vperm.xlu0 %4380, %v4518_v36   ;;  %v4520_v61 = vpop.eup %4519  ;;  %v1943_v6 = vmul.f32 %v4518_v36, %v1911_v18  ;;  %4531 = vpow2.f32 %v1509_v9  ;;  %v7732_v18 = vld [vmem:[#allocation95_spill] sm:$0xff] }
 0x3b6   : > { %2063 = vadd.xlane.f32.xlu2 %v2062_v8  ;;  %v4522_v28 = vpop.eup %4521  ;;  %v7727_v8 = vld [vmem:[#allocation63_spill] sm:$0xff]  ;;  %v1946_v13 = vmul.f32 %v4520_v61, %v1914_v25 }
 0x3b7   : > { %v1941_v55 = vmul.f32 %v4522_v28, %v1909_v40  ;;  %v4524_v17 = vpop.eup %4523  ;;  %v7731_v40 = vld [vmem:[#allocation96_spill] sm:$0xff] }
 0x3b8   : > { %v4526_v3 = vpop.eup %4525  ;;  %v1473_v19 = vsub.f32 %v7732_v18, %v7731_v40  ;;  %v1949_v1 = vmul.f32 %v4524_v17, %v1917_v24  ;;  %v1913_v24 = vld [vmem:[#allocation3 + $0x40] sm:$0xff] }
 0x3b9   : > { %v1944_v36 = vmul.f32 %v4526_v3, %v1912_v53  ;;  %v6718_v16 = vpop.eup %4527  ;;  %v1910_v53 = vld [vmem:[#allocation3 + $0x28] sm:$0xff] }
 0x3ba   : > { %v4530_v39 = vpop.eup %4529 }
 0x3bb   : > { %v1974_v5 = vpop.xlane.xlu2 %1973 }
 0x3bc   : > { %v2066_v54 = vadd.f32 %v1974_v5, %v1938_v48  ;;  %v1515_v48 = vmul.f32 1.442695, %v1470_v30  ;;  %v1920_v30 = vld [vmem:[#allocation3 + $0x78] sm:$0xff] }
 0x3bd   : > { %2209 = vperm.xlu0 %4380, %v4520_v61   ;;  %v2384_v61 = vpack.c.bf16 %v6683_v14, %v6641_v27  ;;  %v1531_v14 = vmul.f32 1.442695, %v1478_v34 }
 0x3be   : > { %2099 = vst.msk [vmem:[#allocation3 + $0x8] sm:$0xff] %vm2097_vm14, %v2066_v54 }
 0x3c0   : > { %2560 = vmatmul.bf16.gmra.mxu2 %v2382_v41  ;;  %2164 = vperm.xlu1 %4381, %v6368_v20   ;;  %v7724_v20 = vld [vmem:[#allocation75_spill] sm:$0xff] }
 0x3c1   : > { %2649 = vmatmul.bf16.gmra.mxu3 %v2383_v35  ;;  %v1475_v59 = vsub.f32 %v7724_v20, %v6150_v37  ;;  %v7728_v37 = vld [vmem:[#allocation65_spill] sm:$0xff]  ;;  %v1907_v41 = vld [vmem:[#allocation3 + $0x10] sm:$0xff] }
 0x3c2   : > { %v7729_v46 = vsub.f32 %v7727_v8, %v7728_v37  ;;  %v1915_v35 = vld [vmem:[#allocation3 + $0x50] sm:$0xff]  ;;  %v1939_v27 = vmul.f32 %v4530_v39, %v1907_v41 }
 0x3c3   : > { %v1983_v60 = vpop.xlane.xlu2 %1982  ;;  %v1525_v0 = vmul.f32 1.442695, %v1475_v59 }
 0x3c4   : > { %v2069_v33 = vadd.f32 %v1983_v60, %v1941_v55  ;;  %v1989_v7 = vpop.xlane.xlu0 %1988  ;;  %v1499_v57 = vmul.f32 1.442695, %v7729_v46  ;;  %v7734_v55 = vld [vmem:[#allocation68_spill] sm:$0xff] }
 0x3c5   : > { %v2071_v62 = vadd.f32 %v1989_v7, %v1943_v6  ;;  %2224 = vperm.xlu0 %4380, %v4524_v17   ;;  %v2496_v45 = vpop.f32.mrf.mxu0  ;;  %4533 = vpow2.f32 %v1525_v0  ;;  %v7735_v11 = vsub.f32 %v7733_v42, %v7734_v55  ;;  %v7737_v0 = vld [vmem:[#allocation100_spill] sm:$0xff] }
 0x3c6   : > { %2102 = vst.msk [vmem:[#allocation3 + $0x20] sm:$0xff] %vm2097_vm14, %v2069_v33  ;;  %v2585_v12 = vpop.f32.mrf.mxu1  ;;  %4535 = vpow2.f32 %v1499_v57 }
 0x3c7   : > { %2104 = vst.msk [vmem:[#allocation3 + $0x30] sm:$0xff] %vm2097_vm14, %v2071_v62  ;;  %v6711_v47 = vadd.f32 %v2585_v12, %v2496_v45  ;;  %4537 = vpow2.f32 %v1515_v48  ;;  %v1505_v60 = vmul.f32 1.442695, %v7735_v11  ;;  %v1521_v45 = vmul.f32 1.442695, %v1473_v19  ;;  %v7736_v12 = vld [vmem:[#allocation81_spill] sm:$0xff] }
 0x3c8   : > { %2184 = vperm.xlu1 %4381, %v4522_v28   ;;  %v4532_v28 = vpop.eup %4531  ;;  %4539 = vpow2.f32 %v1531_v14  ;;  %v1921_v19 = vld [vmem:[#allocation3 + $0x80] sm:$0xff]  ;;  %v7743_v14 = vld [vmem:[#allocation102_spill] sm:$0xff] }
 0x3c9   : > { %v1947_v51 = vmul.f32 %v4532_v28, %v1915_v35  ;;  %4541 = vpow2.f32 %v1505_v60  ;;  %v7745_v60 = vld [vmem:[#allocation73_spill] sm:$0xff] }
 0x3ca   : > { %4543 = vpow2.f32 %v1521_v45 }
 0x3cb   : > { %v1992_v15 = vpop.xlane.xlu2 %1991  ;;  %v6736_v31 = vpop.eup %4533 }
 0x3cc   : > { %v2072_v56 = vadd.f32 %v1992_v15, %v1944_v36  ;;  %v1998_v2 = vpop.xlane.xlu0 %1997  ;;  %v4536_v62 = vpop.eup %4535  ;;  %v7738_v36 = vld [vmem:[#allocation97_spill] sm:$0xff]  ;;  %v7739_v15 = vld [vmem:[#allocation70_spill] sm:$0xff] }
 0x3cd   : > { %v2074_v5 = vadd.f32 %v1998_v2, %v1946_v13  ;;  %2239 = vperm.xlu0 %4380, %v6718_v16   ;;  %v2498_v54 = vpop.f32.mrf.mxu0  ;;  %v4538_v25 = vpop.eup %4537  ;;  %v1476_v8 = vsub.f32 %v7738_v36, %v7737_v0  ;;  %v1942_v37 = vmul.f32 %v4536_v62, %v1910_v53  ;;  %v7740_v13 = vld [vmem:[#allocation71_spill] sm:$0xff]  ;;  %v1924_v36 = vld [vmem:[#allocation3 + $0x98] sm:$0xff] }
 0x3ce   : > { %2105 = vst.msk [vmem:[#allocation3 + $0x38] sm:$0xff] %vm2097_vm14, %v2072_v56  ;;  %2174 = vperm.xlu2 %4382, %v4530_v39   ;;  %v2587_v4 = vpop.f32.mrf.mxu1  ;;  %v1950_v57 = vmul.f32 %v4538_v25, %v1918_v26  ;;  %v7741_v56 = vsub.f32 %v7739_v15, %v7740_v13 }
 0x3cf   : > { %2107 = vst.msk [vmem:[#allocation3 + $0x48] sm:$0xff] %vm2097_vm14, %v2074_v5  ;;  %v6727_v38 = vadd.f32 %v2587_v4, %v2498_v54  ;;  %v1952_v5 = vmul.f32 %v6718_v16, %v1920_v30  ;;  %v6752_v54 = vpop.eup %4539  ;;  %v1916_v30 = vld [vmem:[#allocation3 + $0x58] sm:$0xff] }
 0x3d0   : > { %2565 = vmatmul.bf16.gmra.mxu2 %v2384_v61  ;;  %2199 = vperm.xlu1 %4381, %v4526_v3   ;;  %v1481_v3 = vsub.f32 %v7736_v12, %v6184_v23  ;;  %v1511_v2 = vmul.f32 1.442695, %v7741_v56  ;;  %v4542_v4 = vpop.eup %4541  ;;  %v1527_v61 = vmul.f32 1.442695, %v1476_v8  ;;  %v1926_v8 = vld [vmem:[#allocation3 + $0xa8] sm:$0xff]  ;;  %v7751_v56 = vld [vmem:[#allocation76_spill] sm:$0xff] }
 0x3d1   : > { %2654 = vmatmul.bf16.gmra.mxu3 %v2385_v50  ;;  %v7742_v50 = vld [vmem:[#allocation85_spill] sm:$0xff]  ;;  %v4544_v40 = vpop.eup %4543  ;;  %v1945_v42 = vmul.f32 %v4542_v4, %v1913_v24 }
 0x3d2   : > { %v1977_v43 = vpop.xlane.xlu1 %1976  ;;  %v1537_v23 = vmul.f32 1.442695, %v1481_v3  ;;  %v1484_v35 = vsub.f32 %v7742_v50, %v6206_v63  ;;  %v1953_v11 = vmul.f32 %v4544_v40, %v1921_v19 }
 0x3d3   : > { %v2067_v6 = vadd.f32 %v1977_v43, %v1939_v27  ;;  %v2001_v33 = vpop.xlane.xlu2 %2000  ;;  %v1923_v27 = vld [vmem:[#allocation3 + $0x90] sm:$0xff]  ;;  %v7744_v43 = vld [vmem:[#allocation101_spill] sm:$0xff] }
 0x3d4   : > { %v2075_v7 = vadd.f32 %v2001_v33, %v1947_v51  ;;  %v2007_v9 = vpop.xlane.xlu0 %2006  ;;  %4545 = vpow2.f32 %v1537_v23  ;;  %v1479_v51 = vsub.f32 %v7744_v43, %v7743_v14  ;;  %v1543_v63 = vmul.f32 1.442695, %v1484_v35  ;;  %v7750_v23 = vld [vmem:[#allocation103_spill] sm:$0xff] }
 0x3d5   : > { %2100 = vst.msk [vmem:[#allocation3 + $0x10] sm:$0xff] %vm2097_vm14, %v2067_v6  ;;  %v2077_v20 = vadd.f32 %v2007_v9, %v1949_v1  ;;  %2254 = vperm.xlu0 %4380, %v6736_v31   ;;  %v2501_v59 = vpop.f32.mrf.mxu0  ;;  %4547 = vpow2.f32 %v1511_v2  ;;  %v7746_v6 = vld [vmem:[#allocation74_spill] sm:$0xff]  ;;  %v7752_v2 = vld [vmem:[#allocation77_spill] sm:$0xff]  ;;  %v1927_v43 = vld [vmem:[#allocation3 + $0xb0] sm:$0xff] }
 0x3d6   : > { %2108 = vst.msk [vmem:[#allocation3 + $0x50] sm:$0xff] %vm2097_vm14, %v2075_v7  ;;  %2189 = vperm.xlu2 %4382, %v4536_v62   ;;  %v2590_v17 = vpop.f32.mrf.mxu1  ;;  %4549 = vpow2.f32 %v1527_v61  ;;  %v7747_v33 = vsub.f32 %v7745_v60, %v7746_v6  ;;  %v1955_v62 = vmul.f32 %v6736_v31, %v1923_v27  ;;  %v1533_v3 = vmul.f32 1.442695, %v1479_v51  ;;  %v1919_v27 = vld [vmem:[#allocation3 + $0x70] sm:$0xff]  ;;  %v1929_v51 = vld [vmem:[#allocation3 + $0xc0] sm:$0xff] }
 0x3d7   : > { %2110 = vst.msk [vmem:[#allocation3 + $0x60] sm:$0xff] %vm2097_vm14, %v2077_v20  ;;  %v6744_v52 = vadd.f32 %v2590_v17, %v2501_v59  ;;  %4551 = vpow2.f32 %v1543_v63  ;;  %v7755_v63 = vld [vmem:[#allocation105_spill] sm:$0xff] }
 0x3d8   : > { %2214 = vperm.xlu1 %4381, %v4532_v28   ;;  %v1517_v1 = vmul.f32 1.442695, %v7747_v33  ;;  %v7756_v33 = vld [vmem:[#allocation79_spill] sm:$0xff] }
 0x3da   : > { %v1986_v46 = vpop.xlane.xlu1 %1985  ;;  %v6768_v45 = vpop.eup %4545  ;;  %4553 = vpow2.f32 %v1517_v1  ;;  %v7757_v1 = vld [vmem:[#allocation80_spill] sm:$0xff] }
 0x3db   : > { %v2070_v39 = vadd.f32 %v1986_v46, %v1942_v37  ;;  %v2010_v48 = vpop.xlane.xlu2 %2009  ;;  %v4548_v12 = vpop.eup %4547  ;;  %4555 = vpow2.f32 %v1533_v3  ;;  %v7749_v37 = vld [vmem:[#allocation104_spill] sm:$0xff] }
 0x3dc   : > { %v2078_v21 = vadd.f32 %v2010_v48, %v1950_v57  ;;  %v2016_v34 = vpop.xlane.xlu0 %2015  ;;  %v4550_v0 = vpop.eup %4549  ;;  %v1482_v46 = vsub.f32 %v7750_v23, %v7749_v37  ;;  %v1948_v57 = vmul.f32 %v4548_v12, %v1916_v30 }
 0x3dd   : > { %2103 = vst.msk [vmem:[#allocation3 + $0x28] sm:$0xff] %vm2097_vm14, %v2070_v39  ;;  %v2080_v41 = vadd.f32 %v2016_v34, %v1952_v5  ;;  %2269 = vperm.xlu0 %4380, %v6752_v54   ;;  %v2503_v28 = vpop.f32.mrf.mxu0  ;;  %v1956_v13 = vmul.f32 %v4550_v0, %v1924_v36  ;;  %v7753_v39 = vsub.f32 %v7751_v56, %v7752_v2  ;;  %v6785_v5 = vpop.f32.mrf.mxu2  ;;  %v7759_v2 = vld [vmem:[#allocation82_spill] sm:$0xff] }
 0x3de   : > { %2111 = vst.msk [vmem:[#allocation3 + $0x68] sm:$0xff] %vm2097_vm14, %v2078_v21  ;;  %2204 = vperm.xlu2 %4382, %v4542_v4   ;;  %v2592_v16 = vpop.f32.mrf.mxu1  ;;  %v1958_v4 = vmul.f32 %v6752_v54, %v1926_v8  ;;  %v4552_v61 = vpop.eup %4551 }
 0x3df   : > { %2113 = vst.msk [vmem:[#allocation3 + $0x78] sm:$0xff] %vm2097_vm14, %v2080_v41  ;;  %v6760_v18 = vadd.f32 %v2592_v16, %v2503_v28  ;;  %v1523_v48 = vmul.f32 1.442695, %v7753_v39  ;;  %v6788_v41 = vpop.f32.mrf.mxu3  ;;  %v1539_v16 = vmul.f32 1.442695, %v1482_v46  ;;  %v7760_v39 = vld [vmem:[#allocation83_spill] sm:$0xff] }
 0x3e0   : > { %2229 = vperm.xlu1 %4381, %v4538_v25   ;;  %v7748_v25 = vld [vmem:[#allocation107_spill] sm:$0xff]  ;;  %v4554_v35 = vpop.eup %4553 }
 0x3e1   : > { %v1487_v26 = vsub.f32 %v7748_v25, %v6346_v49  ;;  %v4556_v14 = vpop.eup %4555 }
 0x3e2   : > { %v1995_v55 = vpop.xlane.xlu1 %1994  ;;  %v1959_v6 = vmul.f32 %v4556_v14, %v1927_v43 }
 0x3e3   : > { %v2073_v7 = vadd.f32 %v1995_v55, %v1945_v42  ;;  %v2019_v9 = vpop.xlane.xlu2 %2018  ;;  %v1549_v15 = vmul.f32 1.442695, %v1487_v26  ;;  %v7754_v42 = vld [vmem:[#allocation106_spill] sm:$0xff] }
 0x3e4   : > { %v2081_v20 = vadd.f32 %v2019_v9, %v1953_v11  ;;  %v2025_v59 = vpop.xlane.xlu0 %2024  ;;  %v1485_v55 = vsub.f32 %v7755_v63, %v7754_v42  ;;  %v1951_v11 = vmul.f32 %v4554_v35, %v1919_v27  ;;  %v1935_v63 = vld [vmem:[#allocation3 + $0xf0] sm:$0xff] }
 0x3e5   : > { %2106 = vst.msk [vmem:[#allocation3 + $0x40] sm:$0xff] %vm2097_vm14, %v2073_v7  ;;  %v2083_v17 = vadd.f32 %v2025_v59, %v1955_v62  ;;  %2284 = vperm.xlu0 %4380, %v6768_v45   ;;  %v6772_v53 = vpop.f32.mrf.mxu0  ;;  %4557 = vpow2.f32 %v1549_v15  ;;  %v7758_v7 = vsub.f32 %v7756_v33, %v7757_v1  ;;  %v1932_v15 = vld [vmem:[#allocation3 + $0xd8] sm:$0xff] }
 0x3e6   : > { %2114 = vst.msk [vmem:[#allocation3 + $0x80] sm:$0xff] %vm2097_vm14, %v2081_v20  ;;  %2219 = vperm.xlu2 %4382, %v4548_v12   ;;  %v6777_v31 = vpop.f32.mrf.mxu1  ;;  %4559 = vpow2.f32 %v1523_v48  ;;  %v1961_v12 = vmul.f32 %v6768_v45, %v1929_v51  ;;  %v1922_v45 = vld [vmem:[#allocation3 + $0x88] sm:$0xff]  ;;  %v7761_v48 = vsub.f32 %v7759_v2, %v7760_v39  ;;  %v7763_v33 = vld [vmem:[#allocation88_spill] sm:$0xff] }
 0x3e7   : > { %2116 = vst.msk [vmem:[#allocation3 + $0x90] sm:$0xff] %vm2097_vm14, %v2083_v17  ;;  %4561 = vpow2.f32 %v1539_v16  ;;  %v1529_v9 = vmul.f32 1.442695, %v7758_v7 }
 0x3e8   : > { %2244 = vperm.xlu1 %4381, %v4544_v40  }
 0x3e9   : > { %4563 = vpow2.f32 %v1529_v9 }
 0x3ea   : > { %v2004_v49 = vpop.xlane.xlu1 %2003 }
 0x3eb   : > { %v2076_v21 = vadd.f32 %v2004_v49, %v1948_v57  ;;  %v2028_v34 = vpop.xlane.xlu2 %2027  ;;  %v4558_v3 = vpop.eup %4557  ;;  %v1930_v57 = vld [vmem:[#allocation3 + $0xc8] sm:$0xff] }
 0x3ec   : > { %v2084_v28 = vadd.f32 %v2028_v34, %v1956_v13  ;;  %v2034_v50 = vpop.xlane.xlu0 %2033  ;;  %v4560_v30 = vpop.eup %4559 }
 0x3ed   : > { %2109 = vst.msk [vmem:[#allocation3 + $0x58] sm:$0xff] %vm2097_vm14, %v2076_v21  ;;  %v2086_v24 = vadd.f32 %v2034_v50, %v1958_v4  ;;  %2299 = vperm.xlu0 %4380, %v4552_v61   ;;  %v2508_v40 = vpop.f32.mrf.mxu0  ;;  %v4562_v46 = vpop.eup %4561  ;;  %v1954_v49 = vmul.f32 %v4560_v30, %v1922_v45  ;;  %v1535_v21 = vmul.f32 1.442695, %v7761_v48  ;;  %v1964_v50 = vmul.f32 %v4552_v61, %v1932_v15  ;;  %v1933_v61 = vld [vmem:[#allocation3 + $0xe0] sm:$0xff] }
 0x3ee   : > { %2117 = vst.msk [vmem:[#allocation3 + $0x98] sm:$0xff] %vm2097_vm14, %v2084_v28  ;;  %2234 = vperm.xlu2 %4382, %v4554_v35   ;;  %v2597_v19 = vpop.f32.mrf.mxu1  ;;  %v1962_v56 = vmul.f32 %v4562_v46, %v1930_v57 }
 0x3ef   : > { %2119 = vst.msk [vmem:[#allocation3 + $0xa8] sm:$0xff] %vm2097_vm14, %v2086_v24  ;;  %v6793_v54 = vadd.f32 %v2597_v19, %v2508_v40  ;;  %v4564_v40 = vpop.eup %4563 }
 0x3f0   : > { %2259 = vperm.xlu1 %4381, %v4550_v0   ;;  %v1545_v0 = vmul.f32 1.442695, %v1485_v55 }
 0x3f2   : > { %v2013_v60 = vpop.xlane.xlu1 %2012  ;;  %4565 = vpow2.f32 %v1545_v0 }
 0x3f3   : > { %v2079_v62 = vadd.f32 %v2013_v60, %v1951_v11  ;;  %v2037_v20 = vpop.xlane.xlu2 %2036  ;;  %v2536_v59 = vpop.f32.mrf.mxu2  ;;  %4567 = vpow2.f32 %v1535_v21 }
 0x3f4   : > { %v2087_v17 = vadd.f32 %v2037_v20, %v1959_v6  ;;  %v2625_v25 = vpop.f32.mrf.mxu3  ;;  %v2043_v26 = vpop.xlane.xlu0 %2042  ;;  %v7762_v6 = vld [vmem:[#allocation86_spill] sm:$0xff] }
 0x3f5   : > { %2112 = vst.msk [vmem:[#allocation3 + $0x70] sm:$0xff] %vm2097_vm14, %v2079_v62  ;;  %v6802_v36 = vadd.f32 %v2625_v25, %v2536_v59  ;;  %v2089_v8 = vadd.f32 %v2043_v26, %v1961_v12  ;;  %2314 = vperm.xlu0 %4380, %v4558_v3   ;;  %v6804_v37 = vpop.f32.mrf.mxu0  ;;  %v7764_v1 = vsub.f32 %v7762_v6, %v7763_v33 }
 0x3f6   : > { %2120 = vst.msk [vmem:[#allocation3 + $0xb0] sm:$0xff] %vm2097_vm14, %v2087_v17  ;;  %2249 = vperm.xlu2 %4382, %v4560_v30   ;;  %v6807_v23 = vpop.f32.mrf.mxu1  ;;  %v1967_v59 = vmul.f32 %v4558_v3, %v1935_v63  ;;  %v7765_v30 = vsub.f32 %v6454_v10, %v6457_v58  ;;  %v7766_v58 = vld [vmem:[#allocation90_spill] sm:$0xff] }
 0x3f7   : > { %2122 = vst.msk [vmem:[#allocation3 + $0xc0] sm:$0xff] %vm2097_vm14, %v2089_v8  ;;  %v1541_v7 = vmul.f32 1.442695, %v7764_v1  ;;  %v1934_v63 = vld [vmem:[#allocation3 + $0xe8] sm:$0xff] }
 0x3f8   : > { %2274 = vperm.xlu1 %4381, %v4556_v14   ;;  %v1925_v14 = vld [vmem:[#allocation3 + $0xa0] sm:$0xff]  ;;  %v4566_v43 = vpop.eup %4565  ;;  %v1551_v0 = vmul.f32 1.442695, %v7765_v30 }
 0x3f9   : > { %v1957_v55 = vmul.f32 %v4564_v40, %v1925_v14  ;;  %v1965_v60 = vmul.f32 %v4566_v43, %v1933_v61  ;;  %v4568_v26 = vpop.eup %4567  ;;  %4569 = vpow2.f32 %v1541_v7  ;;  %v2131_v61 = vld [vmem:[#allocation4] sm:$0xff] }
 0x3fa   : > { %v2022_v13 = vpop.xlane.xlu1 %2021  ;;  %4571 = vpow2.f32 %v1551_v0 }
 0x3fb   : > { %v2082_v34 = vadd.f32 %v2022_v13, %v1954_v49  ;;  %v2046_v4 = vpop.xlane.xlu2 %2045  ;;  %v2538_v28 = vpop.f32.mrf.mxu2  ;;  %v7767_v49 = vld [vmem:[#allocation92_spill] sm:$0xff] }
 0x3fc   : > { %v2090_v35 = vadd.f32 %v2046_v4, %v1962_v56  ;;  %v2627_v16 = vpop.f32.mrf.mxu3  ;;  %v2052_v24 = vpop.xlane.xlu0 %2051  ;;  %v7768_v13 = vsub.f32 %v7766_v58, %v7767_v49 }
 0x3fd   : > { %2115 = vst.msk [vmem:[#allocation3 + $0x88] sm:$0xff] %vm2097_vm14, %v2082_v34  ;;  %v6814_v19 = vadd.f32 %v2627_v16, %v2538_v28  ;;  %v2092_v27 = vadd.f32 %v2052_v24, %v1964_v50  ;;  %v6818_v51 = vpop.f32.mrf.mxu0  ;;  %v1931_v34 = vld [vmem:[#allocation3 + $0xd0] sm:$0xff] }
 0x3fe   : > { %2123 = vst.msk [vmem:[#allocation3 + $0xc8] sm:$0xff] %vm2097_vm14, %v2090_v35  ;;  %2264 = vperm.xlu2 %4382, %v4564_v40   ;;  %v6820_v42 = vpop.f32.mrf.mxu1  ;;  %v1547_v56 = vmul.f32 1.442695, %v7768_v13 }
 0x3ff   : > { %2125 = vst.msk [vmem:[#allocation3 + $0xd8] sm:$0xff] %vm2097_vm14, %v2092_v27  ;;  %v4570_v21 = vpop.eup %4569 }
 0x400   : > { %2289 = vperm.xlu1 %4381, %v4562_v46   ;;  %v1928_v46 = vld [vmem:[#allocation3 + $0xb8] sm:$0xff]  ;;  %v4572_v4 = vpop.eup %4571  ;;  %4573 = vpow2.f32 %v1547_v56  ;;  %v1963_v28 = vmul.f32 %v4570_v21, %v1931_v34 }
 0x401   : > { %v1960_v57 = vmul.f32 %v4568_v26, %v1928_v46  ;;  %v2132_v34 = vld [vmem:[#allocation4 + $0xd8] sm:$0xff] }
 0x402   : > { %v2031_v11 = vpop.xlane.xlu1 %2030 }
 0x403   : > { %v2085_v9 = vadd.f32 %v2031_v11, %v1957_v55  ;;  %v2055_v62 = vpop.xlane.xlu2 %2054  ;;  %v2541_v20 = vpop.f32.mrf.mxu2  ;;  %v2583_v11 = vadd.f32 %v6697_v32, %v6693_v44  ;;  %v2136_v44 = vld [vmem:[#allocation4 + $0x30] sm:$0xff]  ;;  %v1936_v32 = vld [vmem:[#allocation3 + $0xf8] sm:$0xff] }
 0x404   : > { %v2093_v12 = vadd.f32 %v2055_v62, %v1965_v60  ;;  %v2630_v17 = vpop.f32.mrf.mxu3  ;;  %v2061_v25 = vpop.xlane.xlu0 %2060  ;;  %v2133_v62 = vld [vmem:[#allocation4 + $0x18] sm:$0xff]  ;;  %v1968_v58 = vmul.f32 %v4572_v4, %v1936_v32 }
 0x405   : > { %2118 = vst.msk [vmem:[#allocation3 + $0xa0] sm:$0xff] %vm2097_vm14, %v2085_v9  ;;  %v6829_v8 = vadd.f32 %v2630_v17, %v2541_v20  ;;  %v2095_v45 = vadd.f32 %v2061_v25, %v1967_v59  ;;  %v6833_v3 = vpop.f32.mrf.mxu0 }
 0x406   : > { %2126 = vst.msk [vmem:[#allocation3 + $0xe0] sm:$0xff] %vm2097_vm14, %v2093_v12  ;;  %2279 = vperm.xlu2 %4382, %v4568_v26   ;;  %v6835_v15 = vpop.f32.mrf.mxu1  ;;  %v4574_v14 = vpop.eup %4573 }
 0x407   : > { %2128 = vst.msk [vmem:[#allocation3 + $0xf0] sm:$0xff] %vm2097_vm14, %v2095_v45  ;;  %v1966_v6 = vmul.f32 %v4574_v14, %v1934_v63  ;;  %v2596_v45 = vadd.f32 %v6777_v31, %v6772_v53  ;;  %v2603_v53 = vadd.f32 %v6820_v42, %v6818_v51  ;;  %v2142_v42 = vld [vmem:[#allocation4 + $0x60] sm:$0xff] }
 0x408   : > { %2304 = vperm.xlu1 %4381, %v4566_v43  }
 0x40a   : > { %v2040_v10 = vpop.xlane.xlu1 %2039 }
 0x40b   : > { %v2088_v2 = vadd.f32 %v2040_v10, %v1960_v57  ;;  %v6840_v39 = vpop.f32.mrf.mxu2 }
 0x40c   : > { %v6842_v48 = vpop.f32.mrf.mxu3 }
 0x40d   : > { %2121 = vst.msk [vmem:[#allocation3 + $0xb8] sm:$0xff] %vm2097_vm14, %v2088_v2  ;;  %v6845_v35 = vpop.f32.mrf.mxu0  ;;  %v2139_v2 = vld [vmem:[#allocation4 + $0x88] sm:$0xff] }
 0x40e   : > { %2294 = vperm.xlu2 %4382, %v4570_v21   ;;  %v6847_v40 = vpop.f32.mrf.mxu1 }
 0x410   : > { %2319 = vperm.xlu1 %4381, %v4572_v4  }
 0x412   : > { %v2049_v50 = vpop.xlane.xlu1 %2048 }
 0x413   : > { %v2091_v16 = vadd.f32 %v2049_v50, %v1963_v28  ;;  %v2546_v24 = vpop.f32.mrf.mxu2  ;;  %v2130_v28 = vld [vmem:[#allocation4 + $0xb0] sm:$0xff] }
 0x414   : > { %v2635_v27 = vpop.f32.mrf.mxu3 }
 0x415   : > { %2124 = vst.msk [vmem:[#allocation3 + $0xd0] sm:$0xff] %vm2097_vm14, %v2091_v16  ;;  %v6850_v43 = vadd.f32 %v2635_v27, %v2546_v24  ;;  %v2521_v9 = vpop.f32.mrf.mxu0 }
 0x416   : > { %2309 = vperm.xlu2 %4382, %v4574_v14   ;;  %v2610_v20 = vpop.f32.mrf.mxu1 }
 0x417   : > { %v2170_v55 = vpop.permute.xlu0 %2169 }
 0x418   : > { %v2323_v60 = vmul.f32 %v2170_v55, %v2131_v61 }
 0x41a   : > { %v2661_v33 = vadd.f32 %v2583_v11, %v2323_v60  ;;  %v2058_v1 = vpop.xlane.xlu1 %2057 }
 0x41b   : > { %v2094_v7 = vadd.f32 %v2058_v1, %v1966_v6  ;;  %v6855_v59 = vpop.f32.mrf.mxu2  ;;  %v2135_v6 = vld [vmem:[#allocation4 + $0x68] sm:$0xff] }
 0x41c   : > { %2693 = vst [vmem:[#allocation4] sm:$0xff] %v2661_v33  ;;  %v6857_v12 = vpop.f32.mrf.mxu3  ;;  %v2611_v33 = vadd.f32 %v2610_v20, %v2521_v9  ;;  %v2138_v20 = vld [vmem:[#allocation4 + $0x80] sm:$0xff] }
 0x41d   : > { %2127 = vst.msk [vmem:[#allocation3 + $0xe8] sm:$0xff] %vm2097_vm14, %v2094_v7  ;;  %v6860_v30 = vpop.f32.mrf.mxu0  ;;  %v2134_v7 = vld [vmem:[#allocation4 + $0x50] sm:$0xff] }
 0x41e   : > { %v6864_v46 = vpop.f32.mrf.mxu1 }
 0x41f   : > { %v2180_v17 = vpop.permute.xlu0 %2179 }
 0x420   : > { %v2325_v25 = vmul.f32 %v2180_v17, %v2133_v62 }
 0x422   : > { %v2663_v26 = vadd.f32 %v6727_v38, %v2325_v25 }
 0x423   : > { %v6866_v57 = vpop.f32.mrf.mxu2 }
 0x424   : > { %2695 = vst [vmem:[#allocation4 + $0x18] sm:$0xff] %v2663_v26  ;;  %v6868_v49 = vpop.f32.mrf.mxu3 }
 0x425   : > { %v6873_v50 = vpop.f32.mrf.mxu0 }
 0x426   : > { %v6877_v61 = vpop.f32.mrf.mxu1 }
 0x427   : > { %v2195_v0 = vpop.permute.xlu0 %2194 }
 0x428   : > { %v2328_v10 = vmul.f32 %v2195_v0, %v2136_v44 }
 0x429   : > { %v2064_v13 = vpop.xlane.xlu2 %2063 }
 0x42a   : > { %v2666_v56 = vadd.f32 %v2596_v45, %v2328_v10  ;;  %v2096_v38 = vadd.f32 %v2064_v13, %v1968_v58  ;;  %v2145_v58 = vld [vmem:[#allocation4 + $0x78] sm:$0xff] }
 0x42b   : > { %v6875_v4 = vpop.f32.mrf.mxu2 }
 0x42c   : > { %2698 = vst [vmem:[#allocation4 + $0x30] sm:$0xff] %v2666_v56  ;;  %v6879_v63 = vpop.f32.mrf.mxu3 }
 0x42d   : > { %2129 = vst.msk [vmem:[#allocation3 + $0xf8] sm:$0xff] %vm2097_vm14, %v2096_v38  ;;  %v2528_v32 = vpop.f32.mrf.mxu0  ;;  %v2137_v38 = vld [vmem:[#allocation4 + $0x48] sm:$0xff] }
 0x42f   : > { %v2210_v21 = vpop.permute.xlu0 %2209 }
 0x430   : > { %v2331_v31 = vmul.f32 %v2210_v21, %v2139_v2  ;;  %v2601_v21 = vadd.f32 %v6807_v23, %v6804_v37  ;;  %v2608_v37 = vadd.f32 %v6847_v40, %v6845_v35  ;;  %v2143_v40 = vld [vmem:[#allocation4 + $0xf0] sm:$0xff] }
 0x431   : > { %v2175_v16 = vpop.permute.xlu2 %2174 }
 0x432   : > { %v2669_v24 = vadd.f32 %v2603_v53, %v2331_v31  ;;  %v2324_v27 = vmul.f32 %v2175_v16, %v2132_v34  ;;  %v2165_v14 = vpop.permute.xlu1 %2164  ;;  %v2148_v16 = vld [vmem:[#allocation4 + $0x40] sm:$0xff] }
 0x433   : > { %v2322_v55 = vmul.f32 %v2165_v14, %v2130_v28  ;;  %v6883_v0 = vpop.f32.mrf.mxu2 }
 0x434   : > { %2701 = vst [vmem:[#allocation4 + $0x88] sm:$0xff] %v2669_v24  ;;  %v2662_v11 = vadd.f32 %v6711_v47, %v2324_v27  ;;  %v6886_v45 = vpop.f32.mrf.mxu3 }
 0x435   : > { %v2660_v51 = vadd.f32 %v6481_v22, %v2322_v55  ;;  %v2617_v22 = vpop.f32.mrf.mxu1  ;;  %v2141_v55 = vld [vmem:[#allocation4 + $0xb8] sm:$0xff] }
 0x436   : > { %2694 = vst [vmem:[#allocation4 + $0xd8] sm:$0xff] %v2662_v11  ;;  %v2618_v13 = vadd.f32 %v2617_v22, %v2528_v32 }
 0x437   : > { %2692 = vst [vmem:[#allocation4 + $0xb0] sm:$0xff] %v2660_v51  ;;  %v2225_v60 = vpop.permute.xlu0 %2224  ;;  %v2140_v51 = vld [vmem:[#allocation4 + $0xe8] sm:$0xff] }
 0x438   : > { %v2334_v1 = vmul.f32 %v2225_v60, %v2142_v42 }
 0x439   : > { %v2190_v62 = vpop.permute.xlu2 %2189 }
 0x43a   : > { %v2672_v17 = vadd.f32 %v2611_v33, %v2334_v1  ;;  %v2327_v25 = vmul.f32 %v2190_v62, %v2135_v6  ;;  %v2185_v26 = vpop.permute.xlu1 %2184  ;;  %v2151_v62 = vld [vmem:[#allocation4 + $0x90] sm:$0xff] }
 0x43b   : > { %v2326_v44 = vmul.f32 %v2185_v26, %v2134_v7  ;;  %v2558_v24 = vpop.f32.mrf.mxu2  ;;  %v2633_v26 = vadd.f32 %v6842_v48, %v6840_v39  ;;  %v2154_v48 = vld [vmem:[#allocation4 + $0xa8] sm:$0xff] }
 0x43c   : > { %2704 = vst [vmem:[#allocation4 + $0x60] sm:$0xff] %v2672_v17  ;;  %v2665_v47 = vadd.f32 %v6760_v18, %v2327_v25  ;;  %v2647_v27 = vpop.f32.mrf.mxu3  ;;  %v2144_v25 = vld [vmem:[#allocation4 + $0x8] sm:$0xff] }
 0x43d   : > { %v2664_v10 = vadd.f32 %v6744_v52, %v2326_v44 }
 0x43e   : > { %2697 = vst [vmem:[#allocation4 + $0x68] sm:$0xff] %v2665_v47 }
 0x43f   : > { %2696 = vst [vmem:[#allocation4 + $0x50] sm:$0xff] %v2664_v10  ;;  %v2240_v9 = vpop.permute.xlu0 %2239  ;;  %v2613_v10 = vadd.f32 %v6864_v46, %v6860_v30 }
 0x440   : > { %v2337_v56 = vmul.f32 %v2240_v9, %v2145_v58 }
 0x441   : > { %v2205_v2 = vpop.permute.xlu2 %2204 }
 0x442   : > { %v2675_v34 = vadd.f32 %v2618_v13, %v2337_v56  ;;  %v2330_v53 = vmul.f32 %v2205_v2, %v2138_v20  ;;  %v2200_v18 = vpop.permute.xlu1 %2199  ;;  %v2147_v13 = vld [vmem:[#allocation4 + $0x58] sm:$0xff]  ;;  %v2641_v56 = vadd.f32 %v6868_v49, %v6866_v57  ;;  %v2623_v2 = vadd.f32 %v6788_v41, %v6785_v5  ;;  %v2150_v49 = vld [vmem:[#allocation4 + $0xe0] sm:$0xff] }
 0x443   : > { %v2329_v31 = vmul.f32 %v2200_v18, %v2137_v38  ;;  %v6899_v35 = vpop.f32.mrf.mxu2 }
 0x444   : > { %2707 = vst [vmem:[#allocation4 + $0x78] sm:$0xff] %v2675_v34  ;;  %v2668_v28 = vadd.f32 %v2601_v21, %v2330_v53  ;;  %v6901_v44 = vpop.f32.mrf.mxu3 }
 0x445   : > { %v2667_v52 = vadd.f32 %v6793_v54, %v2329_v31  ;;  %v2606_v54 = vadd.f32 %v6835_v15, %v6833_v3  ;;  %v2616_v3 = vadd.f32 %v6877_v61, %v6873_v50  ;;  %v2146_v50 = vld [vmem:[#allocation4 + $0x38] sm:$0xff] }
 0x446   : > { %2700 = vst [vmem:[#allocation4 + $0x80] sm:$0xff] %v2668_v28 }
 0x447   : > { %2699 = vst [vmem:[#allocation4 + $0x48] sm:$0xff] %v2667_v52  ;;  %v2255_v14 = vpop.permute.xlu0 %2254  ;;  %v2157_v52 = vld [vmem:[#allocation4 + $0x28] sm:$0xff] }
 0x448   : > { %v2340_v11 = vmul.f32 %v2255_v14, %v2148_v16  ;;  %v2648_v16 = vadd.f32 %v2647_v27, %v2558_v24 }
 0x449   : > { %v2220_v42 = vpop.permute.xlu2 %2219 }
 0x44a   : > { %v2678_v23 = vadd.f32 %v6802_v36, %v2340_v11  ;;  %v2333_v60 = vmul.f32 %v2220_v42, %v2141_v55  ;;  %v2215_v6 = vpop.permute.xlu1 %2214  ;;  %v2149_v55 = vld [vmem:[#allocation4 + $0xc8] sm:$0xff] }
 0x44b   : > { %v2332_v33 = vmul.f32 %v2215_v6, %v2140_v51  ;;  %v2563_v34 = vpop.f32.mrf.mxu2  ;;  %v2160_v6 = vld [vmem:[#allocation4 + $0x20] sm:$0xff] }
 0x44c   : > { %2710 = vst [vmem:[#allocation4 + $0x40] sm:$0xff] %v2678_v23  ;;  %v2671_v1 = vadd.f32 %v2608_v37, %v2333_v60  ;;  %v2652_v53 = vpop.f32.mrf.mxu3 }
 0x44d   : > { %v2670_v7 = vadd.f32 %v2606_v54, %v2332_v33  ;;  %v2153_v33 = vld [vmem:[#allocation4 + $0xc0] sm:$0xff] }
 0x44e   : > { %2703 = vst [vmem:[#allocation4 + $0xb8] sm:$0xff] %v2671_v1  ;;  %v2152_v1 = vld [vmem:[#allocation4 + $0x70] sm:$0xff] }
 0x44f   : > { %2702 = vst [vmem:[#allocation4 + $0xe8] sm:$0xff] %v2670_v7  ;;  %v2270_v17 = vpop.permute.xlu0 %2269 }
 0x450   : > { %v2343_v36 = vmul.f32 %v2270_v17, %v2151_v62  ;;  %v2638_v62 = vadd.f32 %v6857_v12, %v6855_v59  ;;  %v2643_v59 = vadd.f32 %v6879_v63, %v6875_v4 }
 0x451   : > { %v2235_v32 = vpop.permute.xlu2 %2234 }
 0x452   : > { %v2681_v15 = vadd.f32 %v2633_v26, %v2343_v36  ;;  %v2336_v47 = vmul.f32 %v2235_v32, %v2144_v25  ;;  %v2230_v22 = vpop.permute.xlu1 %2229  ;;  %v2155_v32 = vld [vmem:[#allocation4 + $0xd0] sm:$0xff] }
 0x453   : > { %v2335_v58 = vmul.f32 %v2230_v22, %v2143_v40  ;;  %v2566_v23 = vpop.f32.mrf.mxu2  ;;  %v2156_v40 = vld [vmem:[#allocation4 + $0x10] sm:$0xff] }
 0x454   : > { %2713 = vst [vmem:[#allocation4 + $0x90] sm:$0xff] %v2681_v15  ;;  %v2674_v9 = vadd.f32 %v2616_v3, %v2336_v47  ;;  %v2655_v60 = vpop.f32.mrf.mxu3  ;;  %v2646_v15 = vadd.f32 %v6886_v45, %v6883_v0 }
 0x455   : > { %v2673_v39 = vadd.f32 %v2613_v10, %v2335_v58  ;;  %v2656_v24 = vadd.f32 %v2655_v60, %v2566_v23 }
 0x456   : > { %2706 = vst [vmem:[#allocation4 + $0x8] sm:$0xff] %v2674_v9  ;;  %v2159_v9 = vld [vmem:[#allocation4 + $0xf8] sm:$0xff] }
 0x457   : > { %2705 = vst [vmem:[#allocation4 + $0xf0] sm:$0xff] %v2673_v39  ;;  %v2285_v20 = vpop.permute.xlu0 %2284 }
 0x458   : > { %v2346_v38 = vmul.f32 %v2285_v20, %v2154_v48  ;;  %v2653_v48 = vadd.f32 %v2652_v53, %v2563_v34 }
 0x459   : > { %v2250_v61 = vpop.permute.xlu2 %2249 }
 0x45a   : > { %v2684_v21 = vadd.f32 %v2641_v56, %v2346_v38  ;;  %v2339_v30 = vmul.f32 %v2250_v61, %v2147_v13  ;;  %v2245_v46 = vpop.permute.xlu1 %2244  ;;  %v2651_v56 = vadd.f32 %v6901_v44, %v6899_v35 }
 0x45b   : > { %v2338_v18 = vmul.f32 %v2245_v46, %v2146_v50  ;;  %v2568_v4 = vpop.f32.mrf.mxu2  ;;  %v2161_v50 = vld [vmem:[#allocation4 + $0x98] sm:$0xff] }
 0x45c   : > { %2716 = vst [vmem:[#allocation4 + $0xa8] sm:$0xff] %v2684_v21  ;;  %v2677_v31 = vadd.f32 %v2623_v2, %v2339_v30  ;;  %v2657_v63 = vpop.f32.mrf.mxu3 }
 0x45d   : > { %v2676_v28 = vadd.f32 %v6586_v29, %v2338_v18  ;;  %v2658_v2 = vadd.f32 %v2657_v63, %v2568_v4 }
 0x45e   : > { %2709 = vst [vmem:[#allocation4 + $0x58] sm:$0xff] %v2677_v31 }
 0x45f   : > { %2708 = vst [vmem:[#allocation4 + $0x38] sm:$0xff] %v2676_v28  ;;  %v2300_v57 = vpop.permute.xlu0 %2299 }
 0x460   : > { %v2349_v14 = vmul.f32 %v2300_v57, %v2157_v52 }
 0x461   : > { %v2265_v11 = vpop.permute.xlu2 %2264 }
 0x462   : > { %v2687_v5 = vadd.f32 %v2648_v16, %v2349_v14  ;;  %v2342_v41 = vmul.f32 %v2265_v11, %v2150_v49  ;;  %v2260_v51 = vpop.permute.xlu1 %2259 }
 0x463   : > { %v2341_v42 = vmul.f32 %v2260_v51, %v2149_v55 }
 0x464   : > { %2719 = vst [vmem:[#allocation4 + $0x28] sm:$0xff] %v2687_v5  ;;  %v2680_v37 = vadd.f32 %v6829_v8, %v2342_v41 }
 0x465   : > { %v2679_v29 = vadd.f32 %v6814_v19, %v2341_v42 }
 0x466   : > { %2712 = vst [vmem:[#allocation4 + $0xe0] sm:$0xff] %v2680_v37 }
 0x467   : > { %2711 = vst [vmem:[#allocation4 + $0xc8] sm:$0xff] %v2679_v29  ;;  %v2315_v54 = vpop.permute.xlu0 %2314 }
 0x468   : > { %v2352_v27 = vmul.f32 %v2315_v54, %v2160_v6 }
 0x469   : > { %v2280_v7 = vpop.permute.xlu2 %2279 }
 0x46a   : > { %v2690_v17 = vadd.f32 %v2656_v24, %v2352_v27  ;;  %v2345_v25 = vmul.f32 %v2280_v7, %v2153_v33  ;;  %v2275_v26 = vpop.permute.xlu1 %2274 }
 0x46b   : > { %v2344_v8 = vmul.f32 %v2275_v26, %v2152_v1 }
 0x46c   : > { %2722 = vst [vmem:[#allocation4 + $0x20] sm:$0xff] %v2690_v17  ;;  %v2683_v36 = vadd.f32 %v2638_v62, %v2345_v25 }
 0x46d   : > { %v2682_v19 = vadd.f32 %v6850_v43, %v2344_v8  ;;  %v2158_v43 = vld [vmem:[#allocation4 + $0xa0] sm:$0xff] }
 0x46e   : > { %2715 = vst [vmem:[#allocation4 + $0xc0] sm:$0xff] %v2683_v36 }
 0x46f   : > { %2714 = vst [vmem:[#allocation4 + $0x70] sm:$0xff] %v2682_v19 }
 0x471   : > { %v2295_v3 = vpop.permute.xlu2 %2294 }
 0x472   : > { %v2348_v47 = vmul.f32 %v2295_v3, %v2156_v40  ;;  %v2290_v22 = vpop.permute.xlu1 %2289 }
 0x473   : > { %v2347_v12 = vmul.f32 %v2290_v22, %v2155_v32 }
 0x474   : > { %v2686_v10 = vadd.f32 %v2646_v15, %v2348_v47 }
 0x475   : > { %v2685_v58 = vadd.f32 %v2643_v59, %v2347_v12 }
 0x476   : > { %2718 = vst [vmem:[#allocation4 + $0x10] sm:$0xff] %v2686_v10 }
 0x477   : > { %2717 = vst [vmem:[#allocation4 + $0xd0] sm:$0xff] %v2685_v58 }
 0x479   : > { %v2310_v39 = vpop.permute.xlu2 %2309 }
 0x47a   : > { %v2351_v20 = vmul.f32 %v2310_v39, %v2159_v9  ;;  %v2305_v13 = vpop.permute.xlu1 %2304 }
 0x47b   : > { %v2350_v0 = vmul.f32 %v2305_v13, %v2158_v43 }
 0x47c   : > { %v2689_v45 = vadd.f32 %v2653_v48, %v2351_v20 }
 0x47d   : > { %v2688_v38 = vadd.f32 %v2651_v56, %v2350_v0 }
 0x47e   : > { %2721 = vst [vmem:[#allocation4 + $0xf8] sm:$0xff] %v2689_v45 }
 0x47f   : > { %2720 = vst [vmem:[#allocation4 + $0xa0] sm:$0xff] %v2688_v38 }
 0x482   : > { %v2320_v61 = vpop.permute.xlu1 %2319 }
 0x483   : > { %v2353_v21 = vmul.f32 %v2320_v61, %v2161_v50  ;;  %2759 = sbr.rel (%p4122_p11) target bundleno = 1652 (0x674), region = 79 }
 0x485   : > { %v2691_v30 = vadd.f32 %v2658_v2, %v2353_v21 }
 0x487   : > { %2723 = vst [vmem:[#allocation4 + $0x98] sm:$0xff] %v2691_v30 }
 0x488   : > { %v2796_v46 = vld [vmem:[#allocation3 + $0x20] sm:$0xff]  ;;  %v2794_v34 = vld [vmem:[#allocation3 + $0x10] sm:$0xff]  ;;  %v5052_v35 = vmov 0   ;;  %v2797_v28 = vld [vmem:[#allocation3 + $0x28] sm:$0xff] }
 0x489   : > { %v2792_v53 = vld [vmem:[#allocation3] sm:$0xff]  ;;  %4577 = vset.pattern.permute.xlu2 %v5052_v35  ;;  %4576 = vset.pattern.permute.xlu1 %v5052_v35  ;;  %v2828_v44 = vmax.f32 %v2796_v46, 1e-30  ;;  %v2826_v18 = vmax.f32 %v2794_v34, 1e-30  ;;  %v2795_v52 = vld [vmem:[#allocation3 + $0x18] sm:$0xff] }
 0x48a   : > { %v2824_v31 = vmax.f32 %v2792_v53, 1e-30  ;;  %4575 = vset.pattern.permute.xlu0 %v5052_v35  ;;  %v2793_v57 = vld [vmem:[#allocation3 + $0x8] sm:$0xff]  ;;  %v2829_v49 = vmax.f32 %v2797_v28, 1e-30  ;;  %v2800_v5 = vld [vmem:[#allocation3 + $0x40] sm:$0xff] }
 0x48b   : > { %4578 = vrcp.f32 %v2828_v44  ;;  %v2827_v16 = vmax.f32 %v2795_v52, 1e-30  ;;  %v2825_v14 = vmax.f32 %v2793_v57, 1e-30  ;;  %v2799_v51 = vld [vmem:[#allocation3 + $0x38] sm:$0xff]  ;;  %v2798_v42 = vld [vmem:[#allocation3 + $0x30] sm:$0xff] }
 0x48c   : > { %4580 = vrcp.f32 %v2826_v18  ;;  %v2832_v37 = vmax.f32 %v2800_v5, 1e-30  ;;  %v2831_v23 = vmax.f32 %v2799_v51, 1e-30  ;;  %v2830_v29 = vmax.f32 %v2798_v42, 1e-30 }
 0x48d   : > { %4582 = vrcp.f32 %v2824_v31  ;;  %v2803_v33 = vld [vmem:[#allocation3 + $0x58] sm:$0xff]  ;;  %v2802_v24 = vld [vmem:[#allocation3 + $0x50] sm:$0xff]  ;;  %v2801_v27 = vld [vmem:[#allocation3 + $0x48] sm:$0xff] }
 0x48e   : > { %4584 = vrcp.f32 %v2829_v49  ;;  %v2835_v1 = vmax.f32 %v2803_v33, 1e-30  ;;  %v2834_v7 = vmax.f32 %v2802_v24, 1e-30  ;;  %v2833_v17 = vmax.f32 %v2801_v27, 1e-30 }
 0x48f   : > { %4586 = vrcp.f32 %v2827_v16  ;;  %v2806_v8 = vld [vmem:[#allocation3 + $0x70] sm:$0xff]  ;;  %v2805_v36 = vld [vmem:[#allocation3 + $0x68] sm:$0xff]  ;;  %v2804_v19 = vld [vmem:[#allocation3 + $0x60] sm:$0xff] }
 0x490   : > { %4588 = vrcp.f32 %v2825_v14  ;;  %v2838_v40 = vmax.f32 %v2806_v8, 1e-30  ;;  %v2837_v32 = vmax.f32 %v2805_v36, 1e-30  ;;  %v2836_v15 = vmax.f32 %v2804_v19, 1e-30 }
 0x491   : > { %v4579_v55 = vpop.eup %4578  ;;  %4590 = vrcp.f32 %v2832_v37  ;;  %v2809_v59 = vld [vmem:[#allocation3 + $0x88] sm:$0xff]  ;;  %v2808_v12 = vld [vmem:[#allocation3 + $0x80] sm:$0xff]  ;;  %v2807_v10 = vld [vmem:[#allocation3 + $0x78] sm:$0xff] }
 0x492   : > { %v4581_v11 = vpop.eup %4580  ;;  %2910 = vperm.xlu2 %4577, %v4579_v55   ;;  %4592 = vrcp.f32 %v2831_v23  ;;  %v2841_v58 = vmax.f32 %v2809_v59, 1e-30  ;;  %v2840_v9 = vmax.f32 %v2808_v12, 1e-30  ;;  %v2839_v39 = vmax.f32 %v2807_v10, 1e-30 }
 0x493   : > { %v4583_v41 = vpop.eup %4582  ;;  %2900 = vperm.xlu1 %4576, %v4581_v11   ;;  %4594 = vrcp.f32 %v2830_v29  ;;  %v2812_v13 = vld [vmem:[#allocation3 + $0xa0] sm:$0xff]  ;;  %v2811_v56 = vld [vmem:[#allocation3 + $0x98] sm:$0xff]  ;;  %v2810_v0 = vld [vmem:[#allocation3 + $0x90] sm:$0xff] }
 0x494   : > { %2890 = vperm.xlu0 %4575, %v4583_v41   ;;  %v4585_v60 = vpop.eup %4584  ;;  %4596 = vrcp.f32 %v2835_v1  ;;  %v2844_v45 = vmax.f32 %v2812_v13, 1e-30  ;;  %v2843_v38 = vmax.f32 %v2811_v56, 1e-30  ;;  %v2842_v63 = vmax.f32 %v2810_v0, 1e-30 }
 0x495   : > { %v4587_v6 = vpop.eup %4586  ;;  %4598 = vrcp.f32 %v2834_v7  ;;  %v2815_v2 = vld [vmem:[#allocation3 + $0xb8] sm:$0xff]  ;;  %v2814_v21 = vld [vmem:[#allocation3 + $0xb0] sm:$0xff]  ;;  %v2813_v30 = vld [vmem:[#allocation3 + $0xa8] sm:$0xff] }
 0x496   : > { %v4589_v54 = vpop.eup %4588  ;;  %4600 = vrcp.f32 %v2833_v17  ;;  %v2847_v46 = vmax.f32 %v2815_v2, 1e-30  ;;  %v2846_v34 = vmax.f32 %v2814_v21, 1e-30  ;;  %v2845_v35 = vmax.f32 %v2813_v30, 1e-30 }
 0x497   : > { %v4591_v62 = vpop.eup %4590  ;;  %4602 = vrcp.f32 %v2838_v40  ;;  %v2818_v31 = vld [vmem:[#allocation3 + $0xd0] sm:$0xff]  ;;  %v2817_v28 = vld [vmem:[#allocation3 + $0xc8] sm:$0xff]  ;;  %v2816_v52 = vld [vmem:[#allocation3 + $0xc0] sm:$0xff] }
 0x498   : > { %v4593_v25 = vpop.eup %4592  ;;  %4604 = vrcp.f32 %v2837_v32  ;;  %v2850_v57 = vmax.f32 %v2818_v31, 1e-30  ;;  %v2849_v49 = vmax.f32 %v2817_v28, 1e-30  ;;  %v2848_v14 = vmax.f32 %v2816_v52, 1e-30 }
 0x499   : > { %v4595_v26 = vpop.eup %4594  ;;  %4606 = vrcp.f32 %v2836_v15  ;;  %v2821_v5 = vld [vmem:[#allocation3 + $0xe8] sm:$0xff]  ;;  %v2820_v41 = vld [vmem:[#allocation3 + $0xe0] sm:$0xff]  ;;  %v2819_v51 = vld [vmem:[#allocation3 + $0xd8] sm:$0xff] }
 0x49a   : > { %2915 = vperm.xlu2 %4577, %v4585_v60   ;;  %v4597_v3 = vpop.eup %4596  ;;  %4608 = vrcp.f32 %v2841_v58  ;;  %v2853_v42 = vmax.f32 %v2821_v5, 1e-30  ;;  %v2852_v37 = vmax.f32 %v2820_v41, 1e-30  ;;  %v2851_v60 = vmax.f32 %v2819_v51, 1e-30 }
 0x49b   : > { %2905 = vperm.xlu1 %4576, %v4587_v6   ;;  %v4599_v47 = vpop.eup %4598  ;;  %4610 = vrcp.f32 %v2840_v9  ;;  %v2822_v33 = vld [vmem:[#allocation3 + $0xf0] sm:$0xff]  ;;  %v2762_v19 = vld [vmem:[#allocation4 + $0xd8] sm:$0xff] }
 0x49c   : > { %2895 = vperm.xlu0 %4575, %v4589_v54   ;;  %v4601_v22 = vpop.eup %4600  ;;  %4612 = vrcp.f32 %v2839_v39  ;;  %v2823_v54 = vld [vmem:[#allocation3 + $0xf8] sm:$0xff]  ;;  %v2854_v1 = vmax.f32 %v2822_v33, 1e-30  ;;  %v2760_v40 = vld [vmem:[#allocation4 + $0xb0] sm:$0xff] }
 0x49d   : > { %v4603_v43 = vpop.eup %4602  ;;  %4614 = vrcp.f32 %v2844_v45  ;;  %v2855_v24 = vmax.f32 %v2823_v54, 1e-30  ;;  %v2764_v12 = vld [vmem:[#allocation4 + $0x50] sm:$0xff]  ;;  %v3272_v45 = vlaneseq  ;;  %v2771_v51 = vld [vmem:[#allocation4 + $0xb8] sm:$0xff] }
 0x49e   : > { %v4605_v48 = vpop.eup %4604  ;;  %4616 = vrcp.f32 %v2843_v38  ;;  %v2768_v38 = vld [vmem:[#allocation4 + $0x80] sm:$0xff]  ;;  %v3178_v2 = vld [vmem:[%s5269_s5 + $0x10] sm:$0xff] }
 0x49f   : > { %v4607_v20 = vpop.eup %4606  ;;  %4618 = vrcp.f32 %v2842_v63  ;;  %v2766_v28 = vld [vmem:[#allocation4 + $0x30] sm:$0xff] }
 0x4a0   : > { %v4609_v4 = vpop.eup %4608  ;;  %4620 = vrcp.f32 %v2847_v46 }
 0x4a1   : > { %v4611_v50 = vpop.eup %4610  ;;  %4622 = vrcp.f32 %v2846_v34  ;;  %v3176_v34 = vld [vmem:[%s5269_s5] sm:$0xff] }
 0x4a2   : > { %2930 = vperm.xlu2 %4577, %v4591_v62   ;;  %v4613_v61 = vpop.eup %4612  ;;  %4624 = vrcp.f32 %v2845_v35 }
 0x4a3   : > { %2925 = vperm.xlu1 %4576, %v4593_v25   ;;  %v4615_v53 = vpop.eup %4614  ;;  %4626 = vrcp.f32 %v2850_v57 }
 0x4a4   : > { %2920 = vperm.xlu0 %4575, %v4595_v26   ;;  %v4617_v44 = vpop.eup %4616  ;;  %4628 = vrcp.f32 %v2849_v49 }
 0x4a5   : > { %v4619_v18 = vpop.eup %4618  ;;  %4630 = vrcp.f32 %v2848_v14 }
 0x4a6   : > { %v4621_v16 = vpop.eup %4620  ;;  %4632 = vrcp.f32 %v2853_v42 }
 0x4a7   : > { %v4623_v55 = vpop.eup %4622  ;;  %4634 = vrcp.f32 %v2852_v37 }
 0x4a8   : > { %v4625_v11 = vpop.eup %4624  ;;  %4636 = vrcp.f32 %v2851_v60 }
 0x4a9   : > { %v4627_v23 = vpop.eup %4626  ;;  %4638 = vrcp.f32 %v2855_v24 }
 0x4aa   : > { %2945 = vperm.xlu2 %4577, %v4597_v3   ;;  %v4629_v29 = vpop.eup %4628  ;;  %4640 = vrcp.f32 %v2854_v1  ;;  %v2765_v3 = vld [vmem:[#allocation4 + $0x68] sm:$0xff] }
 0x4ab   : > { %2940 = vperm.xlu1 %4576, %v4599_v47   ;;  %v4631_v6 = vpop.eup %4630 }
 0x4ac   : > { %2935 = vperm.xlu0 %4575, %v4601_v22   ;;  %v4633_v27 = vpop.eup %4632 }
 0x4ad   : > { %v4635_v7 = vpop.eup %4634 }
 0x4ae   : > { %v4637_v62 = vpop.eup %4636 }
 0x4af   : > { %v4639_v17 = vpop.eup %4638 }
 0x4b0   : > { %v4641_v25 = vpop.eup %4640 }
 0x4b2   : > { %2960 = vperm.xlu2 %4577, %v4603_v43   ;;  %v2763_v43 = vld [vmem:[#allocation4 + $0x18] sm:$0xff] }
 0x4b3   : > { %2955 = vperm.xlu1 %4576, %v4605_v48   ;;  %v2761_v48 = vld [vmem:[#allocation4] sm:$0xff] }
 0x4b4   : > { %2950 = vperm.xlu0 %4575, %v4607_v20  }
 0x4ba   : > { %2975 = vperm.xlu2 %4577, %v4609_v4  }
 0x4bb   : > { %2970 = vperm.xlu1 %4576, %v4611_v50  }
 0x4bc   : > { %2965 = vperm.xlu0 %4575, %v4613_v61  }
 0x4c2   : > { %2990 = vperm.xlu2 %4577, %v4615_v53  }
 0x4c3   : > { %2985 = vperm.xlu1 %4576, %v4617_v44   ;;  %v6927_v44 = vand.u32 127, %v3272_v45 }
 0x4c4   : > { %2980 = vperm.xlu0 %4575, %v4619_v18   ;;  %v2767_v18 = vld [vmem:[#allocation4 + $0x48] sm:$0xff] }
 0x4c5   : > { %vm3274_vm14 = vcmp.lt.s32.totalorder %v6927_v44, 4 }
 0x4ca   : > { %3005 = vperm.xlu2 %4577, %v4621_v16  }
 0x4cb   : > { %3000 = vperm.xlu1 %4576, %v4623_v55  }
 0x4cc   : > { %2995 = vperm.xlu0 %4575, %v4625_v11  }
 0x4d2   : > { %3020 = vperm.xlu2 %4577, %v4627_v23  }
 0x4d3   : > { %3015 = vperm.xlu1 %4576, %v4629_v29  }
 0x4d4   : > { %3010 = vperm.xlu0 %4575, %v4631_v6   ;;  %v3179_v6 = vld [vmem:[%s5269_s5 + $0x18] sm:$0xff] }
 0x4da   : > { %3035 = vperm.xlu2 %4577, %v4633_v27   ;;  %v3177_v27 = vld [vmem:[%s5269_s5 + $0x8] sm:$0xff] }
 0x4db   : > { %3030 = vperm.xlu1 %4576, %v4635_v7  }
 0x4dc   : > { %3025 = vperm.xlu0 %4575, %v4637_v62  }
 0x4e3   : > { %3045 = vperm.xlu1 %4576, %v4639_v17   ;;  %v2770_v17 = vld [vmem:[#allocation4 + $0xe8] sm:$0xff] }
 0x4e4   : > { %3040 = vperm.xlu0 %4575, %v4641_v25  }
 0x4ec   : > { %v2911_v26 = vpop.permute.xlu2 %2910 }
 0x4ed   : > { %v3052_v39 = vmul.f32 %v2911_v26, %v2764_v12  ;;  %v3180_v12 = vld [vmem:[%s5269_s5 + $0x20] sm:$0xff] }
 0x4ef   : > { %v3084_v50 = vadd.f32 1e-06, %v3052_v39 }
 0x4f4   : > { %v2916_v8 = vpop.permute.xlu2 %2915 }
 0x4f5   : > { %v3053_v10 = vmul.f32 %v2916_v8, %v2765_v3  ;;  %v2769_v8 = vld [vmem:[#allocation4 + $0x88] sm:$0xff] }
 0x4f6   : > { %v3181_v3 = vld [vmem:[%s5269_s5 + $0x28] sm:$0xff] }
 0x4f7   : > { %v3085_v20 = vadd.f32 1e-06, %v3053_v10  ;;  %v2774_v10 = vld [vmem:[#allocation4 + $0x8] sm:$0xff] }
 0x4fc   : > { %v2931_v36 = vpop.permute.xlu2 %2930 }
 0x4fd   : > { %v3056_v53 = vmul.f32 %v2931_v36, %v2768_v38  ;;  %v3182_v38 = vld [vmem:[%s5269_s5 + $0x30] sm:$0xff] }
 0x4ff   : > { %v3088_v14 = vadd.f32 1e-06, %v3056_v53 }
 0x504   : > { %v2946_v9 = vpop.permute.xlu2 %2945 }
 0x505   : > { %v2901_v32 = vpop.permute.xlu1 %2900  ;;  %v3059_v7 = vmul.f32 %v2946_v9, %v2771_v51 }
 0x506   : > { %v3050_v15 = vmul.f32 %v2901_v32, %v2762_v19  ;;  %v2891_v47 = vpop.permute.xlu0 %2890 }
 0x507   : > { %v3048_v22 = vmul.f32 %v2891_v47, %v2760_v40 }
 0x508   : > { %v3082_v59 = vadd.f32 1e-06, %v3050_v15  ;;  %v3091_v15 = vadd.f32 1e-06, %v3059_v7 }
 0x509   : > { %v3080_v58 = vadd.f32 1e-06, %v3048_v22 }
 0x50a   : > { %4642 = vlog2.f32 %v3082_v59 }
 0x50b   : > { %4644 = vlog2.f32 %v3080_v58 }
 0x50c   : > { %4646 = vlog2.f32 %v3085_v20  ;;  %v2961_v57 = vpop.permute.xlu2 %2960 }
 0x50d   : > { %v2906_v13 = vpop.permute.xlu1 %2905 }
 0x50e   : > { %v3051_v56 = vmul.f32 %v2906_v13, %v2763_v43  ;;  %v2896_v0 = vpop.permute.xlu0 %2895 }
 0x50f   : > { %v3049_v4 = vmul.f32 %v2896_v0, %v2761_v48 }
 0x510   : > { %v4643_v63 = vpop.eup %4642  ;;  %v3083_v61 = vadd.f32 1e-06, %v3051_v56 }
 0x511   : > { %v4645_v21 = vpop.eup %4644  ;;  %v3117_v30 = vmul.f32 0.6931472, %v4643_v63  ;;  %v3081_v46 = vadd.f32 1e-06, %v3049_v4 }
 0x512   : > { %v3113_v35 = vmul.f32 0.6931472, %v4645_v21  ;;  %4648 = vlog2.f32 %v3083_v61  ;;  %v4647_v41 = vpop.eup %4646 }
 0x513   : > { %4650 = vlog2.f32 %v3081_v46  ;;  %v3210_v31 = vadd.f32 %v3178_v2, %v3117_v30  ;;  %v3123_v26 = vmul.f32 0.6931472, %v4647_v41  ;;  %v2773_v2 = vld [vmem:[#allocation4 + $0xf0] sm:$0xff]  ;;  %v2772_v30 = vld [vmem:[#allocation4 + $0x60] sm:$0xff] }
 0x514   : > { %4652 = vlog2.f32 %v3084_v50  ;;  %v3208_v52 = vadd.f32 %v3176_v34, %v3113_v35  ;;  %v2976_v58 = vpop.permute.xlu2 %2975  ;;  %v3062_v50 = vmul.f32 %v2961_v57, %v2774_v10  ;;  %v2777_v57 = vld [vmem:[#allocation4 + $0x58] sm:$0xff] }
 0x515   : > { %v2926_v49 = vpop.permute.xlu1 %2925  ;;  %v3242_v16 = vmul.f32 5.0, %v3210_v31  ;;  %4654 = vlog2.f32 %v3088_v14  ;;  %v3213_v13 = vadd.f32 %v3181_v3, %v3123_v26  ;;  %v3184_v31 = vld [vmem:[%s5269_s5 + $0x40] sm:$0xff]  ;;  %v3183_v14 = vld [vmem:[%s5269_s5 + $0x38] sm:$0xff] }
 0x516   : > { %v3055_v55 = vmul.f32 %v2926_v49, %v2767_v18  ;;  %v2921_v11 = vpop.permute.xlu0 %2920  ;;  %v3240_v5 = vmul.f32 5.0, %v3208_v52 }
 0x517   : > { %v3054_v42 = vmul.f32 %v2921_v11, %v2766_v28  ;;  %v6932_v37 = vsel %vm3274_vm14, %v3242_v16, -1e+30  ;;  %v3245_v34 = vmul.f32 5.0, %v3213_v13  ;;  %v3094_v28 = vadd.f32 1e-06, %v3062_v50 }
 0x518   : > { %v4649_v23 = vpop.eup %4648  ;;  %v3087_v60 = vadd.f32 1e-06, %v3055_v55  ;;  %3311 = vmax.xlane.f32.xlu1 %v6932_v37  ;;  %v6937_v29 = vsel %vm3274_vm14, %v3240_v5, -1e+30 }
 0x519   : > { %v4651_v54 = vpop.eup %4650  ;;  %v3119_v33 = vmul.f32 0.6931472, %v4649_v23  ;;  %v3086_v24 = vadd.f32 1e-06, %v3054_v42  ;;  %3307 = vmax.xlane.f32.xlu2 %v6937_v29  ;;  %v6963_v51 = vsel %vm3274_vm14, %v3245_v34, -1e+30 }
 0x51a   : > { %v4653_v1 = vpop.eup %4652  ;;  %v3115_v62 = vmul.f32 0.6931472, %v4651_v54  ;;  %v2778_v34 = vld [vmem:[#allocation4 + $0x40] sm:$0xff] }
 0x51b   : > { %4656 = vlog2.f32 %v3086_v24  ;;  %v3211_v25 = vadd.f32 %v3179_v6, %v3119_v33  ;;  %v3121_v19 = vmul.f32 0.6931472, %v4653_v1  ;;  %v4655_v39 = vpop.eup %4654  ;;  %v3185_v33 = vld [vmem:[%s5269_s5 + $0x48] sm:$0xff]  ;;  %v3065_v1 = vmul.f32 %v2976_v58, %v2777_v57 }
 0x51c   : > { %4658 = vlog2.f32 %v3087_v60  ;;  %v3209_v36 = vadd.f32 %v3177_v27, %v3115_v62  ;;  %v3129_v21 = vmul.f32 0.6931472, %v4655_v39  ;;  %v2991_v60 = vpop.permute.xlu2 %2990  ;;  %v2776_v62 = vld [vmem:[#allocation4 + $0x38] sm:$0xff] }
 0x51d   : > { %v2941_v40 = vpop.permute.xlu1 %2940  ;;  %v3243_v32 = vmul.f32 5.0, %v3211_v25  ;;  %v3212_v4 = vadd.f32 %v3180_v12, %v3121_v19  ;;  %4660 = vlog2.f32 %v3091_v15  ;;  %v2775_v25 = vld [vmem:[#allocation4 + $0x78] sm:$0xff]  ;;  %v3097_v3 = vadd.f32 1e-06, %v3065_v1  ;;  %v2780_v12 = vld [vmem:[#allocation4 + $0xe0] sm:$0xff] }
 0x51e   : > { %v3058_v47 = vmul.f32 %v2941_v40, %v2770_v17  ;;  %v2936_v22 = vpop.permute.xlu0 %2935  ;;  %v3241_v59 = vmul.f32 5.0, %v3209_v36  ;;  %v3216_v42 = vadd.f32 %v3184_v31, %v3129_v21 }
 0x51f   : > { %v3057_v9 = vmul.f32 %v2936_v22, %v2769_v8  ;;  %v6946_v43 = vsel %vm3274_vm14, %v3243_v32, -1e+30  ;;  %v3244_v18 = vmul.f32 5.0, %v3212_v4  ;;  %v3187_v32 = vld [vmem:[%s5269_s5 + $0x58] sm:$0xff]  ;;  %v3188_v4 = vld [vmem:[%s5269_s5 + $0x60] sm:$0xff] }
 0x520   : > { %v3090_v48 = vadd.f32 1e-06, %v3058_v47  ;;  %v6950_v20 = vsel %vm3274_vm14, %v3241_v59, -1e+30  ;;  %v3248_v8 = vmul.f32 5.0, %v3216_v42  ;;  %v3186_v59 = vld [vmem:[%s5269_s5 + $0x50] sm:$0xff] }
 0x521   : > { %v4657_v56 = vpop.eup %4656  ;;  %v3089_v0 = vadd.f32 1e-06, %v3057_v9  ;;  %3309 = vmax.xlane.f32.xlu0 %v6950_v20  ;;  %3313 = vmax.xlane.f32.xlu2 %v6946_v43  ;;  %v6969_v54 = vsel %vm3274_vm14, %v3244_v18, -1e+30 }
 0x522   : > { %v4659_v63 = vpop.eup %4658  ;;  %v3125_v61 = vmul.f32 0.6931472, %v4657_v56 }
 0x523   : > { %4662 = vlog2.f32 %v3089_v0  ;;  %v3127_v53 = vmul.f32 0.6931472, %v4659_v63  ;;  %v4661_v11 = vpop.eup %4660 }
 0x524   : > { %4664 = vlog2.f32 %v3090_v48  ;;  %v3214_v46 = vadd.f32 %v3182_v38, %v3125_v61  ;;  %v3135_v17 = vmul.f32 0.6931472, %v4661_v11  ;;  %v6981_v48 = vsel %vm3274_vm14, %v3248_v8, -1e+30  ;;  %v3006_v21 = vpop.permute.xlu2 %3005  ;;  %v2783_v11 = vld [vmem:[#allocation4 + $0xc0] sm:$0xff]  ;;  %v2782_v8 = vld [vmem:[#allocation4 + $0x70] sm:$0xff] }
 0x525   : > { %v2956_v35 = vpop.permute.xlu1 %2955  ;;  %v3215_v24 = vadd.f32 %v3183_v14, %v3127_v53  ;;  %4666 = vlog2.f32 %v3094_v28  ;;  %v3068_v61 = vmul.f32 %v2991_v60, %v2780_v12 }
 0x526   : > { %v3061_v52 = vmul.f32 %v2956_v35, %v2773_v2  ;;  %v2951_v49 = vpop.permute.xlu0 %2950  ;;  %v3246_v16 = vmul.f32 5.0, %v3214_v46  ;;  %v3219_v13 = vadd.f32 %v3187_v32, %v3135_v17 }
 0x527   : > { %v3060_v55 = vmul.f32 %v2951_v49, %v2772_v30  ;;  %v3247_v40 = vmul.f32 5.0, %v3215_v24  ;;  %v2779_v30 = vld [vmem:[#allocation4 + $0xc8] sm:$0xff]  ;;  %v3100_v49 = vadd.f32 1e-06, %v3068_v61 }
 0x528   : > { %v3093_v5 = vadd.f32 1e-06, %v3061_v52  ;;  %v6959_v41 = vsel %vm3274_vm14, %v3246_v16, -1e+30  ;;  %v3251_v35 = vmul.f32 5.0, %v3219_v13  ;;  %v3190_v52 = vld [vmem:[%s5269_s5 + $0x70] sm:$0xff] }
 0x529   : > { %v4663_v23 = vpop.eup %4662  ;;  %v3092_v6 = vadd.f32 1e-06, %v3060_v55  ;;  %3319 = vmax.xlane.f32.xlu1 %v6959_v41  ;;  %3317 = vmax.xlane.f32.xlu0 %v6963_v51  ;;  %v6987_v38 = vsel %vm3274_vm14, %v3247_v40, -1e+30  ;;  %v3189_v55 = vld [vmem:[%s5269_s5 + $0x68] sm:$0xff]  ;;  %v3192_v13 = vld [vmem:[%s5269_s5 + $0x80] sm:$0xff] }
 0x52a   : > { %v4665_v27 = vpop.eup %4664  ;;  %v3131_v7 = vmul.f32 0.6931472, %v4663_v23  ;;  %3315 = vmax.xlane.f32.xlu2 %v6969_v54 }
 0x52b   : > { %4668 = vlog2.f32 %v3092_v6  ;;  %v3133_v36 = vmul.f32 0.6931472, %v4665_v27  ;;  %v4667_v58 = vpop.eup %4666  ;;  %v6999_v6 = vsel %vm3274_vm14, %v3251_v35, -1e+30 }
 0x52c   : > { %4670 = vlog2.f32 %v3093_v5  ;;  %v3217_v26 = vadd.f32 %v3185_v33, %v3131_v7  ;;  %v3141_v46 = vmul.f32 0.6931472, %v4667_v58  ;;  %v3191_v7 = vld [vmem:[%s5269_s5 + $0x78] sm:$0xff] }
 0x52d   : > { %v2971_v19 = vpop.permute.xlu1 %2970  ;;  %v3218_v63 = vadd.f32 %v3186_v59, %v3133_v36  ;;  %4672 = vlog2.f32 %v3097_v3  ;;  %v3021_v3 = vpop.permute.xlu2 %3020  ;;  %v3193_v59 = vld [vmem:[%s5269_s5 + $0x88] sm:$0xff] }
 0x52e   : > { %v3064_v15 = vmul.f32 %v2971_v19, %v2776_v62  ;;  %v2966_v47 = vpop.permute.xlu0 %2965  ;;  %v3249_v22 = vmul.f32 5.0, %v3217_v26  ;;  %v3222_v33 = vadd.f32 %v3190_v52, %v3141_v46  ;;  %v2781_v19 = vld [vmem:[#allocation4 + $0x90] sm:$0xff] }
 0x52f   : > { %v3063_v10 = vmul.f32 %v2966_v47, %v2775_v25  ;;  %v3250_v28 = vmul.f32 5.0, %v3218_v63  ;;  %v3071_v25 = vmul.f32 %v3006_v21, %v2783_v11 }
 0x530   : > { %v3096_v9 = vadd.f32 1e-06, %v3064_v15  ;;  %v6977_v39 = vsel %vm3274_vm14, %v3249_v22, -1e+30  ;;  %v3254_v32 = vmul.f32 5.0, %v3222_v33 }
 0x531   : > { %v4669_v56 = vpop.eup %4668  ;;  %v3095_v0 = vadd.f32 1e-06, %v3063_v10  ;;  %3325 = vmax.xlane.f32.xlu1 %v6977_v39  ;;  %3323 = vmax.xlane.f32.xlu0 %v6981_v48  ;;  %v7005_v1 = vsel %vm3274_vm14, %v3250_v28, -1e+30  ;;  %v3103_v12 = vadd.f32 1e-06, %v3071_v25 }
 0x532   : > { %v4671_v50 = vpop.eup %4670  ;;  %v3137_v2 = vmul.f32 0.6931472, %v4669_v56  ;;  %3321 = vmax.xlane.f32.xlu2 %v6987_v38  ;;  %v2786_v56 = vld [vmem:[#allocation4 + $0x10] sm:$0xff]  ;;  %v7017_v61 = vsel %vm3274_vm14, %v3254_v32, -1e+30 }
 0x533   : > { %4674 = vlog2.f32 %v3095_v0  ;;  %v3139_v18 = vmul.f32 0.6931472, %v4671_v50  ;;  %v4673_v42 = vpop.eup %4672  ;;  %v2785_v28 = vld [vmem:[#allocation4 + $0xd0] sm:$0xff] }
 0x534   : > { %4676 = vlog2.f32 %v3096_v9  ;;  %v3220_v53 = vadd.f32 %v3188_v4, %v3137_v2  ;;  %v3147_v36 = vmul.f32 0.6931472, %v4673_v42 }
 0x535   : > { %v2986_v31 = vpop.permute.xlu1 %2985  ;;  %v3221_v62 = vadd.f32 %v3189_v55, %v3139_v18  ;;  %4678 = vlog2.f32 %v3100_v49  ;;  %v3074_v18 = vmul.f32 %v3021_v3, %v2786_v56  ;;  %v2784_v49 = vld [vmem:[#allocation4 + $0xa8] sm:$0xff] }
 0x536   : > { %v3067_v16 = vmul.f32 %v2986_v31, %v2779_v30  ;;  %v2981_v14 = vpop.permute.xlu0 %2980  ;;  %v3252_v57 = vmul.f32 5.0, %v3220_v53  ;;  %v3225_v2 = vadd.f32 %v3193_v59, %v3147_v36 }
 0x537   : > { %v3066_v5 = vmul.f32 %v2981_v14, %v2778_v34  ;;  %v3253_v22 = vmul.f32 5.0, %v3221_v62  ;;  %v3194_v34 = vld [vmem:[%s5269_s5 + $0x90] sm:$0xff]  ;;  %v3106_v42 = vadd.f32 1e-06, %v3074_v18  ;;  %v2789_v62 = vld [vmem:[#allocation4 + $0xf8] sm:$0xff] }
 0x538   : > { %v3099_v23 = vadd.f32 1e-06, %v3067_v16  ;;  %v6995_v60 = vsel %vm3274_vm14, %v3252_v57, -1e+30  ;;  %v3257_v14 = vmul.f32 5.0, %v3225_v2  ;;  %v3199_v2 = vld [vmem:[%s5269_s5 + $0xb8] sm:$0xff] }
 0x539   : > { %v4675_v24 = vpop.eup %4674  ;;  %v3098_v27 = vadd.f32 1e-06, %v3066_v5  ;;  %3331 = vmax.xlane.f32.xlu1 %v6995_v60  ;;  %3329 = vmax.xlane.f32.xlu0 %v6999_v6  ;;  %v7023_v46 = vsel %vm3274_vm14, %v3253_v22, -1e+30  ;;  %v3196_v5 = vld [vmem:[%s5269_s5 + $0xa0] sm:$0xff] }
 0x53a   : > { %v4677_v17 = vpop.eup %4676  ;;  %v3143_v26 = vmul.f32 0.6931472, %v4675_v24  ;;  %3327 = vmax.xlane.f32.xlu2 %v7005_v1  ;;  %v7035_v36 = vsel %vm3274_vm14, %v3257_v14, -1e+30 }
 0x53b   : > { %4680 = vlog2.f32 %v3098_v27  ;;  %v3145_v15 = vmul.f32 0.6931472, %v4677_v17  ;;  %v4679_v4 = vpop.eup %4678  ;;  %v3195_v27 = vld [vmem:[%s5269_s5 + $0x98] sm:$0xff] }
 0x53c   : > { %4682 = vlog2.f32 %v3099_v23  ;;  %v3223_v40 = vadd.f32 %v3191_v7, %v3143_v26  ;;  %v3153_v52 = vmul.f32 0.6931472, %v4679_v4  ;;  %v3036_v7 = vpop.permute.xlu2 %3035 }
 0x53d   : > { %v3001_v47 = vpop.permute.xlu1 %3000  ;;  %v3224_v53 = vadd.f32 %v3192_v13, %v3145_v15  ;;  %4684 = vlog2.f32 %v3103_v12  ;;  %v3197_v15 = vld [vmem:[%s5269_s5 + $0xa8] sm:$0xff]  ;;  %v3077_v59 = vmul.f32 %v3036_v7, %v2789_v62 }
 0x53e   : > { %v3070_v10 = vmul.f32 %v3001_v47, %v2782_v8  ;;  %v2996_v58 = vpop.permute.xlu0 %2995  ;;  %v3255_v9 = vmul.f32 5.0, %v3223_v40 }
 0x53f   : > { %v3069_v0 = vmul.f32 %v2996_v58, %v2781_v19  ;;  %v3256_v11 = vmul.f32 5.0, %v3224_v53  ;;  %v3228_v19 = vadd.f32 %v3196_v5, %v3153_v52 }
 0x540   : > { %v3102_v63 = vadd.f32 1e-06, %v3070_v10  ;;  %v7013_v50 = vsel %vm3274_vm14, %v3255_v9, -1e+30  ;;  %v2788_v10 = vld [vmem:[#allocation4 + $0xa0] sm:$0xff]  ;;  %v2787_v9 = vld [vmem:[#allocation4 + $0x28] sm:$0xff] }
 0x541   : > { %v4681_v21 = vpop.eup %4680  ;;  %v3101_v30 = vadd.f32 1e-06, %v3069_v0  ;;  %3337 = vmax.xlane.f32.xlu1 %v7013_v50  ;;  %3335 = vmax.xlane.f32.xlu0 %v7017_v61  ;;  %v7041_v3 = vsel %vm3274_vm14, %v3256_v11, -1e+30  ;;  %v3260_v56 = vmul.f32 5.0, %v3228_v19  ;;  %v3200_v11 = vld [vmem:[%s5269_s5 + $0xc0] sm:$0xff] }
 0x542   : > { %v4683_v35 = vpop.eup %4682  ;;  %v3149_v31 = vmul.f32 0.6931472, %v4681_v21  ;;  %3333 = vmax.xlane.f32.xlu2 %v7023_v46  ;;  %v3109_v21 = vadd.f32 1e-06, %v3077_v59  ;;  %v3202_v19 = vld [vmem:[%s5269_s5 + $0xd0] sm:$0xff] }
 0x543   : > { %4686 = vlog2.f32 %v3101_v30  ;;  %v3151_v57 = vmul.f32 0.6931472, %v4683_v35  ;;  %v4685_v25 = vpop.eup %4684  ;;  %v3198_v35 = vld [vmem:[%s5269_s5 + $0xb0] sm:$0xff] }
 0x544   : > { %4688 = vlog2.f32 %v3102_v63  ;;  %v3226_v16 = vadd.f32 %v3194_v34, %v3149_v31  ;;  %v3159_v58 = vmul.f32 0.6931472, %v4685_v25 }
 0x545   : > { %v3016_v55 = vpop.permute.xlu1 %3015  ;;  %v3227_v47 = vadd.f32 %v3195_v27, %v3151_v57  ;;  %4690 = vlog2.f32 %v3106_v42  ;;  %v2790_v27 = vld [vmem:[#allocation4 + $0x20] sm:$0xff] }
 0x546   : > { %v3073_v23 = vmul.f32 %v3016_v55, %v2785_v28  ;;  %v3011_v33 = vpop.permute.xlu0 %3010  ;;  %v3258_v24 = vmul.f32 5.0, %v3226_v16  ;;  %v3231_v16 = vadd.f32 %v3199_v2, %v3159_v58 }
 0x547   : > { %v3072_v17 = vmul.f32 %v3011_v33, %v2784_v49  ;;  %v3259_v63 = vmul.f32 5.0, %v3227_v47  ;;  %v7053_v49 = vsel %vm3274_vm14, %v3260_v56, -1e+30  ;;  %v2791_v33 = vld [vmem:[#allocation4 + $0x98] sm:$0xff]  ;;  %v3201_v47 = vld [vmem:[%s5269_s5 + $0xc8] sm:$0xff] }
 0x548   : > { %v3105_v26 = vadd.f32 1e-06, %v3073_v23  ;;  %v7031_v8 = vsel %vm3274_vm14, %v3258_v24, -1e+30  ;;  %v3263_v62 = vmul.f32 5.0, %v3231_v16  ;;  %v3204_v16 = vld [vmem:[%s5269_s5 + $0xe0] sm:$0xff] }
 0x549   : > { %v4687_v40 = vpop.eup %4686  ;;  %v3104_v32 = vadd.f32 1e-06, %v3072_v17  ;;  %3343 = vmax.xlane.f32.xlu1 %v7031_v8  ;;  %3341 = vmax.xlane.f32.xlu0 %v7035_v36  ;;  %v7059_v55 = vsel %vm3274_vm14, %v3259_v63, -1e+30 }
 0x54a   : > { %v4689_v22 = vpop.eup %4688  ;;  %v3155_v12 = vmul.f32 0.6931472, %v4687_v40  ;;  %3339 = vmax.xlane.f32.xlu2 %v7041_v3  ;;  %v7071_v58 = vsel %vm3274_vm14, %v3263_v62, -1e+30 }
 0x54b   : > { %4692 = vlog2.f32 %v3104_v32  ;;  %v3157_v0 = vmul.f32 0.6931472, %v4689_v22  ;;  %v4691_v31 = vpop.eup %4690 }
 0x54c   : > { %4694 = vlog2.f32 %v3105_v26  ;;  %v3229_v13 = vadd.f32 %v3197_v15, %v3155_v12  ;;  %v3165_v24 = vmul.f32 0.6931472, %v4691_v31  ;;  %v3205_v31 = vld [vmem:[%s5269_s5 + $0xe8] sm:$0xff] }
 0x54d   : > { %v3031_v4 = vpop.permute.xlu1 %3030  ;;  %v3230_v5 = vadd.f32 %v3198_v35, %v3157_v0  ;;  %4696 = vlog2.f32 %v3109_v21 }
 0x54e   : > { %v3076_v30 = vmul.f32 %v3031_v4, %v2788_v10  ;;  %v3026_v34 = vpop.permute.xlu0 %3025  ;;  %v3261_v53 = vmul.f32 5.0, %v3229_v13  ;;  %v3203_v4 = vld [vmem:[%s5269_s5 + $0xd8] sm:$0xff] }
 0x54f   : > { %v3075_v18 = vmul.f32 %v3026_v34, %v2787_v9  ;;  %v3262_v26 = vmul.f32 5.0, %v3230_v5  ;;  %v3234_v9 = vadd.f32 %v3202_v19, %v3165_v24  ;;  %v3207_v19 = vld [vmem:[%s5269_s5 + $0xf8] sm:$0xff] }
 0x550   : > { %v3108_v28 = vadd.f32 1e-06, %v3076_v30  ;;  %v7049_v52 = vsel %vm3274_vm14, %v3261_v53, -1e+30 }
 0x551   : > { %v4693_v14 = vpop.eup %4692  ;;  %v3107_v57 = vadd.f32 1e-06, %v3075_v18  ;;  %3349 = vmax.xlane.f32.xlu1 %v7049_v52  ;;  %3347 = vmax.xlane.f32.xlu0 %v7053_v49  ;;  %v7077_v0 = vsel %vm3274_vm14, %v3262_v26, -1e+30  ;;  %v3266_v53 = vmul.f32 5.0, %v3234_v9 }
 0x552   : > { %v4695_v42 = vpop.eup %4694  ;;  %v3161_v23 = vmul.f32 0.6931472, %v4693_v14  ;;  %3345 = vmax.xlane.f32.xlu2 %v7059_v55 }
 0x553   : > { %4698 = vlog2.f32 %v3107_v57  ;;  %v3163_v17 = vmul.f32 0.6931472, %v4695_v42  ;;  %v4697_v59 = vpop.eup %4696  ;;  %v7089_v57 = vsel %vm3274_vm14, %v3266_v53, -1e+30 }
 0x554   : > { %4700 = vlog2.f32 %v3108_v28  ;;  %v3232_v7 = vadd.f32 %v3200_v11, %v3161_v23  ;;  %v3171_v30 = vmul.f32 0.6931472, %v4697_v59  ;;  %v3206_v23 = vld [vmem:[%s5269_s5 + $0xf0] sm:$0xff] }
 0x555   : > { %v3046_v25 = vpop.permute.xlu1 %3045  ;;  %v3233_v63 = vadd.f32 %v3201_v47, %v3163_v17 }
 0x556   : > { %v3079_v40 = vmul.f32 %v3046_v25, %v2791_v33  ;;  %v3041_v32 = vpop.permute.xlu0 %3040  ;;  %v3264_v15 = vmul.f32 5.0, %v3232_v7  ;;  %v3237_v11 = vadd.f32 %v3205_v31, %v3171_v30 }
 0x557   : > { %v3078_v22 = vmul.f32 %v3041_v32, %v2790_v27  ;;  %v3265_v18 = vmul.f32 5.0, %v3233_v63 }
 0x558   : > { %v3111_v12 = vadd.f32 1e-06, %v3079_v40  ;;  %v7067_v10 = vsel %vm3274_vm14, %v3264_v15, -1e+30  ;;  %v3269_v62 = vmul.f32 5.0, %v3237_v11 }
 0x559   : > { %v4699_v13 = vpop.eup %4698  ;;  %v3110_v56 = vadd.f32 1e-06, %v3078_v22  ;;  %3355 = vmax.xlane.f32.xlu1 %v7067_v10  ;;  %3353 = vmax.xlane.f32.xlu0 %v7071_v58  ;;  %v7095_v42 = vsel %vm3274_vm14, %v3265_v18, -1e+30 }
 0x55a   : > { %v4701_v2 = vpop.eup %4700  ;;  %v3167_v21 = vmul.f32 0.6931472, %v4699_v13  ;;  %3351 = vmax.xlane.f32.xlu2 %v7077_v0  ;;  %v7106_v32 = vsel %vm3274_vm14, %v3269_v62, -1e+30 }
 0x55b   : > { %4702 = vlog2.f32 %v3110_v56  ;;  %v3169_v35 = vmul.f32 0.6931472, %v4701_v2 }
 0x55c   : > { %4704 = vlog2.f32 %v3111_v12  ;;  %v3235_v34 = vadd.f32 %v3203_v4, %v3167_v21 }
 0x55d   : > { %v3236_v33 = vadd.f32 %v3204_v16, %v3169_v35 }
 0x55e   : > { %v3267_v28 = vmul.f32 5.0, %v3235_v34 }
 0x55f   : > { %v3268_v25 = vmul.f32 5.0, %v3236_v33 }
 0x560   : > { %v7085_v14 = vsel %vm3274_vm14, %v3267_v28, -1e+30 }
 0x561   : > { %v4703_v5 = vpop.eup %4702  ;;  %3361 = vmax.xlane.f32.xlu1 %v7085_v14  ;;  %3359 = vmax.xlane.f32.xlu0 %v7089_v57  ;;  %v7112_v15 = vsel %vm3274_vm14, %v3268_v25, -1e+30 }
 0x562   : > { %v4705_v24 = vpop.eup %4704  ;;  %v3173_v27 = vmul.f32 0.6931472, %v4703_v5  ;;  %3357 = vmax.xlane.f32.xlu2 %v7095_v42 }
 0x563   : > { %v3175_v17 = vmul.f32 0.6931472, %v4705_v24 }
 0x564   : > { %v3238_v7 = vadd.f32 %v3206_v23, %v3173_v27 }
 0x565   : > { %v3239_v47 = vadd.f32 %v3207_v19, %v3175_v17 }
 0x566   : > { %v3270_v26 = vmul.f32 5.0, %v3238_v7 }
 0x567   : > { %v3271_v22 = vmul.f32 5.0, %v3239_v47 }
 0x568   : > { %v7102_v40 = vsel %vm3274_vm14, %v3270_v26, -1e+30 }
 0x569   : > { %3367 = vmax.xlane.f32.xlu1 %v7102_v40  ;;  %3365 = vmax.xlane.f32.xlu0 %v7106_v32  ;;  %v7117_v59 = vsel %vm3274_vm14, %v3271_v22, -1e+30 }
 0x56a   : > { %3363 = vmax.xlane.f32.xlu2 %v7112_v15 }
 0x572   : > { %3369 = vmax.xlane.f32.xlu2 %v7117_v59 }
 0x58b   : > { %v3312_v12 = vpop.xlane.xlu1 %3311 }
 0x58c   : > { %v3373_v9 = vsub.f32 %v6932_v37, %v3312_v12  ;;  %v3308_v13 = vpop.xlane.xlu2 %3307 }
 0x58d   : > { %v3371_v56 = vsub.f32 %v6937_v29, %v3308_v13 }
 0x58e   : > { %v3407_v4 = vmul.f32 1.442695, %v3373_v9 }
 0x58f   : > { %v3403_v63 = vmul.f32 1.442695, %v3371_v56 }
 0x590   : > { %4706 = vpow2.f32 %v3407_v4 }
 0x591   : > { %4708 = vpow2.f32 %v3403_v63 }
 0x594   : > { %v3310_v2 = vpop.xlane.xlu0 %3309  ;;  %v3314_v21 = vpop.xlane.xlu2 %3313 }
 0x595   : > { %v3372_v30 = vsub.f32 %v6950_v20, %v3310_v2  ;;  %v3374_v44 = vsub.f32 %v6946_v43, %v3314_v21 }
 0x596   : > { %v7124_v34 = vpop.eup %4706 }
 0x597   : > { %v7126_v53 = vpop.eup %4708  ;;  %v3405_v35 = vmul.f32 1.442695, %v3372_v30  ;;  %v3409_v18 = vmul.f32 1.442695, %v3374_v44  ;;  %3471 = vadd.xlane.f32.xlu2 %v7124_v34 }
 0x598   : > { %3467 = vadd.xlane.f32.xlu0 %v7126_v53 }
 0x599   : > { %4710 = vpow2.f32 %v3405_v35 }
 0x59a   : > { %4712 = vpow2.f32 %v3409_v18 }
 0x59c   : > { %v3320_v37 = vpop.xlane.xlu1 %3319  ;;  %v3318_v29 = vpop.xlane.xlu0 %3317 }
 0x59d   : > { %v3377_v31 = vsub.f32 %v6959_v41, %v3320_v37  ;;  %v3376_v20 = vsub.f32 %v6963_v51, %v3318_v29  ;;  %v3316_v28 = vpop.xlane.xlu2 %3315 }
 0x59e   : > { %v3375_v43 = vsub.f32 %v6969_v54, %v3316_v28 }
 0x59f   : > { %v7133_v16 = vpop.eup %4710  ;;  %v3415_v11 = vmul.f32 1.442695, %v3377_v31  ;;  %v3413_v5 = vmul.f32 1.442695, %v3376_v20 }
 0x5a0   : > { %v7135_v23 = vpop.eup %4712  ;;  %v3411_v33 = vmul.f32 1.442695, %v3375_v43  ;;  %3469 = vadd.xlane.f32.xlu1 %v7133_v16 }
 0x5a1   : > { %4714 = vpow2.f32 %v3415_v11  ;;  %3473 = vadd.xlane.f32.xlu0 %v7135_v23 }
 0x5a2   : > { %4716 = vpow2.f32 %v3413_v5 }
 0x5a3   : > { %4718 = vpow2.f32 %v3411_v33 }
 0x5a4   : > { %v3326_v41 = vpop.xlane.xlu1 %3325  ;;  %v3324_v24 = vpop.xlane.xlu0 %3323 }
 0x5a5   : > { %v3380_v51 = vsub.f32 %v6977_v39, %v3326_v41  ;;  %v3379_v54 = vsub.f32 %v6981_v48, %v3324_v24  ;;  %v3322_v27 = vpop.xlane.xlu2 %3321 }
 0x5a6   : > { %v3378_v7 = vsub.f32 %v6987_v38, %v3322_v27 }
 0x5a7   : > { %v7142_v62 = vpop.eup %4714  ;;  %v3421_v17 = vmul.f32 1.442695, %v3380_v51  ;;  %v3419_v25 = vmul.f32 1.442695, %v3379_v54 }
 0x5a8   : > { %v7144_v26 = vpop.eup %4716  ;;  %v3417_v19 = vmul.f32 1.442695, %v3378_v7 }
 0x5a9   : > { %v7146_v47 = vpop.eup %4718  ;;  %4720 = vpow2.f32 %v3421_v17  ;;  %3477 = vadd.xlane.f32.xlu2 %v7144_v26  ;;  %3479 = vadd.xlane.f32.xlu0 %v7142_v62 }
 0x5aa   : > { %4722 = vpow2.f32 %v3419_v25  ;;  %3475 = vadd.xlane.f32.xlu1 %v7146_v47 }
 0x5ab   : > { %4724 = vpow2.f32 %v3417_v19 }
 0x5ac   : > { %v3332_v39 = vpop.xlane.xlu1 %3331  ;;  %v3330_v48 = vpop.xlane.xlu0 %3329 }
 0x5ad   : > { %v3383_v38 = vsub.f32 %v6995_v60, %v3332_v39  ;;  %v3382_v22 = vsub.f32 %v6999_v6, %v3330_v48  ;;  %v3328_v12 = vpop.xlane.xlu2 %3327 }
 0x5ae   : > { %v3381_v9 = vsub.f32 %v7005_v1, %v3328_v12 }
 0x5af   : > { %v7154_v13 = vpop.eup %4720  ;;  %v3427_v56 = vmul.f32 1.442695, %v3383_v38  ;;  %v3425_v4 = vmul.f32 1.442695, %v3382_v22 }
 0x5b0   : > { %v7156_v63 = vpop.eup %4722  ;;  %v3423_v2 = vmul.f32 1.442695, %v3381_v9 }
 0x5b1   : > { %v7158_v21 = vpop.eup %4724  ;;  %4726 = vpow2.f32 %v3427_v56  ;;  %3483 = vadd.xlane.f32.xlu2 %v7156_v63  ;;  %3485 = vadd.xlane.f32.xlu0 %v7154_v13 }
 0x5b2   : > { %4728 = vpow2.f32 %v3425_v4  ;;  %3481 = vadd.xlane.f32.xlu1 %v7158_v21 }
 0x5b3   : > { %4730 = vpow2.f32 %v3423_v2 }
 0x5b4   : > { %v3338_v60 = vpop.xlane.xlu1 %3337  ;;  %v3336_v6 = vpop.xlane.xlu0 %3335 }
 0x5b5   : > { %v3386_v1 = vsub.f32 %v7013_v50, %v3338_v60  ;;  %v3385_v30 = vsub.f32 %v7017_v61, %v3336_v6  ;;  %v3334_v44 = vpop.xlane.xlu2 %3333 }
 0x5b6   : > { %v3384_v35 = vsub.f32 %v7023_v46, %v3334_v44 }
 0x5b7   : > { %v7166_v18 = vpop.eup %4726  ;;  %v3433_v37 = vmul.f32 1.442695, %v3386_v1  ;;  %v3431_v29 = vmul.f32 1.442695, %v3385_v30 }
 0x5b8   : > { %v7168_v31 = vpop.eup %4728  ;;  %v3429_v20 = vmul.f32 1.442695, %v3384_v35 }
 0x5b9   : > { %v7170_v28 = vpop.eup %4730  ;;  %4732 = vpow2.f32 %v3433_v37  ;;  %3489 = vadd.xlane.f32.xlu2 %v7168_v31  ;;  %3491 = vadd.xlane.f32.xlu0 %v7166_v18 }
 0x5ba   : > { %4734 = vpow2.f32 %v3431_v29  ;;  %3487 = vadd.xlane.f32.xlu1 %v7170_v28 }
 0x5bb   : > { %4736 = vpow2.f32 %v3429_v20 }
 0x5bc   : > { %v3344_v50 = vpop.xlane.xlu1 %3343  ;;  %v3342_v61 = vpop.xlane.xlu0 %3341 }
 0x5bd   : > { %v3389_v46 = vsub.f32 %v7031_v8, %v3344_v50  ;;  %v3388_v43 = vsub.f32 %v7035_v36, %v3342_v61  ;;  %v3340_v11 = vpop.xlane.xlu2 %3339 }
 0x5be   : > { %v3387_v5 = vsub.f32 %v7041_v3, %v3340_v11 }
 0x5bf   : > { %v7178_v33 = vpop.eup %4732  ;;  %v3439_v41 = vmul.f32 1.442695, %v3389_v46  ;;  %v3437_v24 = vmul.f32 1.442695, %v3388_v43 }
 0x5c0   : > { %v7180_v51 = vpop.eup %4734  ;;  %v3435_v54 = vmul.f32 1.442695, %v3387_v5 }
 0x5c1   : > { %v7182_v27 = vpop.eup %4736  ;;  %4738 = vpow2.f32 %v3439_v41  ;;  %3495 = vadd.xlane.f32.xlu2 %v7180_v51  ;;  %3497 = vadd.xlane.f32.xlu0 %v7178_v33 }
 0x5c2   : > { %4740 = vpow2.f32 %v3437_v24  ;;  %3493 = vadd.xlane.f32.xlu1 %v7182_v27 }
 0x5c3   : > { %4742 = vpow2.f32 %v3435_v54 }
 0x5c4   : > { %v3350_v8 = vpop.xlane.xlu1 %3349  ;;  %v3348_v36 = vpop.xlane.xlu0 %3347 }
 0x5c5   : > { %v3392_v3 = vsub.f32 %v7049_v52, %v3350_v8  ;;  %v3391_v7 = vsub.f32 %v7053_v49, %v3348_v36  ;;  %v3346_v17 = vpop.xlane.xlu2 %3345 }
 0x5c6   : > { %v3390_v25 = vsub.f32 %v7059_v55, %v3346_v17 }
 0x5c7   : > { %v7190_v19 = vpop.eup %4738  ;;  %v3445_v39 = vmul.f32 1.442695, %v3392_v3  ;;  %v3443_v48 = vmul.f32 1.442695, %v3391_v7 }
 0x5c8   : > { %v7192_v38 = vpop.eup %4740  ;;  %v3441_v22 = vmul.f32 1.442695, %v3390_v25 }
 0x5c9   : > { %v7194_v12 = vpop.eup %4742  ;;  %4744 = vpow2.f32 %v3445_v39  ;;  %3501 = vadd.xlane.f32.xlu2 %v7192_v38  ;;  %3503 = vadd.xlane.f32.xlu0 %v7190_v19 }
 0x5ca   : > { %4746 = vpow2.f32 %v3443_v48  ;;  %3499 = vadd.xlane.f32.xlu1 %v7194_v12 }
 0x5cb   : > { %4748 = vpow2.f32 %v3441_v22 }
 0x5cc   : > { %v3356_v52 = vpop.xlane.xlu1 %3355  ;;  %v3354_v49 = vpop.xlane.xlu0 %3353 }
 0x5cd   : > { %v3395_v55 = vsub.f32 %v7067_v10, %v3356_v52  ;;  %v3394_v9 = vsub.f32 %v7071_v58, %v3354_v49  ;;  %v3352_v56 = vpop.xlane.xlu2 %3351  ;;  %v7253_v49 = vstv %s4123_s26 }
 0x5ce   : > { %v3393_v4 = vsub.f32 %v7077_v0, %v3352_v56 }
 0x5cf   : > { %v7202_v2 = vpop.eup %4744  ;;  %v3451_v60 = vmul.f32 1.442695, %v3395_v55  ;;  %v3449_v6 = vmul.f32 1.442695, %v3394_v9 }
 0x5d0   : > { %v7204_v1 = vpop.eup %4746  ;;  %v3447_v30 = vmul.f32 1.442695, %v3393_v4 }
 0x5d1   : > { %v7206_v44 = vpop.eup %4748  ;;  %4750 = vpow2.f32 %v3451_v60  ;;  %3507 = vadd.xlane.f32.xlu2 %v7204_v1  ;;  %3509 = vadd.xlane.f32.xlu0 %v7202_v2 }
 0x5d2   : > { %4752 = vpow2.f32 %v3449_v6  ;;  %3505 = vadd.xlane.f32.xlu1 %v7206_v44 }
 0x5d3   : > { %4754 = vpow2.f32 %v3447_v30 }
 0x5d4   : > { %v3362_v10 = vpop.xlane.xlu1 %3361  ;;  %v3360_v58 = vpop.xlane.xlu0 %3359 }
 0x5d5   : > { %v3398_v0 = vsub.f32 %v7085_v14, %v3362_v10  ;;  %v3397_v35 = vsub.f32 %v7089_v57, %v3360_v58  ;;  %v3358_v37 = vpop.xlane.xlu2 %3357 }
 0x5d6   : > { %v3396_v29 = vsub.f32 %v7095_v42, %v3358_v37 }
 0x5d7   : > { %v7214_v20 = vpop.eup %4750  ;;  %v3457_v50 = vmul.f32 1.442695, %v3398_v0  ;;  %v3455_v61 = vmul.f32 1.442695, %v3397_v35 }
 0x5d8   : > { %v7216_v46 = vpop.eup %4752  ;;  %v3453_v43 = vmul.f32 1.442695, %v3396_v29 }
 0x5d9   : > { %v7218_v11 = vpop.eup %4754  ;;  %4756 = vpow2.f32 %v3457_v50  ;;  %3513 = vadd.xlane.f32.xlu2 %v7216_v46  ;;  %3515 = vadd.xlane.f32.xlu0 %v7214_v20 }
 0x5da   : > { %4758 = vpow2.f32 %v3455_v61  ;;  %3511 = vadd.xlane.f32.xlu1 %v7218_v11 }
 0x5db   : > { %4760 = vpow2.f32 %v3453_v43 }
 0x5dc   : > { %v3368_v14 = vpop.xlane.xlu1 %3367  ;;  %v3366_v57 = vpop.xlane.xlu0 %3365 }
 0x5dd   : > { %v3401_v42 = vsub.f32 %v7102_v40, %v3368_v14  ;;  %v3400_v5 = vsub.f32 %v7106_v32, %v3366_v57  ;;  %v3364_v41 = vpop.xlane.xlu2 %3363 }
 0x5de   : > { %v3399_v24 = vsub.f32 %v7112_v15, %v3364_v41 }
 0x5df   : > { %v7226_v54 = vpop.eup %4756  ;;  %v3463_v8 = vmul.f32 1.442695, %v3401_v42  ;;  %v3461_v36 = vmul.f32 1.442695, %v3400_v5 }
 0x5e0   : > { %v7228_v3 = vpop.eup %4758  ;;  %v3459_v7 = vmul.f32 1.442695, %v3399_v24 }
 0x5e1   : > { %v7230_v17 = vpop.eup %4760  ;;  %4762 = vpow2.f32 %v3463_v8  ;;  %3519 = vadd.xlane.f32.xlu2 %v7228_v3  ;;  %3521 = vadd.xlane.f32.xlu0 %v7226_v54 }
 0x5e2   : > { %4764 = vpow2.f32 %v3461_v36  ;;  %3517 = vadd.xlane.f32.xlu1 %v7230_v17 }
 0x5e3   : > { %4766 = vpow2.f32 %v3459_v7 }
 0x5e5   : > { %v3370_v40 = vpop.xlane.xlu2 %3369 }
 0x5e6   : > { %v3402_v32 = vsub.f32 %v7117_v59, %v3370_v40  ;;  %v7249_v59 = vshrl.u32 %v3272_v45, 7 }
 0x5e7   : > { %v7236_v15 = vpop.eup %4762 }
 0x5e8   : > { %v7238_v25 = vpop.eup %4764  ;;  %v3465_v39 = vmul.f32 1.442695, %v3402_v32  ;;  %v3599_v52 = vadd.s32 16, %v7249_v59  ;;  %v3630_v4 = vadd.s32 %v7253_v49, %v7249_v59  ;;  %v3598_v30 = vadd.s32 8, %v7249_v59 }
 0x5e9   : > { %v7240_v48 = vpop.eup %4766  ;;  %3525 = vadd.xlane.f32.xlu2 %v7238_v25  ;;  %3527 = vadd.xlane.f32.xlu0 %v7236_v15  ;;  %v3600_v0 = vadd.s32 24, %v7249_v59  ;;  %v3603_v14 = vadd.s32 48, %v7249_v59  ;;  %v3601_v5 = vadd.s32 32, %v7249_v59  ;;  %v3602_v36 = vadd.s32 40, %v7249_v59 }
 0x5ea   : > { %4768 = vpow2.f32 %v3465_v39  ;;  %3523 = vadd.xlane.f32.xlu1 %v7240_v48  ;;  %v3632_v56 = vadd.s32 %v7253_v49, %v3599_v52  ;;  %vm3662_vm4 = vcmp.lt.s32.totalorder %v3630_v4, 512  ;;  %v3631_v50 = vadd.s32 %v7253_v49, %v3598_v30 }
 0x5eb   : > { %v3633_v61 = vadd.s32 %v7253_v49, %v3600_v0  ;;  %v3636_v32 = vadd.s32 %v7253_v49, %v3603_v14  ;;  %v3635_v39 = vadd.s32 %v7253_v49, %v3602_v36 }
 0x5ec   : > { %vm3664_vm2 = vcmp.lt.s32.totalorder %v3632_v56, 512  ;;  %vm3663_vm5 = vcmp.lt.s32.totalorder %v3631_v50, 512 }
 0x5ed   : > { %vm3665_vm6 = vcmp.lt.s32.totalorder %v3633_v61, 512  ;;  %vm3668_vm7 = vcmp.lt.s32.totalorder %v3636_v32, 512  ;;  %vm3667_vm9 = vcmp.lt.s32.totalorder %v3635_v39, 512 }
 0x5f0   : > { %v7245_v22 = vpop.eup %4768 }
 0x5f2   : > { %3529 = vadd.xlane.f32.xlu1 %v7245_v22 }
 0x60a   : > { %v3472_v55 = vpop.xlane.xlu2 %3471 }
 0x60b   : > { %v3468_v9 = vpop.xlane.xlu0 %3467  ;;  %4770 = vrcp.f32 %v3472_v55  ;;  %v3606_v55 = vadd.s32 72, %v7249_v59 }
 0x60c   : > { %4772 = vrcp.f32 %v3468_v9 }
 0x611   : > { %v4771_v60 = vpop.eup %4770 }
 0x612   : > { %v4773_v45 = vpop.eup %4772  ;;  %v3565_v6 = vmul.f32 %v4771_v60, %v7124_v34  ;;  %v3604_v60 = vadd.s32 56, %v7249_v59 }
 0x613   : > { %v3563_v10 = vmul.f32 %v4773_v45, %v7126_v53  ;;  %v3470_v58 = vpop.xlane.xlu1 %3469 }
 0x614   : > { %v3696_v35 = vsel %vm3664_vm2, %v3565_v6, 0.0  ;;  %4774 = vrcp.f32 %v3470_v58  ;;  %v3474_v37 = vpop.xlane.xlu0 %3473  ;;  %v3605_v58 = vadd.s32 64, %v7249_v59  ;;  %v3637_v50 = vadd.s32 %v7253_v49, %v3604_v60 }
 0x615   : > { %v3694_v29 = vsel %vm3662_vm4, %v3563_v10, 0.0  ;;  %3728 = vst [vmem:[%s5289_s14 + $0x10] sm:$0xff] %v3696_v35  ;;  %4776 = vrcp.f32 %v3474_v37  ;;  %v3639_v37 = vadd.s32 %v7253_v49, %v3606_v55 }
 0x616   : > { %3726 = vst [vmem:[%s5289_s14] sm:$0xff] %v3694_v29  ;;  %v3638_v61 = vadd.s32 %v7253_v49, %v3605_v58  ;;  %vm3669_vm11 = vcmp.lt.s32.totalorder %v3637_v50, 512 }
 0x617   : > { %vm3671_vm10 = vcmp.lt.s32.totalorder %v3639_v37, 512 }
 0x618   : > { %vm3670_vm12 = vcmp.lt.s32.totalorder %v3638_v61, 512 }
 0x61a   : > { %v4775_v34 = vpop.eup %4774 }
 0x61b   : > { %v4777_v43 = vpop.eup %4776  ;;  %v3564_v53 = vmul.f32 %v4775_v34, %v7133_v16 }
 0x61c   : > { %v3566_v57 = vmul.f32 %v4777_v43, %v7135_v23  ;;  %v3480_v42 = vpop.xlane.xlu0 %3479  ;;  %v3478_v41 = vpop.xlane.xlu2 %3477  ;;  %v3634_v23 = vadd.s32 %v7253_v49, %v3601_v5  ;;  %v3609_v43 = vadd.s32 96, %v7249_v59 }
 0x61d   : > { %v3695_v24 = vsel %vm3663_vm5, %v3564_v53, 0.0  ;;  %4778 = vrcp.f32 %v3480_v42  ;;  %v3476_v8 = vpop.xlane.xlu1 %3475 }
 0x61e   : > { %3727 = vst [vmem:[%s5289_s14 + $0x8] sm:$0xff] %v3695_v24  ;;  %v4155_v7 = vpack.c.bf16 %v3695_v24, %v3694_v29  ;;  %v3697_v40 = vsel %vm3665_vm6, %v3566_v57, 0.0  ;;  %4780 = vrcp.f32 %v3476_v8  ;;  %vm3666_vm8 = vcmp.lt.s32.totalorder %v3634_v23, 512 }
 0x61f   : > { %3729 = vst [vmem:[%s5289_s14 + $0x18] sm:$0xff] %v3697_v40  ;;  %v4160_v16 = vpack.c.bf16 %v3697_v40, %v3696_v35  ;;  %4782 = vrcp.f32 %v3478_v41  ;;  %v3607_v57 = vadd.s32 80, %v7249_v59  ;;  %v3608_v8 = vadd.s32 88, %v7249_v59 }
 0x620   : > { %4156 = vst [vmem:[%s5291_s11] sm:$0xff] %v4155_v7   ;;  %v3642_v40 = vadd.s32 %v7253_v49, %v3609_v43  ;;  %v3613_v43 = vadd.s32 128, %v7249_v59 }
 0x621   : > { %4232 = vst [vmem:[%s5291_s11 + $0x8] sm:$0xff] %v4160_v16   ;;  %v3640_v32 = vadd.s32 %v7253_v49, %v3607_v57  ;;  %v3641_v39 = vadd.s32 %v7253_v49, %v3608_v8 }
 0x622   : > { %vm3674_vm15 = vcmp.lt.s32.totalorder %v3642_v40, 512 }
 0x623   : > { %v4779_v52 = vpop.eup %4778  ;;  %vm3672_vm0 = vcmp.lt.s32.totalorder %v3640_v32, 512  ;;  %vm3673_vm13 = vcmp.lt.s32.totalorder %v3641_v39, 512 }
 0x624   : > { %v4781_v9 = vpop.eup %4780  ;;  %v3569_v56 = vmul.f32 %v4779_v52, %v7142_v62  ;;  %v3486_v4 = vpop.xlane.xlu0 %3485 }
 0x625   : > { %v3484_v45 = vpop.xlane.xlu2 %3483  ;;  %v4783_v6 = vpop.eup %4782  ;;  %v3567_v30 = vmul.f32 %v4781_v9, %v7146_v47  ;;  %4784 = vrcp.f32 %v3486_v4  ;;  %v3610_v4 = vadd.s32 104, %v7249_v59 }
 0x626   : > { %v3482_v10 = vpop.xlane.xlu1 %3481  ;;  %v3700_v0 = vsel %vm3668_vm7, %v3569_v56, 0.0  ;;  %v3568_v35 = vmul.f32 %v4783_v6, %v7144_v26 }
 0x627   : > { %4786 = vrcp.f32 %v3482_v10  ;;  %3732 = vst [vmem:[%s5289_s14 + $0x30] sm:$0xff] %v3700_v0  ;;  %v3698_v62 = vsel %vm3666_vm8, %v3567_v30, 0.0  ;;  %v3611_v10 = vadd.s32 112, %v7249_v59  ;;  %v3643_v37 = vadd.s32 %v7253_v49, %v3610_v4 }
 0x628   : > { %4788 = vrcp.f32 %v3484_v45  ;;  %3730 = vst [vmem:[%s5289_s14 + $0x20] sm:$0xff] %v3698_v62  ;;  %v3699_v29 = vsel %vm3667_vm9, %v3568_v35, 0.0 }
 0x629   : > { %3731 = vst [vmem:[%s5289_s14 + $0x28] sm:$0xff] %v3699_v29  ;;  %v4165_v47 = vpack.c.bf16 %v3699_v29, %v3698_v62  ;;  %v3644_v29 = vadd.s32 %v7253_v49, %v3611_v10  ;;  %vm3675_vm1 = vcmp.lt.s32.totalorder %v3643_v37, 512 }
 0x62b   : > { %v4785_v34 = vpop.eup %4784  ;;  %4233 = vst [vmem:[%s5291_s11 + $0x10] sm:$0xff] %v4165_v47   ;;  %v3615_v47 = vadd.s32 144, %v7249_v59  ;;  %vm3676_vm14 = vcmp.lt.s32.totalorder %v3644_v29, 512 }
 0x62c   : > { %v3572_v53 = vmul.f32 %v4785_v34, %v7154_v13  ;;  %v3492_v14 = vpop.xlane.xlu0 %3491 }
 0x62d   : > { %v4787_v26 = vpop.eup %4786  ;;  %v3490_v42 = vpop.xlane.xlu2 %3489  ;;  %4790 = vrcp.f32 %v3492_v14 }
 0x62e   : > { %v4789_v5 = vpop.eup %4788  ;;  %v3570_v41 = vmul.f32 %v4787_v26, %v7158_v21  ;;  %v3488_v24 = vpop.xlane.xlu1 %3487  ;;  %v3703_v36 = vsel %vm3671_vm10, %v3572_v53, 0.0 }
 0x62f   : > { %v3571_v13 = vmul.f32 %v4789_v5, %v7156_v63  ;;  %4792 = vrcp.f32 %v3488_v24  ;;  %3735 = vst [vmem:[%s5289_s14 + $0x48] sm:$0xff] %v3703_v36  ;;  %v3612_v63 = vadd.s32 120, %v7249_v59  ;;  %v3648_v24 = vadd.s32 %v7253_v49, %v3615_v47 }
 0x630   : > { %v3701_v7 = vsel %vm3669_vm11, %v3570_v41, 0.0  ;;  %4794 = vrcp.f32 %v3490_v42  ;;  %v3614_v42 = vadd.s32 136, %v7249_v59 }
 0x631   : > { %3733 = vst [vmem:[%s5289_s14 + $0x38] sm:$0xff] %v3701_v7  ;;  %v4170_v16 = vpack.c.bf16 %v3701_v7, %v3700_v0  ;;  %v3702_v21 = vsel %vm3670_vm12, %v3571_v13, 0.0  ;;  %v3645_v35 = vadd.s32 %v7253_v49, %v3612_v63  ;;  %vm3680_vm2 = vcmp.lt.s32.totalorder %v3648_v24, 512 }
 0x632   : > { %3734 = vst [vmem:[%s5289_s14 + $0x40] sm:$0xff] %v3702_v21  ;;  %v4175_v23 = vpack.c.bf16 %v3703_v36, %v3702_v21  ;;  %v3646_v36 = vadd.s32 %v7253_v49, %v3613_v43  ;;  %v3647_v7 = vadd.s32 %v7253_v49, %v3614_v42 }
 0x633   : > { %4234 = vst [vmem:[%s5291_s11 + $0x18] sm:$0xff] %v4170_v16   ;;  %v4791_v52 = vpop.eup %4790  ;;  %vm3677_vm3 = vcmp.lt.s32.totalorder %v3645_v35, 512  ;;  %v3619_v35 = vadd.s32 176, %v7249_v59 }
 0x634   : > { %4235 = vst [vmem:[%s5291_s11 + $0x20] sm:$0xff] %v4175_v23   ;;  %v3575_v9 = vmul.f32 %v4791_v52, %v7166_v18  ;;  %v3498_v56 = vpop.xlane.xlu0 %3497  ;;  %vm3678_vm4 = vcmp.lt.s32.totalorder %v3646_v36, 512  ;;  %v3616_v23 = vadd.s32 152, %v7249_v59  ;;  %vm3679_vm5 = vcmp.lt.s32.totalorder %v3647_v7, 512 }
 0x635   : > { %v4793_v55 = vpop.eup %4792  ;;  %v3496_v60 = vpop.xlane.xlu2 %3495  ;;  %4796 = vrcp.f32 %v3498_v56  ;;  %v3652_v43 = vadd.s32 %v7253_v49, %v3619_v35  ;;  %v3623_v36 = vadd.s32 208, %v7249_v59 }
 0x636   : > { %v4795_v45 = vpop.eup %4794  ;;  %v3573_v6 = vmul.f32 %v4793_v55, %v7170_v28  ;;  %v3494_v30 = vpop.xlane.xlu1 %3493  ;;  %v3706_v58 = vsel %vm3674_vm15, %v3575_v9, 0.0  ;;  %v3617_v9 = vadd.s32 160, %v7249_v59 }
 0x637   : > { %v3574_v0 = vmul.f32 %v4795_v45, %v7168_v31  ;;  %4798 = vrcp.f32 %v3494_v30  ;;  %3738 = vst [vmem:[%s5289_s14 + $0x60] sm:$0xff] %v3706_v58  ;;  %vm3684_vm10 = vcmp.lt.s32.totalorder %v3652_v43, 512 }
 0x638   : > { %v3704_v18 = vsel %vm3672_vm0, %v3573_v6, 0.0  ;;  %4800 = vrcp.f32 %v3496_v60  ;;  %v3649_v6 = vadd.s32 %v7253_v49, %v3616_v23  ;;  %v3650_v30 = vadd.s32 %v7253_v49, %v3617_v9 }
 0x639   : > { %3736 = vst [vmem:[%s5289_s14 + $0x50] sm:$0xff] %v3704_v18  ;;  %v3705_v62 = vsel %vm3673_vm13, %v3574_v0, 0.0  ;;  %v3627_v23 = vadd.s32 240, %v7249_v59 }
 0x63a   : > { %3737 = vst [vmem:[%s5289_s14 + $0x58] sm:$0xff] %v3705_v62  ;;  %v4180_v28 = vpack.c.bf16 %v3705_v62, %v3704_v18  ;;  %vm3681_vm7 = vcmp.lt.s32.totalorder %v3649_v6, 512  ;;  %vm3682_vm8 = vcmp.lt.s32.totalorder %v3650_v30, 512 }
 0x63b   : > { %v4797_v50 = vpop.eup %4796  ;;  %v3660_v6 = vadd.s32 %v7253_v49, %v3627_v23 }
 0x63c   : > { %4236 = vst [vmem:[%s5291_s11 + $0x28] sm:$0xff] %v4180_v28   ;;  %v3578_v61 = vmul.f32 %v4797_v50, %v7178_v33  ;;  %v3504_v34 = vpop.xlane.xlu0 %3503  ;;  %v3620_v50 = vadd.s32 184, %v7249_v59 }
 0x63d   : > { %v4799_v31 = vpop.eup %4798  ;;  %v3502_v26 = vpop.xlane.xlu2 %3501  ;;  %4802 = vrcp.f32 %v3504_v34  ;;  %vm3692_vm13 = vcmp.lt.s32.totalorder %v3660_v6, 512 }
 0x63e   : > { %v4801_v53 = vpop.eup %4800  ;;  %v3576_v14 = vmul.f32 %v4799_v31, %v7182_v27  ;;  %v3500_v57 = vpop.xlane.xlu1 %3499  ;;  %v3709_v5 = vsel %vm3677_vm3, %v3578_v61, 0.0 }
 0x63f   : > { %v3577_v33 = vmul.f32 %v4801_v53, %v7180_v51  ;;  %4804 = vrcp.f32 %v3500_v57  ;;  %3741 = vst [vmem:[%s5289_s14 + $0x78] sm:$0xff] %v3709_v5  ;;  %v3618_v51 = vadd.s32 168, %v7249_v59  ;;  %v3653_v53 = vadd.s32 %v7253_v49, %v3620_v50 }
 0x640   : > { %v3707_v41 = vsel %vm3675_vm1, %v3576_v14, 0.0  ;;  %4806 = vrcp.f32 %v3502_v26 }
 0x641   : > { %3739 = vst [vmem:[%s5289_s14 + $0x68] sm:$0xff] %v3707_v41  ;;  %v4185_v8 = vpack.c.bf16 %v3707_v41, %v3706_v58  ;;  %v3708_v27 = vsel %vm3676_vm14, %v3577_v33, 0.0  ;;  %v3651_v60 = vadd.s32 %v7253_v49, %v3618_v51  ;;  %v3621_v58 = vadd.s32 192, %v7249_v59 }
 0x642   : > { %3740 = vst [vmem:[%s5289_s14 + $0x70] sm:$0xff] %v3708_v27  ;;  %v4190_v13 = vpack.c.bf16 %v3709_v5, %v3708_v27  ;;  %v3622_v33 = vadd.s32 200, %v7249_v59  ;;  %vm3685_vm11 = vcmp.lt.s32.totalorder %v3653_v53, 512 }
 0x643   : > { %4237 = vst [vmem:[%s5291_s11 + $0x30] sm:$0xff] %v4185_v8   ;;  %v4803_v40 = vpop.eup %4802  ;;  %vm3683_vm6 = vcmp.lt.s32.totalorder %v3651_v60, 512  ;;  %v3654_v61 = vadd.s32 %v7253_v49, %v3621_v58 }
 0x644   : > { %4238 = vst [vmem:[%s5291_s11 + $0x38] sm:$0xff] %v4190_v13   ;;  %v3581_v21 = vmul.f32 %v4803_v40, %v7190_v19  ;;  %v3510_v32 = vpop.xlane.xlu0 %3509 }
 0x645   : > { %v4805_v16 = vpop.eup %4804  ;;  %v3508_v39 = vpop.xlane.xlu2 %3507  ;;  %4808 = vrcp.f32 %v3510_v32  ;;  %vm3686_vm9 = vcmp.lt.s32.totalorder %v3654_v61, 512 }
 0x646   : > { %v4807_v52 = vpop.eup %4806  ;;  %v3579_v63 = vmul.f32 %v4805_v16, %v7194_v12  ;;  %v3506_v55 = vpop.xlane.xlu1 %3505  ;;  %v3712_v56 = vsel %vm3680_vm2, %v3581_v21, 0.0  ;;  %v3655_v16 = vadd.s32 %v7253_v49, %v3622_v33  ;;  %v3656_v21 = vadd.s32 %v7253_v49, %v3623_v36 }
 0x647   : > { %v3580_v4 = vmul.f32 %v4807_v52, %v7192_v38  ;;  %4810 = vrcp.f32 %v3506_v55  ;;  %3744 = vst [vmem:[%s5289_s14 + $0x90] sm:$0xff] %v3712_v56 }
 0x648   : > { %v3710_v19 = vsel %vm3678_vm4, %v3579_v63, 0.0  ;;  %4812 = vrcp.f32 %v3508_v39  ;;  %vm3687_vm15 = vcmp.lt.s32.totalorder %v3655_v16, 512  ;;  %v3625_v63 = vadd.s32 224, %v7249_v59 }
 0x649   : > { %3742 = vst [vmem:[%s5289_s14 + $0x80] sm:$0xff] %v3710_v19  ;;  %v3711_v45 = vsel %vm3679_vm5, %v3580_v4, 0.0  ;;  %vm3688_vm0 = vcmp.lt.s32.totalorder %v3656_v21, 512 }
 0x64a   : > { %3743 = vst [vmem:[%s5289_s14 + $0x88] sm:$0xff] %v3711_v45  ;;  %v4195_v12 = vpack.c.bf16 %v3711_v45, %v3710_v19  ;;  %v3626_v19 = vadd.s32 232, %v7249_v59  ;;  %v3658_v30 = vadd.s32 %v7253_v49, %v3625_v63 }
 0x64b   : > { %v4809_v10 = vpop.eup %4808 }
 0x64c   : > { %4239 = vst [vmem:[%s5291_s11 + $0x40] sm:$0xff] %v4195_v12   ;;  %v3584_v0 = vmul.f32 %v4809_v10, %v7202_v2  ;;  %v3516_v18 = vpop.xlane.xlu0 %3515  ;;  %v3659_v58 = vadd.s32 %v7253_v49, %v3626_v19  ;;  %vm3690_vm3 = vcmp.lt.s32.totalorder %v3658_v30, 512 }
 0x64d   : > { %v4811_v38 = vpop.eup %4810  ;;  %v3514_v62 = vpop.xlane.xlu2 %3513  ;;  %4814 = vrcp.f32 %v3516_v18  ;;  %v3628_v18 = vadd.s32 248, %v7249_v59 }
 0x64e   : > { %v4813_v37 = vpop.eup %4812  ;;  %v3582_v28 = vmul.f32 %v4811_v38, %v7206_v44  ;;  %v3512_v29 = vpop.xlane.xlu1 %3511  ;;  %v3715_v47 = vsel %vm3683_vm6, %v3584_v0, 0.0  ;;  %vm3691_vm1 = vcmp.lt.s32.totalorder %v3659_v58, 512 }
 0x64f   : > { %v3583_v2 = vmul.f32 %v4813_v37, %v7204_v1  ;;  %4816 = vrcp.f32 %v3512_v29  ;;  %3747 = vst [vmem:[%s5289_s14 + $0xa8] sm:$0xff] %v3715_v47  ;;  %v3624_v1 = vadd.s32 216, %v7249_v59 }
 0x650   : > { %v3713_v31 = vsel %vm3681_vm7, %v3582_v28, 0.0  ;;  %4818 = vrcp.f32 %v3514_v62 }
 0x651   : > { %3745 = vst [vmem:[%s5289_s14 + $0x98] sm:$0xff] %v3713_v31  ;;  %v4200_v34 = vpack.c.bf16 %v3713_v31, %v3712_v56  ;;  %v3714_v44 = vsel %vm3682_vm8, %v3583_v2, 0.0  ;;  %v3657_v40 = vadd.s32 %v7253_v49, %v3624_v1 }
 0x652   : > { %3746 = vst [vmem:[%s5289_s14 + $0xa0] sm:$0xff] %v3714_v44  ;;  %v4205_v26 = vpack.c.bf16 %v3715_v47, %v3714_v44 }
 0x653   : > { %4240 = vst [vmem:[%s5291_s11 + $0x48] sm:$0xff] %v4200_v34   ;;  %v4815_v14 = vpop.eup %4814  ;;  %vm3689_vm12 = vcmp.lt.s32.totalorder %v3657_v40, 512 }
 0x654   : > { %4241 = vst [vmem:[%s5291_s11 + $0x50] sm:$0xff] %v4205_v26   ;;  %v3587_v42 = vmul.f32 %v4815_v14, %v7214_v20  ;;  %v3522_v5 = vpop.xlane.xlu0 %3521 }
 0x655   : > { %v4817_v57 = vpop.eup %4816  ;;  %v3520_v41 = vpop.xlane.xlu2 %3519  ;;  %4820 = vrcp.f32 %v3522_v5 }
 0x656   : > { %v4819_v24 = vpop.eup %4818  ;;  %v3585_v8 = vmul.f32 %v4817_v57, %v7218_v11  ;;  %v3518_v27 = vpop.xlane.xlu1 %3517  ;;  %v3718_v13 = vsel %vm3686_vm9, %v3587_v42, 0.0 }
 0x657   : > { %v3586_v7 = vmul.f32 %v4819_v24, %v7216_v46  ;;  %4822 = vrcp.f32 %v3518_v27  ;;  %3750 = vst [vmem:[%s5289_s14 + $0xc0] sm:$0xff] %v3718_v13 }
 0x658   : > { %v3716_v20 = vsel %vm3684_vm10, %v3585_v8, 0.0  ;;  %4824 = vrcp.f32 %v3520_v41 }
 0x659   : > { %3748 = vst [vmem:[%s5289_s14 + $0xb0] sm:$0xff] %v3716_v20  ;;  %v3717_v51 = vsel %vm3685_vm11, %v3586_v7, 0.0 }
 0x65a   : > { %3749 = vst [vmem:[%s5289_s14 + $0xb8] sm:$0xff] %v3717_v51  ;;  %v4210_v11 = vpack.c.bf16 %v3717_v51, %v3716_v20 }
 0x65b   : > { %v4821_v32 = vpop.eup %4820 }
 0x65c   : > { %4242 = vst [vmem:[%s5291_s11 + $0x58] sm:$0xff] %v4210_v11   ;;  %v3590_v39 = vmul.f32 %v4821_v32, %v7226_v54  ;;  %v3528_v52 = vpop.xlane.xlu0 %3527 }
 0x65d   : > { %v4823_v46 = vpop.eup %4822  ;;  %v3526_v55 = vpop.xlane.xlu2 %3525  ;;  %4826 = vrcp.f32 %v3528_v52 }
 0x65e   : > { %v4825_v9 = vpop.eup %4824  ;;  %v3588_v56 = vmul.f32 %v4823_v46, %v7230_v17  ;;  %v3524_v4 = vpop.xlane.xlu1 %3523  ;;  %v3721_v60 = vsel %vm3689_vm12, %v3590_v39, 0.0 }
 0x65f   : > { %v3589_v54 = vmul.f32 %v4825_v9, %v7228_v3  ;;  %4828 = vrcp.f32 %v3524_v4  ;;  %3753 = vst [vmem:[%s5289_s14 + $0xd8] sm:$0xff] %v3721_v60 }
 0x660   : > { %v3719_v45 = vsel %vm3687_vm15, %v3588_v56, 0.0  ;;  %4830 = vrcp.f32 %v3526_v55 }
 0x661   : > { %3751 = vst [vmem:[%s5289_s14 + $0xc8] sm:$0xff] %v3719_v45  ;;  %v4215_v12 = vpack.c.bf16 %v3719_v45, %v3718_v13  ;;  %v3720_v17 = vsel %vm3688_vm0, %v3589_v54, 0.0 }
 0x662   : > { %3752 = vst [vmem:[%s5289_s14 + $0xd0] sm:$0xff] %v3720_v17  ;;  %v4220_v10 = vpack.c.bf16 %v3721_v60, %v3720_v17 }
 0x663   : > { %4243 = vst [vmem:[%s5291_s11 + $0x60] sm:$0xff] %v4215_v12   ;;  %v4827_v38 = vpop.eup %4826 }
 0x664   : > { %4244 = vst [vmem:[%s5291_s11 + $0x68] sm:$0xff] %v4220_v10   ;;  %v3593_v0 = vmul.f32 %v4827_v38, %v7236_v15  ;;  %v3661_v15 = vadd.s32 %v7253_v49, %v3628_v18 }
 0x665   : > { %v4829_v3 = vpop.eup %4828 }
 0x666   : > { %v4831_v35 = vpop.eup %4830  ;;  %v3591_v62 = vmul.f32 %v4829_v3, %v7240_v48  ;;  %v3530_v37 = vpop.xlane.xlu1 %3529  ;;  %v3724_v28 = vsel %vm3692_vm13, %v3593_v0, 0.0  ;;  %vm3693_vm14 = vcmp.lt.s32.totalorder %v3661_v15, 512 }
 0x667   : > { %v3592_v29 = vmul.f32 %v4831_v35, %v7238_v25  ;;  %4832 = vrcp.f32 %v3530_v37  ;;  %3756 = vst [vmem:[%s5289_s14 + $0xf0] sm:$0xff] %v3724_v28 }
 0x668   : > { %v3722_v50 = vsel %vm3690_vm3, %v3591_v62, 0.0 }
 0x669   : > { %3754 = vst [vmem:[%s5289_s14 + $0xe0] sm:$0xff] %v3722_v50  ;;  %v3723_v47 = vsel %vm3691_vm1, %v3592_v29, 0.0 }
 0x66a   : > { %3755 = vst [vmem:[%s5289_s14 + $0xe8] sm:$0xff] %v3723_v47  ;;  %v4225_v2 = vpack.c.bf16 %v3723_v47, %v3722_v50 }
 0x66c   : > { %4245 = vst [vmem:[%s5291_s11 + $0x70] sm:$0xff] %v4225_v2  }
 0x66d   : > { %v4833_v59 = vpop.eup %4832 }
 0x66e   : > { %v3594_v48 = vmul.f32 %v4833_v59, %v7245_v22 }
 0x670   : > { %v3725_v31 = vsel %vm3693_vm14, %v3594_v48, 0.0 }
 0x671   : > { %3757 = vst [vmem:[%s5289_s14 + $0xf8] sm:$0xff] %v3725_v31  ;;  %v4230_v61 = vpack.c.bf16 %v3725_v31, %v3724_v28 }
 0x673   : > { %4246 = vst [vmem:[%s5291_s11 + $0x78] sm:$0xff] %v4230_v61  }
 0x674 PF: > { %s4150_s16 = sshll.u32 %s5030_s27, 8  ;;  %s7770_s20 = sld [smem:[#allocation112_spill]] }
 0x675   : > { %s3840_s17 = sshll.u32 %s5289_s14, 4  ;;  %s3823_s18 = scalar_lea.sflag [#allocation8], %s5265_s3  ;;  %s3841_s17 = int_to_ptr.vmem [resolvable:$true] %s3840_s17 }
 0x67a   : > { %s3839_s7 = scalar_lea.hbm %s7770_s20, %s4150_s16  ;;  %s4912_s15 = scalar_lea.hbm %s7770_s20, 512 }
 0x67b   : > { %s3842_s19 = sshll.u32 %s3839_s7, 4  ;;  %s3843_s19 = int_to_ptr.hbm [resolvable:$true] %s3842_s19 }
 0x67c   : > { %s4906_s6 = sshra.s32 %s3843_s19, 4  ;;  %s4907_s6 = int_to_ptr.hbm [resolvable:$true] %s4906_s6 }
 0x67d   : > { %s4908_s8 = scalar_lea.hbm %s4907_s6, 256  ;;  %p4913_p2 = scmp.lt.s32.totalorder %s4907_s6, %s7770_s20 }
 0x67e   : > { %p4909_p12 = scmp.ne.s32.totalorder %s4907_s6, %s4908_s8  ;;  %p4914_p5 = scmp.lt.s32.totalorder %s4912_s15, %s4908_s8 }
 0x680   : > { %p4910_p0 = pnand %p4909_p12, %p5197_p13  ;;  %p4915_p6 = por %p4914_p5, %p4913_p2 }
 0x682   : > { %p4911_p1 = pneg %p4910_p0 }
 0x684   : > { %p4916_p9 = pnand %p4915_p6, %p4911_p1 }
 0x686   : > { %4919 = shalt.err (!%p4916_p9)
}
 0x687   : > { %s5053_s14 = smov 128   ;;  %s5054_s26 = smov 8  }
 0x688   : > { %4269 = dma.vmem_to_hbm [thread:$0]  (%p5197_p13), %s3841_s17, 4096, %s3843_s19, %s3823_s18, %s5053_s14, %s5053_s14, %s5054_s26  }
 0x689   : > { %s4151_s16 = sshll.u32 %s5030_s27, 7  ;;  %s3857_s21 = sshll.u32 %s5291_s11, 4  ;;  %s3858_s21 = int_to_ptr.vmem [resolvable:$true] %s3857_s21 }
 0x68a   : > { %s7771_s9 = sld [smem:[#allocation113_spill]]  ;;  %s3828_s8 = scalar_lea.sflag [#allocation13], %s5265_s3 }
 0x690   : > { %s3856_s10 = scalar_lea.hbm %s7771_s9, %s4151_s16  ;;  %s4940_s27 = scalar_lea.hbm %s7771_s9, 256 }
 0x691   : > { %s3859_s6 = sshll.u32 %s3856_s10, 4  ;;  %s3860_s6 = int_to_ptr.hbm [resolvable:$true] %s3859_s6 }
 0x692   : > { %s4934_s15 = sshra.s32 %s3860_s6, 4  ;;  %s4935_s15 = int_to_ptr.hbm [resolvable:$true] %s4934_s15 }
 0x693   : > { %s4936_s12 = scalar_lea.hbm %s4935_s15, 128  ;;  %p4941_p10 = scmp.lt.s32.totalorder %s4935_s15, %s7771_s9 }
 0x694   : > { %p4937_p3 = scmp.ne.s32.totalorder %s4935_s15, %s4936_s12  ;;  %p4942_p11 = scmp.lt.s32.totalorder %s4940_s27, %s4936_s12 }
 0x696   : > { %p4938_p7 = pnand %p4937_p3, %p5197_p13  ;;  %p4943_p12 = por %p4942_p11, %p4941_p10 }
 0x698   : > { %p4939_p8 = pneg %p4938_p7 }
 0x69a   : > { %p4944_p0 = pnand %p4943_p12, %p4939_p8 }
 0x69c   : > { %4947 = shalt.err (!%p4944_p0)
}
 0x69d   : > { %s5055_s3 = smov 64   ;;  %s5056_s19 = smov 4  }
 0x69e   : > { %4270 = dma.vmem_to_hbm [thread:$0]  (%p5197_p13), %s3858_s21, 2048, %s3860_s6, %s3828_s8, %s5055_s3, %s5055_s3, %s5056_s19  }
 0x69f PF: > { %s7772_s18 = sld [smem:[#allocation18_spill]]  ;;  %p4286_p1 = scmp.ge.s32.totalorder %s5042_s30, 2 }
 0x6a1   : > { %p4278_p2 = pnand %p4286_p1, %p5206_p4 }
 0x6a3   : > { %p4279_p5 = pneg %p4278_p2 }
 0x6a5   : > { %s3874_s0 = sand.u32 1, %s7772_s18  }
 0x6a6   : > { %s3875_s26 = scalar_lea.sflag [#allocation8], %s3874_s0 }
 0x6a7   : > { %4997 = dma.done.wait (%p4279_p5), %s3875_s26, 4096  }
 0x6a8   : > { %4999 = vsyncadd (%p4279_p5), %s3875_s26, 4294963200  ;;  %s3885_s16 = scalar_lea.sflag [#allocation13], %s3874_s0 }
 0x6a9   : > { %5001 = dma.done.wait (%p4279_p5), %s3885_s16, 2048  }
 0x6aa   : > { %5003 = vsyncadd (%p4279_p5), %s3885_s16, 4294965248  ;;  %s27_s30 = sadd.s32 1, %s5042_s30   ;;  %s7774_s5 = sld [smem:[#allocation21_spill]] }
 0x6ab   : > { %p24_p6 = scmp.ge.s32.totalorder %s27_s30, 6   ;;  %s7775_s13 = sld [smem:[#allocation22_spill]] }
 0x6ac   : > { %s7776_s7 = sld [smem:[#allocation19_spill]]  ;;  %s7778_s21 = smov %s5010_s22 }
 0x6ad   : > { %s7777_s10 = sld [smem:[#allocation20_spill]]  ;;  %s7779_s22 = smov %s5014_s23 }
 0x6ae   : > { %s7781_s24 = smov %s5022_s25  ;;  %s7783_s26 = smov %s5034_s28 }
 0x6af   : > { %s7784_s27 = smov %s5038_s29  ;;  %26 = sbr.rel (!%p24_p6) target bundleno = 16 (0x10), region = 153 }
 0x6b0   : > { %s7780_s23 = smov %s7774_s5 }
 0x6b1   : > { %s7782_s25 = smov %s7775_s13 }
 0x6b2   : > { %s7785_s28 = smov %s7776_s7 }
 0x6b3   : > { %s7786_s29 = smov %s7777_s10 }
 0x6b4   :  { %3891 = vsyncpa [#allocation7], 1 }
 0x6b5   :  { %3893 = vsyncpa [#allocation7 + $0x1], 1 }
 0x6b6   :  { %3894 = vsyncpa [#allocation10], 1 }
 0x6b7   :  { %3896 = vsyncpa [#allocation10 + $0x1], 1 }
 0x6b8   :  { %3897 = vsyncpa [#allocation8], 1 }
 0x6b9   :  { %3899 = vsyncpa [#allocation8 + $0x1], 1 }
 0x6ba   :  { %3900 = vsyncpa [#allocation13], 1 }
 0x6bb   :  { %3902 = vsyncpa [#allocation13 + $0x1], 1 }

</bundles_post_ra>
